<compile_context>
chip_gen: v7x
topology: tpu7x:2x2x1
jax: 0.10.0
libtpu: 0.0.40
codegen_flags: <defaults>
</compile_context>

<pallas_src>
import functools

import jax
import jax.numpy as jnp
import numpy as np
from jax import lax
from jax.experimental import pallas as pl
from jax.experimental.pallas import tpu as pltpu

_F32_MIN = float(np.finfo(np.float32).min)


# ------------------------------ fused Inception kernel -----------------------

def _inception_kernel(x_ref, wpt_ref, bpt_ref, w22_ref, w32_ref, bsp_ref,
                      o_ref, *, H, W, c1, c20, c21, c30, c31, c4):
    """One batch element, channel-major everywhere.

    x_ref  : (Cin, H*W)            channel-major input (free view of NCHW)
    wpt_ref: (c1+c20+c30+c4, Cin)  all four 1x1 conv weights stacked
    bpt_ref: (c1+c20+c30+c4, 1)
    w22_ref: (9,  c21, c20)        3x3 conv, one (Cout, Cmid) matrix per tap
    w32_ref: (25, c31, c30)        5x5 conv, one (Cout, Cmid) matrix per tap
    bsp_ref: (c21+c31, 1)          3x3 / 5x5 conv biases
    o_ref  : (c1+c21+c31+c4, H*W)  channel-major output (== NCHW concat)
    """
    HW = H * W
    HIGHEST = jax.lax.Precision.HIGHEST

    x = x_ref[...]                                       # (Cin, HW)

    # Static per-position indices for boundary masks (no vector int division).
    p_idx = lax.broadcasted_iota(jnp.int32, (1, HW), 1)
    if (W & (W - 1)) == 0:
        w_idx = jnp.bitwise_and(p_idx, W - 1)            # w = p mod W (pow2 W)
    else:
        w_idx = p_idx % W  # TODO(synk): verify vector-rem lowering for non-pow2 W.

    mask_cache = {}

    def tap_mask(ry, rx):
        """f32 (1, HW) 0/1 mask: source (h+ry, w+rx) is in bounds.
        Returns None for the always-valid interior tap.  Memoized."""
        key = (ry, rx)
        if key not in mask_cache:
            conds = []
            if ry < 0:
                conds.append(p_idx >= (-ry) * W)          # h >= -ry
            if ry > 0:
                conds.append(p_idx < (H - ry) * W)        # h <  H - ry
            if rx < 0:
                conds.append(w_idx >= -rx)                # w >= -rx
            if rx > 0:
                conds.append(w_idx < W - rx)              # w <  W - rx
            if not conds:
                mask_cache[key] = None
            else:
                m = conds[0]
                for c in conds[1:]:
                    m = jnp.logical_and(m, c)
                mask_cache[key] = jnp.where(m, 1.0, 0.0)  # f32 0/1, (1, HW)
        return mask_cache[key]

    def shift_hw(a, ry, rx):
        """Channel-major spatial shift: out[:, h*W+w] = a[:, (h+ry)*W + (w+rx)].
        Wrapped lanes carry garbage -- callers mask them with tap_mask."""
        off = ry * W + rx
        if off == 0:
            return a
        return pltpu.roll(a, shift=(-off) % HW, axis=1)   # XLU lane rotate

    def conv_kxk(act, w_taps_ref, bias, K, pad, cout):
        """KxK 'same' conv on a channel-major activation as K*K shifted,
        lane-dense MXU matmuls accumulated in f32 (no im2col, no transposes)."""
        w_taps = w_taps_ref[...]                          # (K*K, cout, cmid)
        acc = jnp.zeros((cout, HW), jnp.float32)
        for dy in range(K):
            for dx in range(K):
                ry, rx = dy - pad, dx - pad
                s = shift_hw(act, ry, rx)
                m = tap_mask(ry, rx)
                if m is not None:
                    s = s * m                             # zero-pad boundary
                acc = acc + jnp.dot(w_taps[dy * K + dx], s,
                                    preferred_element_type=jnp.float32,
                                    precision=HIGHEST)
        return jnp.maximum(acc + bias, 0.0)

    # ---- fused 1x1 convs over x: branch 1 + the 3x3 / 5x5 bottlenecks -------
    cf = c1 + c20 + c30
    wpt = wpt_ref[...]
    bpt = bpt_ref[...]
    bsp = bsp_ref[...]
    y0 = jnp.maximum(
        jnp.dot(wpt[0:cf], x, preferred_element_type=jnp.float32,
                precision=HIGHEST) + bpt[0:cf], 0.0)      # (cf, HW)
    p1 = y0[0:c1]                                         # branch-1 output
    a2 = y0[c1:c1 + c20]                                  # 3x3 bottleneck
    a3 = y0[c1 + c20:cf]                                  # 5x5 bottleneck

    # ---- branch 2: 3x3 conv (pad 1) ------------------------------------------
    p2 = conv_kxk(a2, w22_ref, bsp[0:c21], K=3, pad=1, cout=c21)

    # ---- branch 3: 5x5 conv (pad 2) ------------------------------------------
    p3 = conv_kxk(a3, w32_ref, bsp[c21:c21 + c31], K=5, pad=2, cout=c31)

    # ---- branch 4: 3x3/s1/p1 maxpool (roll + mask, VPU max), then 1x1 conv ---
    pooled = x                                            # center tap
    for dy in range(3):
        for dx in range(3):
            if dy == 1 and dx == 1:
                continue
            ry, rx = dy - 1, dx - 1
            s = shift_hw(x, ry, rx)
            m = tap_mask(ry, rx)
            if m is not None:
                # Sentinel fill instead of -inf (identical for finite inputs).
                s = s * m + (1.0 - m) * _F32_MIN
            pooled = jnp.maximum(pooled, s)
    p4 = jnp.maximum(
        jnp.dot(wpt[cf:cf + c4], pooled, preferred_element_type=jnp.float32,
                precision=HIGHEST) + bpt[cf:cf + c4], 0.0)

    # ---- single lane-dense channel-major store == torch.cat(dim=1) in NCHW --
    o_ref[...] = jnp.concatenate([p1, p2, p3, p4], axis=0)


# ------------------------------ wrapper ---------------------------------------

def inception_forward(x_nchw, params):
    N, Cin, H, W = x_nchw.shape
    HW = H * W

    w1, b1 = params["p1_1"]
    w21, b21 = params["p2_1"]
    w22, b22 = params["p2_2"]
    w31, b31 = params["p3_1"]
    w32, b32 = params["p3_2"]
    w4, b4 = params["p4_2"]

    c1 = w1.shape[0]
    c20, c21 = w21.shape[0], w22.shape[0]
    c30, c31 = w31.shape[0], w32.shape[0]
    c4 = w4.shape[0]
    Ctot = c1 + c21 + c31 + c4
    Cpt = c1 + c20 + c30 + c4

    # Channel-major input: a FREE view of NCHW (no transpose pass in HBM).
    x_cm = x_nchw.reshape(N, Cin, HW)

    # Tiny one-off weight repacks (outside the kernel, amortized under jit):
    # all four pointwise (1x1) weights in one slab, spatial convs as per-tap
    # (Cout, Cmid) matrices, biases grouped.
    w_pt = jnp.concatenate(
        [w1.reshape(c1, Cin), w21.reshape(c20, Cin),
         w31.reshape(c30, Cin), w4.reshape(c4, Cin)], axis=0)      # (Cpt, Cin)
    b_pt = jnp.concatenate([b1, b21, b31, b4]).reshape(Cpt, 1)
    w22_taps = jnp.transpose(w22, (2, 3, 0, 1)).reshape(9, c21, c20)
    w32_taps = jnp.transpose(w32, (2, 3, 0, 1)).reshape(25, c31, c30)
    b_sp = jnp.concatenate([b22, b32]).reshape(c21 + c31, 1)

    kernel = functools.partial(
        _inception_kernel, H=H, W=W,
        c1=c1, c20=c20, c21=c21, c30=c30, c31=c31, c4=c4)

    out = pl.pallas_call(
        kernel,
        out_shape=jax.ShapeDtypeStruct((N, Ctot, HW), jnp.float32),
        grid=(N,),
        in_specs=[
            pl.BlockSpec((None, Cin, HW), lambda n: (n, 0, 0)),
            pl.BlockSpec((Cpt, Cin), lambda n: (0, 0)),
            pl.BlockSpec((Cpt, 1), lambda n: (0, 0)),
            pl.BlockSpec((9, c21, c20), lambda n: (0, 0, 0)),
            pl.BlockSpec((25, c31, c30), lambda n: (0, 0, 0)),
            pl.BlockSpec((c21 + c31, 1), lambda n: (0, 0)),
        ],
        out_specs=pl.BlockSpec((None, Ctot, HW), lambda n: (n, 0, 0)),
        compiler_params=pltpu.CompilerParams(
            # N >= 2 parallel grid steps -> both v7x TensorCores get work.
            dimension_semantics=("parallel",),
            vmem_limit_bytes=32 * 1024 * 1024),
    )(x_cm, w_pt, b_pt, w22_taps, w32_taps, b_sp)

    # (N, Ctot, H*W) is already channel-major NCHW: free reshape, no concat.
    return out.reshape(N, Ctot, H, W)


# ------------------------------ params ----------------------------------------

def init_inception_params(key, in_channels, c1, c2, c3, c4):
    """Deterministic torch-like (uniform +-1/sqrt(fan_in)) conv param init."""
    def conv_init(k, cout, cin, ksz):
        kw, kb = jax.random.split(k)
        bound = 1.0 / np.sqrt(cin * ksz * ksz)
        w = jax.random.uniform(kw, (cout, cin, ksz, ksz), jnp.float32,
                               -bound, bound)
        b = jax.random.uniform(kb, (cout,), jnp.float32, -bound, bound)
        return w, b

    keys = jax.random.split(key, 6)
    return {
        "p1_1": conv_init(keys[0], c1, in_channels, 1),
        "p2_1": conv_init(keys[1], c2[0], in_channels, 1),
        "p2_2": conv_init(keys[2], c2[1], c2[0], 3),
        "p3_1": conv_init(keys[3], c3[0], in_channels, 1),
        "p3_2": conv_init(keys[4], c3[1], c3[0], 5),
        "p4_2": conv_init(keys[5], c4, in_channels, 1),
    }


# ------------------------------ pure-JAX reference -----------------------------

def _ref_conv(x, w, b, pad):
    y = lax.conv_general_dilated(
        x, w, (1, 1), [(pad, pad), (pad, pad)],
        dimension_numbers=("NCHW", "OIHW", "NCHW"),
        precision=lax.Precision.HIGHEST)
    return y + b[None, :, None, None]


def ref_inception(x, params):
    relu = lambda z: jnp.maximum(z, 0.0)
    p1 = relu(_ref_conv(x, *params["p1_1"], 0))
    p2 = relu(_ref_conv(relu(_ref_conv(x, *params["p2_1"], 0)),
                        *params["p2_2"], 1))
    p3 = relu(_ref_conv(relu(_ref_conv(x, *params["p3_1"], 0)),
                        *params["p3_2"], 2))
    pooled = lax.reduce_window(x, -jnp.inf, lax.max,
                               (1, 1, 3, 3), (1, 1, 1, 1),
                               [(0, 0), (0, 0), (1, 1), (1, 1)])
    p4 = relu(_ref_conv(pooled, *params["p4_2"], 0))
    return jnp.concatenate([p1, p2, p3, p4], axis=1)


# ------------------------------ main -------------------------------------------

if __name__ == "__main__":
    key = jax.random.PRNGKey(0)
    kx, kp = jax.random.split(key)

    N, Cin, H, W = 2, 4, 16, 16
    c1, c2, c3, c4 = 4, (4, 8), (2, 4), 4

    x = jax.random.normal(kx, (N, Cin, H, W), jnp.float32)
    params = init_inception_params(kp, Cin, c1, c2, c3, c4)

    out = jax.jit(inception_forward)(x, params)
    out = jax.block_until_ready(out)

    assert out.shape == (N, c1 + c2[1] + c3[1] + c4, H, W), out.shape
    assert out.dtype == jnp.float32

    ref = ref_inception(x, params)
    np.testing.assert_allclose(np.asarray(out), np.asarray(ref),
                               rtol=1e-4, atol=1e-5)

    print("KERNEL_OK")
</pallas_src>

<mosaic_0001>
module attributes {stable_mosaic.version = 11 : i64} {
  func.func @_inception_kernel(%arg0: i32, %arg1: memref<1x4x256xf32, #tpu.memory_space<vmem>>, %arg2: memref<14x4xf32, #tpu.memory_space<vmem>>, %arg3: memref<14x1xf32, #tpu.memory_space<vmem>>, %arg4: memref<9x8x4xf32, #tpu.memory_space<vmem>>, %arg5: memref<25x4x2xf32, #tpu.memory_space<vmem>>, %arg6: memref<12x1xf32, #tpu.memory_space<vmem>>, %arg7: memref<1x20x256xf32, #tpu.memory_space<vmem>>) attributes {dimension_semantics = [#tpu.dimension_semantics<parallel>], iteration_bounds = array<i64: 2>, scalar_prefetch = 0 : i64, scratch_operands = 0 : i64, tpu.core_type = #tpu.core_type<tc>, window_params = [{transform_indices = @transform_0, window_bounds = array<i64: 1, 4, 256>}, {pipeline_mode = #tpu.pipeline_mode<synchronous>, transform_indices = @transform_1, window_bounds = array<i64: 14, 4>}, {pipeline_mode = #tpu.pipeline_mode<synchronous>, transform_indices = @transform_2, window_bounds = array<i64: 14, 1>}, {pipeline_mode = #tpu.pipeline_mode<synchronous>, transform_indices = @transform_3, window_bounds = array<i64: 9, 8, 4>}, {pipeline_mode = #tpu.pipeline_mode<synchronous>, transform_indices = @transform_4, window_bounds = array<i64: 25, 4, 2>}, {pipeline_mode = #tpu.pipeline_mode<synchronous>, transform_indices = @transform_5, window_bounds = array<i64: 12, 1>}, {transform_indices = @transform_6, window_bounds = array<i64: 1, 20, 256>}]} {
    %c0 = arith.constant 0 : index
    %c0_0 = arith.constant 0 : index
    %c0_1 = arith.constant 0 : index
    %0 = vector.load %arg1[%c0, %c0_0, %c0_1] : memref<1x4x256xf32, #tpu.memory_space<vmem>>, vector<1x4x256xf32>
    %1 = vector.shape_cast %0 : vector<1x4x256xf32> to vector<4x256xf32>
    %2 = tpu.iota {dimensions = array<i32: 1>} : vector<1x256xi32>
    %c15_i32 = arith.constant 15 : i32
    %3 = vector.broadcast %c15_i32 : i32 to vector<1x256xi32>
    %4 = arith.andi %2, %3 : vector<1x256xi32>
    %c0_2 = arith.constant 0 : index
    %c0_3 = arith.constant 0 : index
    %5 = vector.load %arg2[%c0_2, %c0_3] : memref<14x4xf32, #tpu.memory_space<vmem>>, vector<14x4xf32>
    %c0_4 = arith.constant 0 : index
    %c0_5 = arith.constant 0 : index
    %6 = vector.load %arg3[%c0_4, %c0_5] : memref<14x1xf32, #tpu.memory_space<vmem>>, vector<14x1xf32>
    %c0_6 = arith.constant 0 : index
    %c0_7 = arith.constant 0 : index
    %7 = vector.load %arg6[%c0_6, %c0_7] : memref<12x1xf32, #tpu.memory_space<vmem>>, vector<12x1xf32>
    %8 = vector.extract_strided_slice %5 {offsets = [0, 0], sizes = [10, 4], strides = [1, 1]} : vector<14x4xf32> to vector<10x4xf32>
    %cst = arith.constant dense<0.000000e+00> : vector<10x256xf32>
    %9 = tpu.matmul %8, %1, %cst {dimension_numbers = #tpu.dot_dimension_numbers<[1], [0], [0], [1], [0, 0, 1, 1], [], []>, precision = #tpu.contract_precision<fp32>} : vector<10x4xf32>, vector<4x256xf32>, vector<10x256xf32> -> vector<10x256xf32>
    %10 = vector.extract_strided_slice %6 {offsets = [0, 0], sizes = [10, 1], strides = [1, 1]} : vector<14x1xf32> to vector<10x1xf32>
    %11 = vector.broadcast %10 : vector<10x1xf32> to vector<10x256xf32>
    %12 = arith.addf %9, %11 : vector<10x256xf32>
    %cst_8 = arith.constant 0.000000e+00 : f32
    %13 = vector.broadcast %cst_8 : f32 to vector<10x256xf32>
    %14 = arith.maximumf %12, %13 : vector<10x256xf32>
    %15 = vector.extract_strided_slice %14 {offsets = [0, 0], sizes = [4, 256], strides = [1, 1]} : vector<10x256xf32> to vector<4x256xf32>
    %16 = vector.extract_strided_slice %14 {offsets = [4, 0], sizes = [4, 256], strides = [1, 1]} : vector<10x256xf32> to vector<4x256xf32>
    %17 = vector.extract_strided_slice %14 {offsets = [8, 0], sizes = [2, 256], strides = [1, 1]} : vector<10x256xf32> to vector<2x256xf32>
    %18 = vector.extract_strided_slice %7 {offsets = [0, 0], sizes = [8, 1], strides = [1, 1]} : vector<12x1xf32> to vector<8x1xf32>
    %c0_9 = arith.constant 0 : index
    %c0_10 = arith.constant 0 : index
    %c0_11 = arith.constant 0 : index
    %19 = vector.load %arg4[%c0_9, %c0_10, %c0_11] : memref<9x8x4xf32, #tpu.memory_space<vmem>>, vector<9x8x4xf32>
    %cst_12 = arith.constant 0.000000e+00 : f32
    %20 = vector.broadcast %cst_12 : f32 to vector<8x256xf32>
    %c17_i32 = arith.constant 17 : i32
    %21 = tpu.dynamic_rotate %16 by %c17_i32 dim 1 : vector<4x256xf32>, i32 -> vector<4x256xf32>
    %c16_i32 = arith.constant 16 : i32
    %22 = vector.broadcast %c16_i32 : i32 to vector<1x256xi32>
    %23 = arith.cmpi sge, %2, %22 : vector<1x256xi32>
    %c1_i32 = arith.constant 1 : i32
    %24 = vector.broadcast %c1_i32 : i32 to vector<1x256xi32>
    %25 = arith.cmpi sge, %4, %24 : vector<1x256xi32>
    %26 = arith.andi %23, %25 : vector<1x256xi1>
    %cst_13 = arith.constant 1.000000e+00 : f32
    %cst_14 = arith.constant 0.000000e+00 : f32
    %27 = vector.broadcast %cst_13 : f32 to vector<1x256xf32>
    %28 = vector.broadcast %cst_14 : f32 to vector<1x256xf32>
    %29 = arith.select %26, %27, %28 : vector<1x256xi1>, vector<1x256xf32>
    %30 = vector.broadcast %29 : vector<1x256xf32> to vector<4x256xf32>
    %31 = arith.mulf %21, %30 : vector<4x256xf32>
    %32 = vector.extract_strided_slice %19 {offsets = [0, 0, 0], sizes = [1, 8, 4], strides = [1, 1, 1]} : vector<9x8x4xf32> to vector<1x8x4xf32>
    %33 = vector.shape_cast %32 : vector<1x8x4xf32> to vector<8x4xf32>
    %cst_15 = arith.constant dense<0.000000e+00> : vector<8x256xf32>
    %34 = tpu.matmul %33, %31, %cst_15 {dimension_numbers = #tpu.dot_dimension_numbers<[1], [0], [0], [1], [0, 0, 1, 1], [], []>, precision = #tpu.contract_precision<fp32>} : vector<8x4xf32>, vector<4x256xf32>, vector<8x256xf32> -> vector<8x256xf32>
    %35 = arith.addf %20, %34 : vector<8x256xf32>
    %c16_i32_16 = arith.constant 16 : i32
    %36 = tpu.dynamic_rotate %16 by %c16_i32_16 dim 1 : vector<4x256xf32>, i32 -> vector<4x256xf32>
    %c16_i32_17 = arith.constant 16 : i32
    %37 = vector.broadcast %c16_i32_17 : i32 to vector<1x256xi32>
    %38 = arith.cmpi sge, %2, %37 : vector<1x256xi32>
    %cst_18 = arith.constant 1.000000e+00 : f32
    %cst_19 = arith.constant 0.000000e+00 : f32
    %39 = vector.broadcast %cst_18 : f32 to vector<1x256xf32>
    %40 = vector.broadcast %cst_19 : f32 to vector<1x256xf32>
    %41 = arith.select %38, %39, %40 : vector<1x256xi1>, vector<1x256xf32>
    %42 = vector.broadcast %41 : vector<1x256xf32> to vector<4x256xf32>
    %43 = arith.mulf %36, %42 : vector<4x256xf32>
    %44 = vector.extract_strided_slice %19 {offsets = [1, 0, 0], sizes = [1, 8, 4], strides = [1, 1, 1]} : vector<9x8x4xf32> to vector<1x8x4xf32>
    %45 = vector.shape_cast %44 : vector<1x8x4xf32> to vector<8x4xf32>
    %cst_20 = arith.constant dense<0.000000e+00> : vector<8x256xf32>
    %46 = tpu.matmul %45, %43, %cst_20 {dimension_numbers = #tpu.dot_dimension_numbers<[1], [0], [0], [1], [0, 0, 1, 1], [], []>, precision = #tpu.contract_precision<fp32>} : vector<8x4xf32>, vector<4x256xf32>, vector<8x256xf32> -> vector<8x256xf32>
    %47 = arith.addf %35, %46 : vector<8x256xf32>
    %c15_i32_21 = arith.constant 15 : i32
    %48 = tpu.dynamic_rotate %16 by %c15_i32_21 dim 1 : vector<4x256xf32>, i32 -> vector<4x256xf32>
    %c16_i32_22 = arith.constant 16 : i32
    %49 = vector.broadcast %c16_i32_22 : i32 to vector<1x256xi32>
    %50 = arith.cmpi sge, %2, %49 : vector<1x256xi32>
    %c15_i32_23 = arith.constant 15 : i32
    %51 = vector.broadcast %c15_i32_23 : i32 to vector<1x256xi32>
    %52 = arith.cmpi slt, %4, %51 : vector<1x256xi32>
    %53 = arith.andi %50, %52 : vector<1x256xi1>
    %cst_24 = arith.constant 1.000000e+00 : f32
    %cst_25 = arith.constant 0.000000e+00 : f32
    %54 = vector.broadcast %cst_24 : f32 to vector<1x256xf32>
    %55 = vector.broadcast %cst_25 : f32 to vector<1x256xf32>
    %56 = arith.select %53, %54, %55 : vector<1x256xi1>, vector<1x256xf32>
    %57 = vector.broadcast %56 : vector<1x256xf32> to vector<4x256xf32>
    %58 = arith.mulf %48, %57 : vector<4x256xf32>
    %59 = vector.extract_strided_slice %19 {offsets = [2, 0, 0], sizes = [1, 8, 4], strides = [1, 1, 1]} : vector<9x8x4xf32> to vector<1x8x4xf32>
    %60 = vector.shape_cast %59 : vector<1x8x4xf32> to vector<8x4xf32>
    %cst_26 = arith.constant dense<0.000000e+00> : vector<8x256xf32>
    %61 = tpu.matmul %60, %58, %cst_26 {dimension_numbers = #tpu.dot_dimension_numbers<[1], [0], [0], [1], [0, 0, 1, 1], [], []>, precision = #tpu.contract_precision<fp32>} : vector<8x4xf32>, vector<4x256xf32>, vector<8x256xf32> -> vector<8x256xf32>
    %62 = arith.addf %47, %61 : vector<8x256xf32>
    %c1_i32_27 = arith.constant 1 : i32
    %63 = tpu.dynamic_rotate %16 by %c1_i32_27 dim 1 : vector<4x256xf32>, i32 -> vector<4x256xf32>
    %c1_i32_28 = arith.constant 1 : i32
    %64 = vector.broadcast %c1_i32_28 : i32 to vector<1x256xi32>
    %65 = arith.cmpi sge, %4, %64 : vector<1x256xi32>
    %cst_29 = arith.constant 1.000000e+00 : f32
    %cst_30 = arith.constant 0.000000e+00 : f32
    %66 = vector.broadcast %cst_29 : f32 to vector<1x256xf32>
    %67 = vector.broadcast %cst_30 : f32 to vector<1x256xf32>
    %68 = arith.select %65, %66, %67 : vector<1x256xi1>, vector<1x256xf32>
    %69 = vector.broadcast %68 : vector<1x256xf32> to vector<4x256xf32>
    %70 = arith.mulf %63, %69 : vector<4x256xf32>
    %71 = vector.extract_strided_slice %19 {offsets = [3, 0, 0], sizes = [1, 8, 4], strides = [1, 1, 1]} : vector<9x8x4xf32> to vector<1x8x4xf32>
    %72 = vector.shape_cast %71 : vector<1x8x4xf32> to vector<8x4xf32>
    %cst_31 = arith.constant dense<0.000000e+00> : vector<8x256xf32>
    %73 = tpu.matmul %72, %70, %cst_31 {dimension_numbers = #tpu.dot_dimension_numbers<[1], [0], [0], [1], [0, 0, 1, 1], [], []>, precision = #tpu.contract_precision<fp32>} : vector<8x4xf32>, vector<4x256xf32>, vector<8x256xf32> -> vector<8x256xf32>
    %74 = arith.addf %62, %73 : vector<8x256xf32>
    %75 = vector.extract_strided_slice %19 {offsets = [4, 0, 0], sizes = [1, 8, 4], strides = [1, 1, 1]} : vector<9x8x4xf32> to vector<1x8x4xf32>
    %76 = vector.shape_cast %75 : vector<1x8x4xf32> to vector<8x4xf32>
    %cst_32 = arith.constant dense<0.000000e+00> : vector<8x256xf32>
    %77 = tpu.matmul %76, %16, %cst_32 {dimension_numbers = #tpu.dot_dimension_numbers<[1], [0], [0], [1], [0, 0, 1, 1], [], []>, precision = #tpu.contract_precision<fp32>} : vector<8x4xf32>, vector<4x256xf32>, vector<8x256xf32> -> vector<8x256xf32>
    %78 = arith.addf %74, %77 : vector<8x256xf32>
    %c255_i32 = arith.constant 255 : i32
    %79 = tpu.dynamic_rotate %16 by %c255_i32 dim 1 : vector<4x256xf32>, i32 -> vector<4x256xf32>
    %c15_i32_33 = arith.constant 15 : i32
    %80 = vector.broadcast %c15_i32_33 : i32 to vector<1x256xi32>
    %81 = arith.cmpi slt, %4, %80 : vector<1x256xi32>
    %cst_34 = arith.constant 1.000000e+00 : f32
    %cst_35 = arith.constant 0.000000e+00 : f32
    %82 = vector.broadcast %cst_34 : f32 to vector<1x256xf32>
    %83 = vector.broadcast %cst_35 : f32 to vector<1x256xf32>
    %84 = arith.select %81, %82, %83 : vector<1x256xi1>, vector<1x256xf32>
    %85 = vector.broadcast %84 : vector<1x256xf32> to vector<4x256xf32>
    %86 = arith.mulf %79, %85 : vector<4x256xf32>
    %87 = vector.extract_strided_slice %19 {offsets = [5, 0, 0], sizes = [1, 8, 4], strides = [1, 1, 1]} : vector<9x8x4xf32> to vector<1x8x4xf32>
    %88 = vector.shape_cast %87 : vector<1x8x4xf32> to vector<8x4xf32>
    %cst_36 = arith.constant dense<0.000000e+00> : vector<8x256xf32>
    %89 = tpu.matmul %88, %86, %cst_36 {dimension_numbers = #tpu.dot_dimension_numbers<[1], [0], [0], [1], [0, 0, 1, 1], [], []>, precision = #tpu.contract_precision<fp32>} : vector<8x4xf32>, vector<4x256xf32>, vector<8x256xf32> -> vector<8x256xf32>
    %90 = arith.addf %78, %89 : vector<8x256xf32>
    %c241_i32 = arith.constant 241 : i32
    %91 = tpu.dynamic_rotate %16 by %c241_i32 dim 1 : vector<4x256xf32>, i32 -> vector<4x256xf32>
    %c240_i32 = arith.constant 240 : i32
    %92 = vector.broadcast %c240_i32 : i32 to vector<1x256xi32>
    %93 = arith.cmpi slt, %2, %92 : vector<1x256xi32>
    %c1_i32_37 = arith.constant 1 : i32
    %94 = vector.broadcast %c1_i32_37 : i32 to vector<1x256xi32>
    %95 = arith.cmpi sge, %4, %94 : vector<1x256xi32>
    %96 = arith.andi %93, %95 : vector<1x256xi1>
    %cst_38 = arith.constant 1.000000e+00 : f32
    %cst_39 = arith.constant 0.000000e+00 : f32
    %97 = vector.broadcast %cst_38 : f32 to vector<1x256xf32>
    %98 = vector.broadcast %cst_39 : f32 to vector<1x256xf32>
    %99 = arith.select %96, %97, %98 : vector<1x256xi1>, vector<1x256xf32>
    %100 = vector.broadcast %99 : vector<1x256xf32> to vector<4x256xf32>
    %101 = arith.mulf %91, %100 : vector<4x256xf32>
    %102 = vector.extract_strided_slice %19 {offsets = [6, 0, 0], sizes = [1, 8, 4], strides = [1, 1, 1]} : vector<9x8x4xf32> to vector<1x8x4xf32>
    %103 = vector.shape_cast %102 : vector<1x8x4xf32> to vector<8x4xf32>
    %cst_40 = arith.constant dense<0.000000e+00> : vector<8x256xf32>
    %104 = tpu.matmul %103, %101, %cst_40 {dimension_numbers = #tpu.dot_dimension_numbers<[1], [0], [0], [1], [0, 0, 1, 1], [], []>, precision = #tpu.contract_precision<fp32>} : vector<8x4xf32>, vector<4x256xf32>, vector<8x256xf32> -> vector<8x256xf32>
    %105 = arith.addf %90, %104 : vector<8x256xf32>
    %c240_i32_41 = arith.constant 240 : i32
    %106 = tpu.dynamic_rotate %16 by %c240_i32_41 dim 1 : vector<4x256xf32>, i32 -> vector<4x256xf32>
    %c240_i32_42 = arith.constant 240 : i32
    %107 = vector.broadcast %c240_i32_42 : i32 to vector<1x256xi32>
    %108 = arith.cmpi slt, %2, %107 : vector<1x256xi32>
    %cst_43 = arith.constant 1.000000e+00 : f32
    %cst_44 = arith.constant 0.000000e+00 : f32
    %109 = vector.broadcast %cst_43 : f32 to vector<1x256xf32>
    %110 = vector.broadcast %cst_44 : f32 to vector<1x256xf32>
    %111 = arith.select %108, %109, %110 : vector<1x256xi1>, vector<1x256xf32>
    %112 = vector.broadcast %111 : vector<1x256xf32> to vector<4x256xf32>
    %113 = arith.mulf %106, %112 : vector<4x256xf32>
    %114 = vector.extract_strided_slice %19 {offsets = [7, 0, 0], sizes = [1, 8, 4], strides = [1, 1, 1]} : vector<9x8x4xf32> to vector<1x8x4xf32>
    %115 = vector.shape_cast %114 : vector<1x8x4xf32> to vector<8x4xf32>
    %cst_45 = arith.constant dense<0.000000e+00> : vector<8x256xf32>
    %116 = tpu.matmul %115, %113, %cst_45 {dimension_numbers = #tpu.dot_dimension_numbers<[1], [0], [0], [1], [0, 0, 1, 1], [], []>, precision = #tpu.contract_precision<fp32>} : vector<8x4xf32>, vector<4x256xf32>, vector<8x256xf32> -> vector<8x256xf32>
    %117 = arith.addf %105, %116 : vector<8x256xf32>
    %c239_i32 = arith.constant 239 : i32
    %118 = tpu.dynamic_rotate %16 by %c239_i32 dim 1 : vector<4x256xf32>, i32 -> vector<4x256xf32>
    %c240_i32_46 = arith.constant 240 : i32
    %119 = vector.broadcast %c240_i32_46 : i32 to vector<1x256xi32>
    %120 = arith.cmpi slt, %2, %119 : vector<1x256xi32>
    %c15_i32_47 = arith.constant 15 : i32
    %121 = vector.broadcast %c15_i32_47 : i32 to vector<1x256xi32>
    %122 = arith.cmpi slt, %4, %121 : vector<1x256xi32>
    %123 = arith.andi %120, %122 : vector<1x256xi1>
    %cst_48 = arith.constant 1.000000e+00 : f32
    %cst_49 = arith.constant 0.000000e+00 : f32
    %124 = vector.broadcast %cst_48 : f32 to vector<1x256xf32>
    %125 = vector.broadcast %cst_49 : f32 to vector<1x256xf32>
    %126 = arith.select %123, %124, %125 : vector<1x256xi1>, vector<1x256xf32>
    %127 = vector.broadcast %126 : vector<1x256xf32> to vector<4x256xf32>
    %128 = arith.mulf %118, %127 : vector<4x256xf32>
    %129 = vector.extract_strided_slice %19 {offsets = [8, 0, 0], sizes = [1, 8, 4], strides = [1, 1, 1]} : vector<9x8x4xf32> to vector<1x8x4xf32>
    %130 = vector.shape_cast %129 : vector<1x8x4xf32> to vector<8x4xf32>
    %cst_50 = arith.constant dense<0.000000e+00> : vector<8x256xf32>
    %131 = tpu.matmul %130, %128, %cst_50 {dimension_numbers = #tpu.dot_dimension_numbers<[1], [0], [0], [1], [0, 0, 1, 1], [], []>, precision = #tpu.contract_precision<fp32>} : vector<8x4xf32>, vector<4x256xf32>, vector<8x256xf32> -> vector<8x256xf32>
    %132 = arith.addf %117, %131 : vector<8x256xf32>
    %133 = vector.broadcast %18 : vector<8x1xf32> to vector<8x256xf32>
    %134 = arith.addf %132, %133 : vector<8x256xf32>
    %cst_51 = arith.constant 0.000000e+00 : f32
    %135 = vector.broadcast %cst_51 : f32 to vector<8x256xf32>
    %136 = arith.maximumf %134, %135 : vector<8x256xf32>
    %137 = vector.extract_strided_slice %7 {offsets = [8, 0], sizes = [4, 1], strides = [1, 1]} : vector<12x1xf32> to vector<4x1xf32>
    %c0_52 = arith.constant 0 : index
    %c0_53 = arith.constant 0 : index
    %c0_54 = arith.constant 0 : index
    %138 = vector.load %arg5[%c0_52, %c0_53, %c0_54] : memref<25x4x2xf32, #tpu.memory_space<vmem>>, vector<25x4x2xf32>
    %cst_55 = arith.constant 0.000000e+00 : f32
    %139 = vector.broadcast %cst_55 : f32 to vector<4x256xf32>
    %c34_i32 = arith.constant 34 : i32
    %140 = tpu.dynamic_rotate %17 by %c34_i32 dim 1 : vector<2x256xf32>, i32 -> vector<2x256xf32>
    %c32_i32 = arith.constant 32 : i32
    %141 = vector.broadcast %c32_i32 : i32 to vector<1x256xi32>
    %142 = arith.cmpi sge, %2, %141 : vector<1x256xi32>
    %c2_i32 = arith.constant 2 : i32
    %143 = vector.broadcast %c2_i32 : i32 to vector<1x256xi32>
    %144 = arith.cmpi sge, %4, %143 : vector<1x256xi32>
    %145 = arith.andi %142, %144 : vector<1x256xi1>
    %cst_56 = arith.constant 1.000000e+00 : f32
    %cst_57 = arith.constant 0.000000e+00 : f32
    %146 = vector.broadcast %cst_56 : f32 to vector<1x256xf32>
    %147 = vector.broadcast %cst_57 : f32 to vector<1x256xf32>
    %148 = arith.select %145, %146, %147 : vector<1x256xi1>, vector<1x256xf32>
    %149 = vector.broadcast %148 : vector<1x256xf32> to vector<2x256xf32>
    %150 = arith.mulf %140, %149 : vector<2x256xf32>
    %151 = vector.extract_strided_slice %138 {offsets = [0, 0, 0], sizes = [1, 4, 2], strides = [1, 1, 1]} : vector<25x4x2xf32> to vector<1x4x2xf32>
    %152 = vector.shape_cast %151 : vector<1x4x2xf32> to vector<4x2xf32>
    %cst_58 = arith.constant dense<0.000000e+00> : vector<4x256xf32>
    %153 = tpu.matmul %152, %150, %cst_58 {dimension_numbers = #tpu.dot_dimension_numbers<[1], [0], [0], [1], [0, 0, 1, 1], [], []>, precision = #tpu.contract_precision<fp32>} : vector<4x2xf32>, vector<2x256xf32>, vector<4x256xf32> -> vector<4x256xf32>
    %154 = arith.addf %139, %153 : vector<4x256xf32>
    %c33_i32 = arith.constant 33 : i32
    %155 = tpu.dynamic_rotate %17 by %c33_i32 dim 1 : vector<2x256xf32>, i32 -> vector<2x256xf32>
    %c32_i32_59 = arith.constant 32 : i32
    %156 = vector.broadcast %c32_i32_59 : i32 to vector<1x256xi32>
    %157 = arith.cmpi sge, %2, %156 : vector<1x256xi32>
    %c1_i32_60 = arith.constant 1 : i32
    %158 = vector.broadcast %c1_i32_60 : i32 to vector<1x256xi32>
    %159 = arith.cmpi sge, %4, %158 : vector<1x256xi32>
    %160 = arith.andi %157, %159 : vector<1x256xi1>
    %cst_61 = arith.constant 1.000000e+00 : f32
    %cst_62 = arith.constant 0.000000e+00 : f32
    %161 = vector.broadcast %cst_61 : f32 to vector<1x256xf32>
    %162 = vector.broadcast %cst_62 : f32 to vector<1x256xf32>
    %163 = arith.select %160, %161, %162 : vector<1x256xi1>, vector<1x256xf32>
    %164 = vector.broadcast %163 : vector<1x256xf32> to vector<2x256xf32>
    %165 = arith.mulf %155, %164 : vector<2x256xf32>
    %166 = vector.extract_strided_slice %138 {offsets = [1, 0, 0], sizes = [1, 4, 2], strides = [1, 1, 1]} : vector<25x4x2xf32> to vector<1x4x2xf32>
    %167 = vector.shape_cast %166 : vector<1x4x2xf32> to vector<4x2xf32>
    %cst_63 = arith.constant dense<0.000000e+00> : vector<4x256xf32>
    %168 = tpu.matmul %167, %165, %cst_63 {dimension_numbers = #tpu.dot_dimension_numbers<[1], [0], [0], [1], [0, 0, 1, 1], [], []>, precision = #tpu.contract_precision<fp32>} : vector<4x2xf32>, vector<2x256xf32>, vector<4x256xf32> -> vector<4x256xf32>
    %169 = arith.addf %154, %168 : vector<4x256xf32>
    %c32_i32_64 = arith.constant 32 : i32
    %170 = tpu.dynamic_rotate %17 by %c32_i32_64 dim 1 : vector<2x256xf32>, i32 -> vector<2x256xf32>
    %c32_i32_65 = arith.constant 32 : i32
    %171 = vector.broadcast %c32_i32_65 : i32 to vector<1x256xi32>
    %172 = arith.cmpi sge, %2, %171 : vector<1x256xi32>
    %cst_66 = arith.constant 1.000000e+00 : f32
    %cst_67 = arith.constant 0.000000e+00 : f32
    %173 = vector.broadcast %cst_66 : f32 to vector<1x256xf32>
    %174 = vector.broadcast %cst_67 : f32 to vector<1x256xf32>
    %175 = arith.select %172, %173, %174 : vector<1x256xi1>, vector<1x256xf32>
    %176 = vector.broadcast %175 : vector<1x256xf32> to vector<2x256xf32>
    %177 = arith.mulf %170, %176 : vector<2x256xf32>
    %178 = vector.extract_strided_slice %138 {offsets = [2, 0, 0], sizes = [1, 4, 2], strides = [1, 1, 1]} : vector<25x4x2xf32> to vector<1x4x2xf32>
    %179 = vector.shape_cast %178 : vector<1x4x2xf32> to vector<4x2xf32>
    %cst_68 = arith.constant dense<0.000000e+00> : vector<4x256xf32>
    %180 = tpu.matmul %179, %177, %cst_68 {dimension_numbers = #tpu.dot_dimension_numbers<[1], [0], [0], [1], [0, 0, 1, 1], [], []>, precision = #tpu.contract_precision<fp32>} : vector<4x2xf32>, vector<2x256xf32>, vector<4x256xf32> -> vector<4x256xf32>
    %181 = arith.addf %169, %180 : vector<4x256xf32>
    %c31_i32 = arith.constant 31 : i32
    %182 = tpu.dynamic_rotate %17 by %c31_i32 dim 1 : vector<2x256xf32>, i32 -> vector<2x256xf32>
    %c32_i32_69 = arith.constant 32 : i32
    %183 = vector.broadcast %c32_i32_69 : i32 to vector<1x256xi32>
    %184 = arith.cmpi sge, %2, %183 : vector<1x256xi32>
    %c15_i32_70 = arith.constant 15 : i32
    %185 = vector.broadcast %c15_i32_70 : i32 to vector<1x256xi32>
    %186 = arith.cmpi slt, %4, %185 : vector<1x256xi32>
    %187 = arith.andi %184, %186 : vector<1x256xi1>
    %cst_71 = arith.constant 1.000000e+00 : f32
    %cst_72 = arith.constant 0.000000e+00 : f32
    %188 = vector.broadcast %cst_71 : f32 to vector<1x256xf32>
    %189 = vector.broadcast %cst_72 : f32 to vector<1x256xf32>
    %190 = arith.select %187, %188, %189 : vector<1x256xi1>, vector<1x256xf32>
    %191 = vector.broadcast %190 : vector<1x256xf32> to vector<2x256xf32>
    %192 = arith.mulf %182, %191 : vector<2x256xf32>
    %193 = vector.extract_strided_slice %138 {offsets = [3, 0, 0], sizes = [1, 4, 2], strides = [1, 1, 1]} : vector<25x4x2xf32> to vector<1x4x2xf32>
    %194 = vector.shape_cast %193 : vector<1x4x2xf32> to vector<4x2xf32>
    %cst_73 = arith.constant dense<0.000000e+00> : vector<4x256xf32>
    %195 = tpu.matmul %194, %192, %cst_73 {dimension_numbers = #tpu.dot_dimension_numbers<[1], [0], [0], [1], [0, 0, 1, 1], [], []>, precision = #tpu.contract_precision<fp32>} : vector<4x2xf32>, vector<2x256xf32>, vector<4x256xf32> -> vector<4x256xf32>
    %196 = arith.addf %181, %195 : vector<4x256xf32>
    %c30_i32 = arith.constant 30 : i32
    %197 = tpu.dynamic_rotate %17 by %c30_i32 dim 1 : vector<2x256xf32>, i32 -> vector<2x256xf32>
    %c32_i32_74 = arith.constant 32 : i32
    %198 = vector.broadcast %c32_i32_74 : i32 to vector<1x256xi32>
    %199 = arith.cmpi sge, %2, %198 : vector<1x256xi32>
    %c14_i32 = arith.constant 14 : i32
    %200 = vector.broadcast %c14_i32 : i32 to vector<1x256xi32>
    %201 = arith.cmpi slt, %4, %200 : vector<1x256xi32>
    %202 = arith.andi %199, %201 : vector<1x256xi1>
    %cst_75 = arith.constant 1.000000e+00 : f32
    %cst_76 = arith.constant 0.000000e+00 : f32
    %203 = vector.broadcast %cst_75 : f32 to vector<1x256xf32>
    %204 = vector.broadcast %cst_76 : f32 to vector<1x256xf32>
    %205 = arith.select %202, %203, %204 : vector<1x256xi1>, vector<1x256xf32>
    %206 = vector.broadcast %205 : vector<1x256xf32> to vector<2x256xf32>
    %207 = arith.mulf %197, %206 : vector<2x256xf32>
    %208 = vector.extract_strided_slice %138 {offsets = [4, 0, 0], sizes = [1, 4, 2], strides = [1, 1, 1]} : vector<25x4x2xf32> to vector<1x4x2xf32>
    %209 = vector.shape_cast %208 : vector<1x4x2xf32> to vector<4x2xf32>
    %cst_77 = arith.constant dense<0.000000e+00> : vector<4x256xf32>
    %210 = tpu.matmul %209, %207, %cst_77 {dimension_numbers = #tpu.dot_dimension_numbers<[1], [0], [0], [1], [0, 0, 1, 1], [], []>, precision = #tpu.contract_precision<fp32>} : vector<4x2xf32>, vector<2x256xf32>, vector<4x256xf32> -> vector<4x256xf32>
    %211 = arith.addf %196, %210 : vector<4x256xf32>
    %c18_i32 = arith.constant 18 : i32
    %212 = tpu.dynamic_rotate %17 by %c18_i32 dim 1 : vector<2x256xf32>, i32 -> vector<2x256xf32>
    %c16_i32_78 = arith.constant 16 : i32
    %213 = vector.broadcast %c16_i32_78 : i32 to vector<1x256xi32>
    %214 = arith.cmpi sge, %2, %213 : vector<1x256xi32>
    %c2_i32_79 = arith.constant 2 : i32
    %215 = vector.broadcast %c2_i32_79 : i32 to vector<1x256xi32>
    %216 = arith.cmpi sge, %4, %215 : vector<1x256xi32>
    %217 = arith.andi %214, %216 : vector<1x256xi1>
    %cst_80 = arith.constant 1.000000e+00 : f32
    %cst_81 = arith.constant 0.000000e+00 : f32
    %218 = vector.broadcast %cst_80 : f32 to vector<1x256xf32>
    %219 = vector.broadcast %cst_81 : f32 to vector<1x256xf32>
    %220 = arith.select %217, %218, %219 : vector<1x256xi1>, vector<1x256xf32>
    %221 = vector.broadcast %220 : vector<1x256xf32> to vector<2x256xf32>
    %222 = arith.mulf %212, %221 : vector<2x256xf32>
    %223 = vector.extract_strided_slice %138 {offsets = [5, 0, 0], sizes = [1, 4, 2], strides = [1, 1, 1]} : vector<25x4x2xf32> to vector<1x4x2xf32>
    %224 = vector.shape_cast %223 : vector<1x4x2xf32> to vector<4x2xf32>
    %cst_82 = arith.constant dense<0.000000e+00> : vector<4x256xf32>
    %225 = tpu.matmul %224, %222, %cst_82 {dimension_numbers = #tpu.dot_dimension_numbers<[1], [0], [0], [1], [0, 0, 1, 1], [], []>, precision = #tpu.contract_precision<fp32>} : vector<4x2xf32>, vector<2x256xf32>, vector<4x256xf32> -> vector<4x256xf32>
    %226 = arith.addf %211, %225 : vector<4x256xf32>
    %c17_i32_83 = arith.constant 17 : i32
    %227 = tpu.dynamic_rotate %17 by %c17_i32_83 dim 1 : vector<2x256xf32>, i32 -> vector<2x256xf32>
    %228 = vector.broadcast %29 : vector<1x256xf32> to vector<2x256xf32>
    %229 = arith.mulf %227, %228 : vector<2x256xf32>
    %230 = vector.extract_strided_slice %138 {offsets = [6, 0, 0], sizes = [1, 4, 2], strides = [1, 1, 1]} : vector<25x4x2xf32> to vector<1x4x2xf32>
    %231 = vector.shape_cast %230 : vector<1x4x2xf32> to vector<4x2xf32>
    %cst_84 = arith.constant dense<0.000000e+00> : vector<4x256xf32>
    %232 = tpu.matmul %231, %229, %cst_84 {dimension_numbers = #tpu.dot_dimension_numbers<[1], [0], [0], [1], [0, 0, 1, 1], [], []>, precision = #tpu.contract_precision<fp32>} : vector<4x2xf32>, vector<2x256xf32>, vector<4x256xf32> -> vector<4x256xf32>
    %233 = arith.addf %226, %232 : vector<4x256xf32>
    %c16_i32_85 = arith.constant 16 : i32
    %234 = tpu.dynamic_rotate %17 by %c16_i32_85 dim 1 : vector<2x256xf32>, i32 -> vector<2x256xf32>
    %235 = vector.broadcast %41 : vector<1x256xf32> to vector<2x256xf32>
    %236 = arith.mulf %234, %235 : vector<2x256xf32>
    %237 = vector.extract_strided_slice %138 {offsets = [7, 0, 0], sizes = [1, 4, 2], strides = [1, 1, 1]} : vector<25x4x2xf32> to vector<1x4x2xf32>
    %238 = vector.shape_cast %237 : vector<1x4x2xf32> to vector<4x2xf32>
    %cst_86 = arith.constant dense<0.000000e+00> : vector<4x256xf32>
    %239 = tpu.matmul %238, %236, %cst_86 {dimension_numbers = #tpu.dot_dimension_numbers<[1], [0], [0], [1], [0, 0, 1, 1], [], []>, precision = #tpu.contract_precision<fp32>} : vector<4x2xf32>, vector<2x256xf32>, vector<4x256xf32> -> vector<4x256xf32>
    %240 = arith.addf %233, %239 : vector<4x256xf32>
    %c15_i32_87 = arith.constant 15 : i32
    %241 = tpu.dynamic_rotate %17 by %c15_i32_87 dim 1 : vector<2x256xf32>, i32 -> vector<2x256xf32>
    %242 = vector.broadcast %56 : vector<1x256xf32> to vector<2x256xf32>
    %243 = arith.mulf %241, %242 : vector<2x256xf32>
    %244 = vector.extract_strided_slice %138 {offsets = [8, 0, 0], sizes = [1, 4, 2], strides = [1, 1, 1]} : vector<25x4x2xf32> to vector<1x4x2xf32>
    %245 = vector.shape_cast %244 : vector<1x4x2xf32> to vector<4x2xf32>
    %cst_88 = arith.constant dense<0.000000e+00> : vector<4x256xf32>
    %246 = tpu.matmul %245, %243, %cst_88 {dimension_numbers = #tpu.dot_dimension_numbers<[1], [0], [0], [1], [0, 0, 1, 1], [], []>, precision = #tpu.contract_precision<fp32>} : vector<4x2xf32>, vector<2x256xf32>, vector<4x256xf32> -> vector<4x256xf32>
    %247 = arith.addf %240, %246 : vector<4x256xf32>
    %c14_i32_89 = arith.constant 14 : i32
    %248 = tpu.dynamic_rotate %17 by %c14_i32_89 dim 1 : vector<2x256xf32>, i32 -> vector<2x256xf32>
    %c16_i32_90 = arith.constant 16 : i32
    %249 = vector.broadcast %c16_i32_90 : i32 to vector<1x256xi32>
    %250 = arith.cmpi sge, %2, %249 : vector<1x256xi32>
    %c14_i32_91 = arith.constant 14 : i32
    %251 = vector.broadcast %c14_i32_91 : i32 to vector<1x256xi32>
    %252 = arith.cmpi slt, %4, %251 : vector<1x256xi32>
    %253 = arith.andi %250, %252 : vector<1x256xi1>
    %cst_92 = arith.constant 1.000000e+00 : f32
    %cst_93 = arith.constant 0.000000e+00 : f32
    %254 = vector.broadcast %cst_92 : f32 to vector<1x256xf32>
    %255 = vector.broadcast %cst_93 : f32 to vector<1x256xf32>
    %256 = arith.select %253, %254, %255 : vector<1x256xi1>, vector<1x256xf32>
    %257 = vector.broadcast %256 : vector<1x256xf32> to vector<2x256xf32>
    %258 = arith.mulf %248, %257 : vector<2x256xf32>
    %259 = vector.extract_strided_slice %138 {offsets = [9, 0, 0], sizes = [1, 4, 2], strides = [1, 1, 1]} : vector<25x4x2xf32> to vector<1x4x2xf32>
    %260 = vector.shape_cast %259 : vector<1x4x2xf32> to vector<4x2xf32>
    %cst_94 = arith.constant dense<0.000000e+00> : vector<4x256xf32>
    %261 = tpu.matmul %260, %258, %cst_94 {dimension_numbers = #tpu.dot_dimension_numbers<[1], [0], [0], [1], [0, 0, 1, 1], [], []>, precision = #tpu.contract_precision<fp32>} : vector<4x2xf32>, vector<2x256xf32>, vector<4x256xf32> -> vector<4x256xf32>
    %262 = arith.addf %247, %261 : vector<4x256xf32>
    %c2_i32_95 = arith.constant 2 : i32
    %263 = tpu.dynamic_rotate %17 by %c2_i32_95 dim 1 : vector<2x256xf32>, i32 -> vector<2x256xf32>
    %c2_i32_96 = arith.constant 2 : i32
    %264 = vector.broadcast %c2_i32_96 : i32 to vector<1x256xi32>
    %265 = arith.cmpi sge, %4, %264 : vector<1x256xi32>
    %cst_97 = arith.constant 1.000000e+00 : f32
    %cst_98 = arith.constant 0.000000e+00 : f32
    %266 = vector.broadcast %cst_97 : f32 to vector<1x256xf32>
    %267 = vector.broadcast %cst_98 : f32 to vector<1x256xf32>
    %268 = arith.select %265, %266, %267 : vector<1x256xi1>, vector<1x256xf32>
    %269 = vector.broadcast %268 : vector<1x256xf32> to vector<2x256xf32>
    %270 = arith.mulf %263, %269 : vector<2x256xf32>
    %271 = vector.extract_strided_slice %138 {offsets = [10, 0, 0], sizes = [1, 4, 2], strides = [1, 1, 1]} : vector<25x4x2xf32> to vector<1x4x2xf32>
    %272 = vector.shape_cast %271 : vector<1x4x2xf32> to vector<4x2xf32>
    %cst_99 = arith.constant dense<0.000000e+00> : vector<4x256xf32>
    %273 = tpu.matmul %272, %270, %cst_99 {dimension_numbers = #tpu.dot_dimension_numbers<[1], [0], [0], [1], [0, 0, 1, 1], [], []>, precision = #tpu.contract_precision<fp32>} : vector<4x2xf32>, vector<2x256xf32>, vector<4x256xf32> -> vector<4x256xf32>
    %274 = arith.addf %262, %273 : vector<4x256xf32>
    %c1_i32_100 = arith.constant 1 : i32
    %275 = tpu.dynamic_rotate %17 by %c1_i32_100 dim 1 : vector<2x256xf32>, i32 -> vector<2x256xf32>
    %276 = vector.broadcast %68 : vector<1x256xf32> to vector<2x256xf32>
    %277 = arith.mulf %275, %276 : vector<2x256xf32>
    %278 = vector.extract_strided_slice %138 {offsets = [11, 0, 0], sizes = [1, 4, 2], strides = [1, 1, 1]} : vector<25x4x2xf32> to vector<1x4x2xf32>
    %279 = vector.shape_cast %278 : vector<1x4x2xf32> to vector<4x2xf32>
    %cst_101 = arith.constant dense<0.000000e+00> : vector<4x256xf32>
    %280 = tpu.matmul %279, %277, %cst_101 {dimension_numbers = #tpu.dot_dimension_numbers<[1], [0], [0], [1], [0, 0, 1, 1], [], []>, precision = #tpu.contract_precision<fp32>} : vector<4x2xf32>, vector<2x256xf32>, vector<4x256xf32> -> vector<4x256xf32>
    %281 = arith.addf %274, %280 : vector<4x256xf32>
    %282 = vector.extract_strided_slice %138 {offsets = [12, 0, 0], sizes = [1, 4, 2], strides = [1, 1, 1]} : vector<25x4x2xf32> to vector<1x4x2xf32>
    %283 = vector.shape_cast %282 : vector<1x4x2xf32> to vector<4x2xf32>
    %cst_102 = arith.constant dense<0.000000e+00> : vector<4x256xf32>
    %284 = tpu.matmul %283, %17, %cst_102 {dimension_numbers = #tpu.dot_dimension_numbers<[1], [0], [0], [1], [0, 0, 1, 1], [], []>, precision = #tpu.contract_precision<fp32>} : vector<4x2xf32>, vector<2x256xf32>, vector<4x256xf32> -> vector<4x256xf32>
    %285 = arith.addf %281, %284 : vector<4x256xf32>
    %c255_i32_103 = arith.constant 255 : i32
    %286 = tpu.dynamic_rotate %17 by %c255_i32_103 dim 1 : vector<2x256xf32>, i32 -> vector<2x256xf32>
    %287 = vector.broadcast %84 : vector<1x256xf32> to vector<2x256xf32>
    %288 = arith.mulf %286, %287 : vector<2x256xf32>
    %289 = vector.extract_strided_slice %138 {offsets = [13, 0, 0], sizes = [1, 4, 2], strides = [1, 1, 1]} : vector<25x4x2xf32> to vector<1x4x2xf32>
    %290 = vector.shape_cast %289 : vector<1x4x2xf32> to vector<4x2xf32>
    %cst_104 = arith.constant dense<0.000000e+00> : vector<4x256xf32>
    %291 = tpu.matmul %290, %288, %cst_104 {dimension_numbers = #tpu.dot_dimension_numbers<[1], [0], [0], [1], [0, 0, 1, 1], [], []>, precision = #tpu.contract_precision<fp32>} : vector<4x2xf32>, vector<2x256xf32>, vector<4x256xf32> -> vector<4x256xf32>
    %292 = arith.addf %285, %291 : vector<4x256xf32>
    %c254_i32 = arith.constant 254 : i32
    %293 = tpu.dynamic_rotate %17 by %c254_i32 dim 1 : vector<2x256xf32>, i32 -> vector<2x256xf32>
    %c14_i32_105 = arith.constant 14 : i32
    %294 = vector.broadcast %c14_i32_105 : i32 to vector<1x256xi32>
    %295 = arith.cmpi slt, %4, %294 : vector<1x256xi32>
    %cst_106 = arith.constant 1.000000e+00 : f32
    %cst_107 = arith.constant 0.000000e+00 : f32
    %296 = vector.broadcast %cst_106 : f32 to vector<1x256xf32>
    %297 = vector.broadcast %cst_107 : f32 to vector<1x256xf32>
    %298 = arith.select %295, %296, %297 : vector<1x256xi1>, vector<1x256xf32>
    %299 = vector.broadcast %298 : vector<1x256xf32> to vector<2x256xf32>
    %300 = arith.mulf %293, %299 : vector<2x256xf32>
    %301 = vector.extract_strided_slice %138 {offsets = [14, 0, 0], sizes = [1, 4, 2], strides = [1, 1, 1]} : vector<25x4x2xf32> to vector<1x4x2xf32>
    %302 = vector.shape_cast %301 : vector<1x4x2xf32> to vector<4x2xf32>
    %cst_108 = arith.constant dense<0.000000e+00> : vector<4x256xf32>
    %303 = tpu.matmul %302, %300, %cst_108 {dimension_numbers = #tpu.dot_dimension_numbers<[1], [0], [0], [1], [0, 0, 1, 1], [], []>, precision = #tpu.contract_precision<fp32>} : vector<4x2xf32>, vector<2x256xf32>, vector<4x256xf32> -> vector<4x256xf32>
    %304 = arith.addf %292, %303 : vector<4x256xf32>
    %c242_i32 = arith.constant 242 : i32
    %305 = tpu.dynamic_rotate %17 by %c242_i32 dim 1 : vector<2x256xf32>, i32 -> vector<2x256xf32>
    %c240_i32_109 = arith.constant 240 : i32
    %306 = vector.broadcast %c240_i32_109 : i32 to vector<1x256xi32>
    %307 = arith.cmpi slt, %2, %306 : vector<1x256xi32>
    %c2_i32_110 = arith.constant 2 : i32
    %308 = vector.broadcast %c2_i32_110 : i32 to vector<1x256xi32>
    %309 = arith.cmpi sge, %4, %308 : vector<1x256xi32>
    %310 = arith.andi %307, %309 : vector<1x256xi1>
    %cst_111 = arith.constant 1.000000e+00 : f32
    %cst_112 = arith.constant 0.000000e+00 : f32
    %311 = vector.broadcast %cst_111 : f32 to vector<1x256xf32>
    %312 = vector.broadcast %cst_112 : f32 to vector<1x256xf32>
    %313 = arith.select %310, %311, %312 : vector<1x256xi1>, vector<1x256xf32>
    %314 = vector.broadcast %313 : vector<1x256xf32> to vector<2x256xf32>
    %315 = arith.mulf %305, %314 : vector<2x256xf32>
    %316 = vector.extract_strided_slice %138 {offsets = [15, 0, 0], sizes = [1, 4, 2], strides = [1, 1, 1]} : vector<25x4x2xf32> to vector<1x4x2xf32>
    %317 = vector.shape_cast %316 : vector<1x4x2xf32> to vector<4x2xf32>
    %cst_113 = arith.constant dense<0.000000e+00> : vector<4x256xf32>
    %318 = tpu.matmul %317, %315, %cst_113 {dimension_numbers = #tpu.dot_dimension_numbers<[1], [0], [0], [1], [0, 0, 1, 1], [], []>, precision = #tpu.contract_precision<fp32>} : vector<4x2xf32>, vector<2x256xf32>, vector<4x256xf32> -> vector<4x256xf32>
    %319 = arith.addf %304, %318 : vector<4x256xf32>
    %c241_i32_114 = arith.constant 241 : i32
    %320 = tpu.dynamic_rotate %17 by %c241_i32_114 dim 1 : vector<2x256xf32>, i32 -> vector<2x256xf32>
    %321 = vector.broadcast %99 : vector<1x256xf32> to vector<2x256xf32>
    %322 = arith.mulf %320, %321 : vector<2x256xf32>
    %323 = vector.extract_strided_slice %138 {offsets = [16, 0, 0], sizes = [1, 4, 2], strides = [1, 1, 1]} : vector<25x4x2xf32> to vector<1x4x2xf32>
    %324 = vector.shape_cast %323 : vector<1x4x2xf32> to vector<4x2xf32>
    %cst_115 = arith.constant dense<0.000000e+00> : vector<4x256xf32>
    %325 = tpu.matmul %324, %322, %cst_115 {dimension_numbers = #tpu.dot_dimension_numbers<[1], [0], [0], [1], [0, 0, 1, 1], [], []>, precision = #tpu.contract_precision<fp32>} : vector<4x2xf32>, vector<2x256xf32>, vector<4x256xf32> -> vector<4x256xf32>
    %326 = arith.addf %319, %325 : vector<4x256xf32>
    %c240_i32_116 = arith.constant 240 : i32
    %327 = tpu.dynamic_rotate %17 by %c240_i32_116 dim 1 : vector<2x256xf32>, i32 -> vector<2x256xf32>
    %328 = vector.broadcast %111 : vector<1x256xf32> to vector<2x256xf32>
    %329 = arith.mulf %327, %328 : vector<2x256xf32>
    %330 = vector.extract_strided_slice %138 {offsets = [17, 0, 0], sizes = [1, 4, 2], strides = [1, 1, 1]} : vector<25x4x2xf32> to vector<1x4x2xf32>
    %331 = vector.shape_cast %330 : vector<1x4x2xf32> to vector<4x2xf32>
    %cst_117 = arith.constant dense<0.000000e+00> : vector<4x256xf32>
    %332 = tpu.matmul %331, %329, %cst_117 {dimension_numbers = #tpu.dot_dimension_numbers<[1], [0], [0], [1], [0, 0, 1, 1], [], []>, precision = #tpu.contract_precision<fp32>} : vector<4x2xf32>, vector<2x256xf32>, vector<4x256xf32> -> vector<4x256xf32>
    %333 = arith.addf %326, %332 : vector<4x256xf32>
    %c239_i32_118 = arith.constant 239 : i32
    %334 = tpu.dynamic_rotate %17 by %c239_i32_118 dim 1 : vector<2x256xf32>, i32 -> vector<2x256xf32>
    %335 = vector.broadcast %126 : vector<1x256xf32> to vector<2x256xf32>
    %336 = arith.mulf %334, %335 : vector<2x256xf32>
    %337 = vector.extract_strided_slice %138 {offsets = [18, 0, 0], sizes = [1, 4, 2], strides = [1, 1, 1]} : vector<25x4x2xf32> to vector<1x4x2xf32>
    %338 = vector.shape_cast %337 : vector<1x4x2xf32> to vector<4x2xf32>
    %cst_119 = arith.constant dense<0.000000e+00> : vector<4x256xf32>
    %339 = tpu.matmul %338, %336, %cst_119 {dimension_numbers = #tpu.dot_dimension_numbers<[1], [0], [0], [1], [0, 0, 1, 1], [], []>, precision = #tpu.contract_precision<fp32>} : vector<4x2xf32>, vector<2x256xf32>, vector<4x256xf32> -> vector<4x256xf32>
    %340 = arith.addf %333, %339 : vector<4x256xf32>
    %c238_i32 = arith.constant 238 : i32
    %341 = tpu.dynamic_rotate %17 by %c238_i32 dim 1 : vector<2x256xf32>, i32 -> vector<2x256xf32>
    %c240_i32_120 = arith.constant 240 : i32
    %342 = vector.broadcast %c240_i32_120 : i32 to vector<1x256xi32>
    %343 = arith.cmpi slt, %2, %342 : vector<1x256xi32>
    %c14_i32_121 = arith.constant 14 : i32
    %344 = vector.broadcast %c14_i32_121 : i32 to vector<1x256xi32>
    %345 = arith.cmpi slt, %4, %344 : vector<1x256xi32>
    %346 = arith.andi %343, %345 : vector<1x256xi1>
    %cst_122 = arith.constant 1.000000e+00 : f32
    %cst_123 = arith.constant 0.000000e+00 : f32
    %347 = vector.broadcast %cst_122 : f32 to vector<1x256xf32>
    %348 = vector.broadcast %cst_123 : f32 to vector<1x256xf32>
    %349 = arith.select %346, %347, %348 : vector<1x256xi1>, vector<1x256xf32>
    %350 = vector.broadcast %349 : vector<1x256xf32> to vector<2x256xf32>
    %351 = arith.mulf %341, %350 : vector<2x256xf32>
    %352 = vector.extract_strided_slice %138 {offsets = [19, 0, 0], sizes = [1, 4, 2], strides = [1, 1, 1]} : vector<25x4x2xf32> to vector<1x4x2xf32>
    %353 = vector.shape_cast %352 : vector<1x4x2xf32> to vector<4x2xf32>
    %cst_124 = arith.constant dense<0.000000e+00> : vector<4x256xf32>
    %354 = tpu.matmul %353, %351, %cst_124 {dimension_numbers = #tpu.dot_dimension_numbers<[1], [0], [0], [1], [0, 0, 1, 1], [], []>, precision = #tpu.contract_precision<fp32>} : vector<4x2xf32>, vector<2x256xf32>, vector<4x256xf32> -> vector<4x256xf32>
    %355 = arith.addf %340, %354 : vector<4x256xf32>
    %c226_i32 = arith.constant 226 : i32
    %356 = tpu.dynamic_rotate %17 by %c226_i32 dim 1 : vector<2x256xf32>, i32 -> vector<2x256xf32>
    %c224_i32 = arith.constant 224 : i32
    %357 = vector.broadcast %c224_i32 : i32 to vector<1x256xi32>
    %358 = arith.cmpi slt, %2, %357 : vector<1x256xi32>
    %c2_i32_125 = arith.constant 2 : i32
    %359 = vector.broadcast %c2_i32_125 : i32 to vector<1x256xi32>
    %360 = arith.cmpi sge, %4, %359 : vector<1x256xi32>
    %361 = arith.andi %358, %360 : vector<1x256xi1>
    %cst_126 = arith.constant 1.000000e+00 : f32
    %cst_127 = arith.constant 0.000000e+00 : f32
    %362 = vector.broadcast %cst_126 : f32 to vector<1x256xf32>
    %363 = vector.broadcast %cst_127 : f32 to vector<1x256xf32>
    %364 = arith.select %361, %362, %363 : vector<1x256xi1>, vector<1x256xf32>
    %365 = vector.broadcast %364 : vector<1x256xf32> to vector<2x256xf32>
    %366 = arith.mulf %356, %365 : vector<2x256xf32>
    %367 = vector.extract_strided_slice %138 {offsets = [20, 0, 0], sizes = [1, 4, 2], strides = [1, 1, 1]} : vector<25x4x2xf32> to vector<1x4x2xf32>
    %368 = vector.shape_cast %367 : vector<1x4x2xf32> to vector<4x2xf32>
    %cst_128 = arith.constant dense<0.000000e+00> : vector<4x256xf32>
    %369 = tpu.matmul %368, %366, %cst_128 {dimension_numbers = #tpu.dot_dimension_numbers<[1], [0], [0], [1], [0, 0, 1, 1], [], []>, precision = #tpu.contract_precision<fp32>} : vector<4x2xf32>, vector<2x256xf32>, vector<4x256xf32> -> vector<4x256xf32>
    %370 = arith.addf %355, %369 : vector<4x256xf32>
    %c225_i32 = arith.constant 225 : i32
    %371 = tpu.dynamic_rotate %17 by %c225_i32 dim 1 : vector<2x256xf32>, i32 -> vector<2x256xf32>
    %c224_i32_129 = arith.constant 224 : i32
    %372 = vector.broadcast %c224_i32_129 : i32 to vector<1x256xi32>
    %373 = arith.cmpi slt, %2, %372 : vector<1x256xi32>
    %c1_i32_130 = arith.constant 1 : i32
    %374 = vector.broadcast %c1_i32_130 : i32 to vector<1x256xi32>
    %375 = arith.cmpi sge, %4, %374 : vector<1x256xi32>
    %376 = arith.andi %373, %375 : vector<1x256xi1>
    %cst_131 = arith.constant 1.000000e+00 : f32
    %cst_132 = arith.constant 0.000000e+00 : f32
    %377 = vector.broadcast %cst_131 : f32 to vector<1x256xf32>
    %378 = vector.broadcast %cst_132 : f32 to vector<1x256xf32>
    %379 = arith.select %376, %377, %378 : vector<1x256xi1>, vector<1x256xf32>
    %380 = vector.broadcast %379 : vector<1x256xf32> to vector<2x256xf32>
    %381 = arith.mulf %371, %380 : vector<2x256xf32>
    %382 = vector.extract_strided_slice %138 {offsets = [21, 0, 0], sizes = [1, 4, 2], strides = [1, 1, 1]} : vector<25x4x2xf32> to vector<1x4x2xf32>
    %383 = vector.shape_cast %382 : vector<1x4x2xf32> to vector<4x2xf32>
    %cst_133 = arith.constant dense<0.000000e+00> : vector<4x256xf32>
    %384 = tpu.matmul %383, %381, %cst_133 {dimension_numbers = #tpu.dot_dimension_numbers<[1], [0], [0], [1], [0, 0, 1, 1], [], []>, precision = #tpu.contract_precision<fp32>} : vector<4x2xf32>, vector<2x256xf32>, vector<4x256xf32> -> vector<4x256xf32>
    %385 = arith.addf %370, %384 : vector<4x256xf32>
    %c224_i32_134 = arith.constant 224 : i32
    %386 = tpu.dynamic_rotate %17 by %c224_i32_134 dim 1 : vector<2x256xf32>, i32 -> vector<2x256xf32>
    %c224_i32_135 = arith.constant 224 : i32
    %387 = vector.broadcast %c224_i32_135 : i32 to vector<1x256xi32>
    %388 = arith.cmpi slt, %2, %387 : vector<1x256xi32>
    %cst_136 = arith.constant 1.000000e+00 : f32
    %cst_137 = arith.constant 0.000000e+00 : f32
    %389 = vector.broadcast %cst_136 : f32 to vector<1x256xf32>
    %390 = vector.broadcast %cst_137 : f32 to vector<1x256xf32>
    %391 = arith.select %388, %389, %390 : vector<1x256xi1>, vector<1x256xf32>
    %392 = vector.broadcast %391 : vector<1x256xf32> to vector<2x256xf32>
    %393 = arith.mulf %386, %392 : vector<2x256xf32>
    %394 = vector.extract_strided_slice %138 {offsets = [22, 0, 0], sizes = [1, 4, 2], strides = [1, 1, 1]} : vector<25x4x2xf32> to vector<1x4x2xf32>
    %395 = vector.shape_cast %394 : vector<1x4x2xf32> to vector<4x2xf32>
    %cst_138 = arith.constant dense<0.000000e+00> : vector<4x256xf32>
    %396 = tpu.matmul %395, %393, %cst_138 {dimension_numbers = #tpu.dot_dimension_numbers<[1], [0], [0], [1], [0, 0, 1, 1], [], []>, precision = #tpu.contract_precision<fp32>} : vector<4x2xf32>, vector<2x256xf32>, vector<4x256xf32> -> vector<4x256xf32>
    %397 = arith.addf %385, %396 : vector<4x256xf32>
    %c223_i32 = arith.constant 223 : i32
    %398 = tpu.dynamic_rotate %17 by %c223_i32 dim 1 : vector<2x256xf32>, i32 -> vector<2x256xf32>
    %c224_i32_139 = arith.constant 224 : i32
    %399 = vector.broadcast %c224_i32_139 : i32 to vector<1x256xi32>
    %400 = arith.cmpi slt, %2, %399 : vector<1x256xi32>
    %c15_i32_140 = arith.constant 15 : i32
    %401 = vector.broadcast %c15_i32_140 : i32 to vector<1x256xi32>
    %402 = arith.cmpi slt, %4, %401 : vector<1x256xi32>
    %403 = arith.andi %400, %402 : vector<1x256xi1>
    %cst_141 = arith.constant 1.000000e+00 : f32
    %cst_142 = arith.constant 0.000000e+00 : f32
    %404 = vector.broadcast %cst_141 : f32 to vector<1x256xf32>
    %405 = vector.broadcast %cst_142 : f32 to vector<1x256xf32>
    %406 = arith.select %403, %404, %405 : vector<1x256xi1>, vector<1x256xf32>
    %407 = vector.broadcast %406 : vector<1x256xf32> to vector<2x256xf32>
    %408 = arith.mulf %398, %407 : vector<2x256xf32>
    %409 = vector.extract_strided_slice %138 {offsets = [23, 0, 0], sizes = [1, 4, 2], strides = [1, 1, 1]} : vector<25x4x2xf32> to vector<1x4x2xf32>
    %410 = vector.shape_cast %409 : vector<1x4x2xf32> to vector<4x2xf32>
    %cst_143 = arith.constant dense<0.000000e+00> : vector<4x256xf32>
    %411 = tpu.matmul %410, %408, %cst_143 {dimension_numbers = #tpu.dot_dimension_numbers<[1], [0], [0], [1], [0, 0, 1, 1], [], []>, precision = #tpu.contract_precision<fp32>} : vector<4x2xf32>, vector<2x256xf32>, vector<4x256xf32> -> vector<4x256xf32>
    %412 = arith.addf %397, %411 : vector<4x256xf32>
    %c222_i32 = arith.constant 222 : i32
    %413 = tpu.dynamic_rotate %17 by %c222_i32 dim 1 : vector<2x256xf32>, i32 -> vector<2x256xf32>
    %c224_i32_144 = arith.constant 224 : i32
    %414 = vector.broadcast %c224_i32_144 : i32 to vector<1x256xi32>
    %415 = arith.cmpi slt, %2, %414 : vector<1x256xi32>
    %c14_i32_145 = arith.constant 14 : i32
    %416 = vector.broadcast %c14_i32_145 : i32 to vector<1x256xi32>
    %417 = arith.cmpi slt, %4, %416 : vector<1x256xi32>
    %418 = arith.andi %415, %417 : vector<1x256xi1>
    %cst_146 = arith.constant 1.000000e+00 : f32
    %cst_147 = arith.constant 0.000000e+00 : f32
    %419 = vector.broadcast %cst_146 : f32 to vector<1x256xf32>
    %420 = vector.broadcast %cst_147 : f32 to vector<1x256xf32>
    %421 = arith.select %418, %419, %420 : vector<1x256xi1>, vector<1x256xf32>
    %422 = vector.broadcast %421 : vector<1x256xf32> to vector<2x256xf32>
    %423 = arith.mulf %413, %422 : vector<2x256xf32>
    %424 = vector.extract_strided_slice %138 {offsets = [24, 0, 0], sizes = [1, 4, 2], strides = [1, 1, 1]} : vector<25x4x2xf32> to vector<1x4x2xf32>
    %425 = vector.shape_cast %424 : vector<1x4x2xf32> to vector<4x2xf32>
    %cst_148 = arith.constant dense<0.000000e+00> : vector<4x256xf32>
    %426 = tpu.matmul %425, %423, %cst_148 {dimension_numbers = #tpu.dot_dimension_numbers<[1], [0], [0], [1], [0, 0, 1, 1], [], []>, precision = #tpu.contract_precision<fp32>} : vector<4x2xf32>, vector<2x256xf32>, vector<4x256xf32> -> vector<4x256xf32>
    %427 = arith.addf %412, %426 : vector<4x256xf32>
    %428 = vector.broadcast %137 : vector<4x1xf32> to vector<4x256xf32>
    %429 = arith.addf %427, %428 : vector<4x256xf32>
    %cst_149 = arith.constant 0.000000e+00 : f32
    %430 = vector.broadcast %cst_149 : f32 to vector<4x256xf32>
    %431 = arith.maximumf %429, %430 : vector<4x256xf32>
    %c17_i32_150 = arith.constant 17 : i32
    %432 = tpu.dynamic_rotate %1 by %c17_i32_150 dim 1 : vector<4x256xf32>, i32 -> vector<4x256xf32>
    %433 = vector.broadcast %29 : vector<1x256xf32> to vector<4x256xf32>
    %434 = arith.mulf %432, %433 : vector<4x256xf32>
    %cst_151 = arith.constant 1.000000e+00 : f32
    %435 = vector.broadcast %cst_151 : f32 to vector<1x256xf32>
    %436 = arith.subf %435, %29 : vector<1x256xf32>
    %cst_152 = arith.constant -3.40282347E+38 : f32
    %437 = vector.broadcast %cst_152 : f32 to vector<1x256xf32>
    %438 = arith.mulf %436, %437 : vector<1x256xf32>
    %439 = vector.broadcast %438 : vector<1x256xf32> to vector<4x256xf32>
    %440 = arith.addf %434, %439 : vector<4x256xf32>
    %441 = arith.maximumf %1, %440 : vector<4x256xf32>
    %c16_i32_153 = arith.constant 16 : i32
    %442 = tpu.dynamic_rotate %1 by %c16_i32_153 dim 1 : vector<4x256xf32>, i32 -> vector<4x256xf32>
    %443 = vector.broadcast %41 : vector<1x256xf32> to vector<4x256xf32>
    %444 = arith.mulf %442, %443 : vector<4x256xf32>
    %cst_154 = arith.constant 1.000000e+00 : f32
    %445 = vector.broadcast %cst_154 : f32 to vector<1x256xf32>
    %446 = arith.subf %445, %41 : vector<1x256xf32>
    %cst_155 = arith.constant -3.40282347E+38 : f32
    %447 = vector.broadcast %cst_155 : f32 to vector<1x256xf32>
    %448 = arith.mulf %446, %447 : vector<1x256xf32>
    %449 = vector.broadcast %448 : vector<1x256xf32> to vector<4x256xf32>
    %450 = arith.addf %444, %449 : vector<4x256xf32>
    %451 = arith.maximumf %441, %450 : vector<4x256xf32>
    %c15_i32_156 = arith.constant 15 : i32
    %452 = tpu.dynamic_rotate %1 by %c15_i32_156 dim 1 : vector<4x256xf32>, i32 -> vector<4x256xf32>
    %453 = vector.broadcast %56 : vector<1x256xf32> to vector<4x256xf32>
    %454 = arith.mulf %452, %453 : vector<4x256xf32>
    %cst_157 = arith.constant 1.000000e+00 : f32
    %455 = vector.broadcast %cst_157 : f32 to vector<1x256xf32>
    %456 = arith.subf %455, %56 : vector<1x256xf32>
    %cst_158 = arith.constant -3.40282347E+38 : f32
    %457 = vector.broadcast %cst_158 : f32 to vector<1x256xf32>
    %458 = arith.mulf %456, %457 : vector<1x256xf32>
    %459 = vector.broadcast %458 : vector<1x256xf32> to vector<4x256xf32>
    %460 = arith.addf %454, %459 : vector<4x256xf32>
    %461 = arith.maximumf %451, %460 : vector<4x256xf32>
    %c1_i32_159 = arith.constant 1 : i32
    %462 = tpu.dynamic_rotate %1 by %c1_i32_159 dim 1 : vector<4x256xf32>, i32 -> vector<4x256xf32>
    %463 = vector.broadcast %68 : vector<1x256xf32> to vector<4x256xf32>
    %464 = arith.mulf %462, %463 : vector<4x256xf32>
    %cst_160 = arith.constant 1.000000e+00 : f32
    %465 = vector.broadcast %cst_160 : f32 to vector<1x256xf32>
    %466 = arith.subf %465, %68 : vector<1x256xf32>
    %cst_161 = arith.constant -3.40282347E+38 : f32
    %467 = vector.broadcast %cst_161 : f32 to vector<1x256xf32>
    %468 = arith.mulf %466, %467 : vector<1x256xf32>
    %469 = vector.broadcast %468 : vector<1x256xf32> to vector<4x256xf32>
    %470 = arith.addf %464, %469 : vector<4x256xf32>
    %471 = arith.maximumf %461, %470 : vector<4x256xf32>
    %c255_i32_162 = arith.constant 255 : i32
    %472 = tpu.dynamic_rotate %1 by %c255_i32_162 dim 1 : vector<4x256xf32>, i32 -> vector<4x256xf32>
    %473 = vector.broadcast %84 : vector<1x256xf32> to vector<4x256xf32>
    %474 = arith.mulf %472, %473 : vector<4x256xf32>
    %cst_163 = arith.constant 1.000000e+00 : f32
    %475 = vector.broadcast %cst_163 : f32 to vector<1x256xf32>
    %476 = arith.subf %475, %84 : vector<1x256xf32>
    %cst_164 = arith.constant -3.40282347E+38 : f32
    %477 = vector.broadcast %cst_164 : f32 to vector<1x256xf32>
    %478 = arith.mulf %476, %477 : vector<1x256xf32>
    %479 = vector.broadcast %478 : vector<1x256xf32> to vector<4x256xf32>
    %480 = arith.addf %474, %479 : vector<4x256xf32>
    %481 = arith.maximumf %471, %480 : vector<4x256xf32>
    %c241_i32_165 = arith.constant 241 : i32
    %482 = tpu.dynamic_rotate %1 by %c241_i32_165 dim 1 : vector<4x256xf32>, i32 -> vector<4x256xf32>
    %483 = vector.broadcast %99 : vector<1x256xf32> to vector<4x256xf32>
    %484 = arith.mulf %482, %483 : vector<4x256xf32>
    %cst_166 = arith.constant 1.000000e+00 : f32
    %485 = vector.broadcast %cst_166 : f32 to vector<1x256xf32>
    %486 = arith.subf %485, %99 : vector<1x256xf32>
    %cst_167 = arith.constant -3.40282347E+38 : f32
    %487 = vector.broadcast %cst_167 : f32 to vector<1x256xf32>
    %488 = arith.mulf %486, %487 : vector<1x256xf32>
    %489 = vector.broadcast %488 : vector<1x256xf32> to vector<4x256xf32>
    %490 = arith.addf %484, %489 : vector<4x256xf32>
    %491 = arith.maximumf %481, %490 : vector<4x256xf32>
    %c240_i32_168 = arith.constant 240 : i32
    %492 = tpu.dynamic_rotate %1 by %c240_i32_168 dim 1 : vector<4x256xf32>, i32 -> vector<4x256xf32>
    %493 = vector.broadcast %111 : vector<1x256xf32> to vector<4x256xf32>
    %494 = arith.mulf %492, %493 : vector<4x256xf32>
    %cst_169 = arith.constant 1.000000e+00 : f32
    %495 = vector.broadcast %cst_169 : f32 to vector<1x256xf32>
    %496 = arith.subf %495, %111 : vector<1x256xf32>
    %cst_170 = arith.constant -3.40282347E+38 : f32
    %497 = vector.broadcast %cst_170 : f32 to vector<1x256xf32>
    %498 = arith.mulf %496, %497 : vector<1x256xf32>
    %499 = vector.broadcast %498 : vector<1x256xf32> to vector<4x256xf32>
    %500 = arith.addf %494, %499 : vector<4x256xf32>
    %501 = arith.maximumf %491, %500 : vector<4x256xf32>
    %c239_i32_171 = arith.constant 239 : i32
    %502 = tpu.dynamic_rotate %1 by %c239_i32_171 dim 1 : vector<4x256xf32>, i32 -> vector<4x256xf32>
    %503 = vector.broadcast %126 : vector<1x256xf32> to vector<4x256xf32>
    %504 = arith.mulf %502, %503 : vector<4x256xf32>
    %cst_172 = arith.constant 1.000000e+00 : f32
    %505 = vector.broadcast %cst_172 : f32 to vector<1x256xf32>
    %506 = arith.subf %505, %126 : vector<1x256xf32>
    %cst_173 = arith.constant -3.40282347E+38 : f32
    %507 = vector.broadcast %cst_173 : f32 to vector<1x256xf32>
    %508 = arith.mulf %506, %507 : vector<1x256xf32>
    %509 = vector.broadcast %508 : vector<1x256xf32> to vector<4x256xf32>
    %510 = arith.addf %504, %509 : vector<4x256xf32>
    %511 = arith.maximumf %501, %510 : vector<4x256xf32>
    %512 = vector.extract_strided_slice %5 {offsets = [10, 0], sizes = [4, 4], strides = [1, 1]} : vector<14x4xf32> to vector<4x4xf32>
    %cst_174 = arith.constant dense<0.000000e+00> : vector<4x256xf32>
    %513 = tpu.matmul %512, %511, %cst_174 {dimension_numbers = #tpu.dot_dimension_numbers<[1], [0], [0], [1], [0, 0, 1, 1], [], []>, precision = #tpu.contract_precision<fp32>} : vector<4x4xf32>, vector<4x256xf32>, vector<4x256xf32> -> vector<4x256xf32>
    %514 = vector.extract_strided_slice %6 {offsets = [10, 0], sizes = [4, 1], strides = [1, 1]} : vector<14x1xf32> to vector<4x1xf32>
    %515 = vector.broadcast %514 : vector<4x1xf32> to vector<4x256xf32>
    %516 = arith.addf %513, %515 : vector<4x256xf32>
    %cst_175 = arith.constant 0.000000e+00 : f32
    %517 = vector.broadcast %cst_175 : f32 to vector<4x256xf32>
    %518 = arith.maximumf %516, %517 : vector<4x256xf32>
    %519 = tpu.concatenate %15, %136, %431, %518 in 0 : vector<4x256xf32>, vector<8x256xf32>, vector<4x256xf32>, vector<4x256xf32> -> vector<20x256xf32>
    %c0_176 = arith.constant 0 : index
    %c0_177 = arith.constant 0 : index
    %c0_178 = arith.constant 0 : index
    %520 = vector.load %arg7[%c0_176, %c0_177, %c0_178] : memref<1x20x256xf32, #tpu.memory_space<vmem>>, vector<1x20x256xf32>
    %521 = vector.shape_cast %520 : vector<1x20x256xf32> to vector<20x256xf32>
    %522 = vector.shape_cast %519 : vector<20x256xf32> to vector<1x20x256xf32>
    tpu.vector_store %arg7[%c0_176, %c0_177, %c0_178], %522 {strides = array<i32>} : memref<1x20x256xf32, #tpu.memory_space<vmem>>, vector<1x20x256xf32>,
    return
  }
  func.func @transform_0(%arg0: i32) -> (i32, i32, i32) {
    %c0_i32 = arith.constant 0 : i32
    %c0_i32_0 = arith.constant 0 : i32
    %c0_i32_1 = arith.constant 0 : i32
    return %arg0, %c0_i32, %c0_i32_0 : i32, i32, i32
  }
  func.func @transform_1(%arg0: i32) -> (i32, i32) {
    %c0_i32 = arith.constant 0 : i32
    %c0_i32_0 = arith.constant 0 : i32
    %c0_i32_1 = arith.constant 0 : i32
    return %c0_i32, %c0_i32_0 : i32, i32
  }
  func.func @transform_2(%arg0: i32) -> (i32, i32) {
    %c0_i32 = arith.constant 0 : i32
    %c0_i32_0 = arith.constant 0 : i32
    %c0_i32_1 = arith.constant 0 : i32
    return %c0_i32, %c0_i32_0 : i32, i32
  }
  func.func @transform_3(%arg0: i32) -> (i32, i32, i32) {
    %c0_i32 = arith.constant 0 : i32
    %c0_i32_0 = arith.constant 0 : i32
    %c0_i32_1 = arith.constant 0 : i32
    %c0_i32_2 = arith.constant 0 : i32
    return %c0_i32, %c0_i32_0, %c0_i32_1 : i32, i32, i32
  }
  func.func @transform_4(%arg0: i32) -> (i32, i32, i32) {
    %c0_i32 = arith.constant 0 : i32
    %c0_i32_0 = arith.constant 0 : i32
    %c0_i32_1 = arith.constant 0 : i32
    %c0_i32_2 = arith.constant 0 : i32
    return %c0_i32, %c0_i32_0, %c0_i32_1 : i32, i32, i32
  }
  func.func @transform_5(%arg0: i32) -> (i32, i32) {
    %c0_i32 = arith.constant 0 : i32
    %c0_i32_0 = arith.constant 0 : i32
    %c0_i32_1 = arith.constant 0 : i32
    return %c0_i32, %c0_i32_0 : i32, i32
  }
  func.func @transform_6(%arg0: i32) -> (i32, i32, i32) {
    %c0_i32 = arith.constant 0 : i32
    %c0_i32_0 = arith.constant 0 : i32
    %c0_i32_1 = arith.constant 0 : i32
    return %arg0, %c0_i32, %c0_i32_0 : i32, i32, i32
  }
}

</mosaic_0001>

<bundles_post_ra>
// kernel: inception_forward.1
= control target key start
LH: loop header
LB: loop body
LE: loop exit
PB: predicated region body
PF: predicated region fallthrough
CT: control target
= control target key end

     0   :  { %s18684_s21 = smov 0   ;;  %s21370_s0 = inlined_call_operand.vmem [shape: f32[2,4,256], index: 0, kind: input, shape index: {}]   ;;  %s21371_s1 = inlined_call_operand.vmem [shape: f32[14,4], index: 1, kind: input, shape index: {}]   ;;  %s21372_s2 = inlined_call_operand.vmem [shape: f32[14,1], index: 2, kind: input, shape index: {}]   ;;  %s21373_s3 = inlined_call_operand.vmem [shape: f32[9,8,4], index: 3, kind: input, shape index: {}]   ;;  %s21374_s4 = inlined_call_operand.vmem [shape: f32[25,4,2], index: 4, kind: input, shape index: {}]   ;;  %s21375_s5 = inlined_call_operand.vmem [shape: f32[12,1], index: 5, kind: input, shape index: {}]   ;;  %s21376_s6 = inlined_call_operand.vmem [shape: f32[2,20,256], index: 6, kind: output, shape index: {}]  }
   0x1 LB: > { %s18124_s22 = sadd.s32 4294967295, %s18621_s21   ;;  %p18128_p0 = scmp.ge.s32.totalorder %s18621_s21, 1  ;;  %s18621_s21 = sphi %s18684_s21, %s16_s21  }
   0x2   : > { %p212_p1 = scmp.lt.s32.totalorder %s18621_s21, 3 }
   0x4   : > { %p213_p2 = pnand %p18128_p0, %p212_p1 }
   0x6   : > { %216 = sbr.rel (%p213_p2) target bundleno = 1547 (0x60b), region = 44 }
   0xd   : > { %p242_p3 = scmp.lt.s32.totalorder %s18124_s22, 1  ;;  %v258_v0 = vld [vmem:[%s21371_s1] sm:$0xff]  ;;  %vm276_vm0 = vcmask 31744   ;;  %v21389_v1 = vmov 0.0   ;;  %v259_v3 = vld [vmem:[%s21371_s1 + $0x8] sm:$0x3f]  ;;  %v253_v41 = vlaneseq }
   0xe   : > { %354 = vmatprep.mubr.f32.mxu1 %v21389_v1  ;;  %v278_v2 = vsel %vm276_vm0, %v258_v0, 0  ;;  %v18624_v4 = vmov 0   ;;  %v261_v5 = vld [vmem:[%s21372_s2 + $0x8] sm:$0x3f]  ;;  %v281_v7 = vsel %vm276_vm0, %v259_v3, 0  ;;  %8493 = vmatprep.mubr.f32.mxu0 %v21389_v1  ;;  %vm283_vm1 = vcmask 1043456  }
   0xf   : > { %18610 = vset.pattern.permute.xlu0 %v18624_v4  ;;  %s21552_s22 = smov (!%p242_p3, %s18124_s22), 1  ;;  %v355_v6 = vand.u32 4294901760, %v278_v2  ;;  %18611 = vset.pattern.permute.xlu1 %v18624_v4  ;;  %v366_v8 = vand.u32 4294901760, %v281_v7  ;;  %s18625_s9 = smov 17   ;;  %v260_v40 = vld [vmem:[%s21372_s2] sm:$0xff]  ;;  %v18763_v42 = vand.u32 127, %v253_v41 }
  0x10   : > { %271 = vperm.xlu0 %18610, %v261_v5   ;;  %s18134_s29 = sshll.u32 %s21552_s22, 3  ;;  %s18626_s10 = smov 16   ;;  %v5218_v45 = vld [vmem:[%s21374_s4 + $0x18] sm:$0xf]  ;;  %vm5267_vm2 = vcmask 15360   ;;  %vm5271_vm9 = vcmask 1041408  }
  0x11   : > { %v356_v9 = vsub.f32 %v278_v2, %v355_v6  ;;  %s18711_s8 = scalar_lea.vmem %s21370_s0, %s18134_s29  ;;  %v367_v10 = vsub.f32 %v281_v7, %v366_v8  ;;  %s18627_s13 = smov 15   ;;  %v18766_v43 = vadd.s32 128, %v18763_v42  ;;  %v18769_v44 = vand.u32 15, %v18763_v42 }
  0x12   : > { %v18714_v11 = vld [vmem:[%s18711_s8] sm:$0xff]  ;;  %vm21378_vm3 = vcmp.ge.s32.totalorder %v18763_v42, 16  ;;  %v8182_v47 = vsel %vm5267_vm2, %v5218_v45, 0  ;;  %vm825_vm7 = vcmp.lt.s32.totalorder %v18763_v42, 17  ;;  %vm842_vm8 = vcmp.lt.s32.totalorder %v18763_v42, 16  ;;  %s18628_s18 = smov 14  }
  0x13   : > { %v357_v12 = vand.u32 4294901760, %v356_v9  ;;  %v18718_v13 = vcombine.high %v18714_v11, %v18714_v11  ;;  %v284_v14 = vsel %vm283_vm1, %v18714_v11, 0  ;;  %v368_v15 = vand.u32 4294901760, %v367_v10  ;;  %s18629_s19 = smov 2   ;;  %s18630_s20 = smov 1  }
  0x14   : > { %v290_v16 = vand.u32 4294901760, %v284_v14  ;;  %v18775_v46 = vand.u32 15, %v18766_v43  ;;  %vm830_vm4 = vcmp.ge.s32.totalorder %v18769_v44, 1  ;;  %v18785_v48 = vand.u32 4294901760, %v8182_v47  ;;  %s18631_s25 = smov 127   ;;  %s18632_s26 = smov 126  }
  0x15   : > { %v358_v17 = vsub.f32 %v356_v9, %v357_v12  ;;  %v286_v18 = vsel %vm283_vm1, %v18718_v13, 0  ;;  %v369_v22 = vsub.f32 %v367_v10, %v368_v15  ;;  %vm832_vm6 = vmand %vm21378_vm3, %vm830_vm4  ;;  %v18818_v3 = vsel %vm21378_vm3, 1.0, %v21389_v1  ;;  %s18633_s27 = smov 113   ;;  %s18634_s28 = smov 114  }
  0x16   : > { %v288_v19 = vand.u32 4294901760, %v286_v18  ;;  %v384_v20 = vsub.f32 %v284_v14, %v290_v16  ;;  %vm21434_vm5 = vcmp.ge.s32.totalorder %v18775_v46, 1  ;;  %21440 = vst [vmem:[#allocation3_spill] sm:$0xff] %v18785_v48  ;;  %v18789_v50 = vsel %vm832_vm6, 1.0, %v21389_v1  ;;  %s18635_s29 = smov 112   ;;  %s18636_s30 = smov 111  }
  0x17   : > { %v359_v21 = vand.u32 4294901760, %v358_v17  ;;  %v370_v25 = vand.u32 4294901760, %v369_v22  ;;  %v18794_v51 = vsel %vm21434_vm5, 1.0, %v21389_v1  ;;  %v18801_v55 = vsub.f32 %v8182_v47, %v18785_v48  ;;  %s18637_s7 = smov 33   ;;  %s18638_s11 = smov 34  }
  0x18   : > { %289 = vmatprep.subr.mxu1 %v288_v19  ;;  %v378_v23 = vsub.f32 %v286_v18, %v288_v19  ;;  %v385_v24 = vand.u32 4294901760, %v384_v20  ;;  %vm1801_vm10 = vcmp.lt.s32.totalorder %v18763_v42, 15  ;;  %vm21433_vm11 = vcmp.lt.s32.totalorder %v18775_v46, 15  ;;  %s18639_s12 = smov 110   ;;  %s18640_s14 = smov 32  }
  0x19   : > { %291 = vmatpush1.msra.mxu1 %v290_v16  ;;  %21441 = vst [vmem:[#allocation4_spill] sm:$0xff] %v18801_v55  ;;  %v21379_v2 = vand.u32 4294901760, %v18801_v55  ;;  %v18920_v47 = vsel %vm21433_vm11, 1.0, %v21389_v1  ;;  %vm21435_vm12 = vcmp.lt.s32.totalorder %v18769_v44, 15  ;;  %s18641_s15 = smov 98   ;;  %s18642_s16 = smov 31  }
  0x1a   : > { %360 = vmatmul.mubr.f32.vlgmr.msra.gmra.mrb[0].mxu1 %v359_v21  ;;  %v379_v26 = vand.u32 4294901760, %v378_v23  ;;  %v386_v27 = vsub.f32 %v384_v20, %v385_v24  ;;  %vm1806_vm13 = vmand %vm21378_vm3, %vm21435_vm12  ;;  %s18643_s17 = smov 97   ;;  %s18645_s24 = smov 96   ;;  %vm7200_vm14 = vcmp.lt.s32.totalorder %v18769_v44, 14  ;;  %vm7201_vm15 = vcmp.lt.s32.totalorder %v18775_v46, 14 }
  0x1b   : > { %365 = vmatprep.mubr.f32.mxu1 %v21389_v1  ;;  %vm9632_vm6 = vmand %vm21378_vm3, %vm7200_vm14  ;;  %vm21436_vm3 = vcmp.ge.s32.totalorder %v18769_v44, 2 }
  0x1c   : > { %v380_v28 = vsub.f32 %v378_v23, %v379_v26  ;;  %v387_v29 = vand.u32 4294901760, %v386_v27 }
  0x1e   : > { %371 = vmatmul.mubr.f32.gmra.mrb[2].mxu1 %v370_v25  ;;  %v381_v30 = vand.u32 4294901760, %v380_v28 }
  0x1f   : > { %451 = vmatprep.mubr.f32.mxu1 %v21389_v1 }
  0x20   : > { %382 = vmatprep.subr.mxu1 %v381_v30 }
  0x21   : > { %388 = vmatpush1.msra.mxu1 %v387_v29 }
  0x22   : > { %453 = vmatmul.mubr.f32.vlgmr.msra.gmra.mrb[0].mxu1 %v355_v6  ;;  %468 = vmatprep.subr.mxu1 %v378_v23 }
  0x23   : > { %458 = vmatprep.mubr.f32.mxu1 %v21389_v1  ;;  %471 = vmatpush1.msra.mxu1 %v384_v20 }
  0x24   : > { %552 = vmatprep.subr.mxu1 %v288_v19 }
  0x26   : > { %460 = vmatmul.mubr.f32.gmra.mrb[2].mxu1 %v366_v8 }
  0x27   : > { %534 = vmatprep.mubr.f32.mxu1 %v21389_v1 }
  0x2a   : > { %537 = vmatmul.mubr.f32.vlgmr.msra.gmra.mrb[0].mxu1 %v356_v9 }
  0x2b   : > { %542 = vmatprep.mubr.f32.mxu1 %v21389_v1  ;;  %554 = vmatpush1.msra.mxu1 %v290_v16 }
  0x2c   : > { %639 = vmatprep.subr.mxu1 %v379_v26 }
  0x2e   : > { %545 = vmatmul.mubr.f32.gmra.mrb[2].mxu1 %v367_v10 }
  0x2f   : > { %617 = vmatprep.mubr.f32.mxu1 %v21389_v1 }
  0x32   : > { %621 = vmatmul.mubr.f32.vlgmr.msra.gmra.mrb[0].mxu1 %v357_v12 }
  0x33   : > { %626 = vmatprep.mubr.f32.mxu1 %v21389_v1  ;;  %643 = vmatpush1.msra.mxu1 %v385_v24 }
  0x34   : > { %722 = vmatprep.subr.mxu1 %v288_v19 }
  0x36   : > { %630 = vmatmul.mubr.f32.gmra.mrb[2].mxu1 %v368_v15 }
  0x37   : > { %706 = vmatprep.mubr.f32.mxu1 %v21389_v1 }
  0x3a   : > { %708 = vmatmul.mubr.f32.vlgmr.msra.gmra.mrb[0].mxu1 %v355_v6 }
  0x3b   : > { %713 = vmatprep.mubr.f32.mxu1 %v21389_v1  ;;  %724 = vmatpush1.msra.mxu1 %v290_v16 }
  0x3e   : > { %715 = vmatmul.mubr.f32.gmra.mrb[2].mxu1 %v366_v8 }
  0x3f   : > { %787 = vmatprep.mubr.f32.mxu1 %v21389_v1 }
  0x42   : > { %789 = vmatmul.mubr.f32.vlgmr.msra.gmra.mrb[0].mxu1 %v355_v6 }
  0x43   : > { %794 = vmatprep.mubr.f32.mxu1 %v21389_v1 }
  0x46   : > { %796 = vmatmul.mubr.f32.gmra.mrb[2].mxu1 %v366_v8  ;;  %v5219_v8 = vld [vmem:[%s21374_s4 + $0x1c] sm:$0xf] }
  0x47   : > { %924 = vmatprep.mubr.f32.mxu1 %v21389_v1  ;;  %v8666_v15 = vsel %vm5267_vm2, %v5219_v8, 0 }
  0x48   : > { %v18852_v18 = vand.u32 4294901760, %v8666_v15 }
  0x4a   : > { %v18859_v21 = vsub.f32 %v8666_v15, %v18852_v18 }
  0x4c   : > { %v8743_v25 = vand.u32 4294901760, %v18859_v21 }
  0x8f   : > { %v18740_v33 = vpop.permute.xlu0 %271 }
  0x90   : > { %21439 = vst [vmem:[#allocation2_spill] sm:$0xff] %v18740_v33 }
 0x115   : > { %v18736_v31 = vpop.f32.mrb[0].mxu1 }
 0x116   : > { %v18738_v32 = vpop.f32.mrb[1].mxu1 }
 0x119   : > { %v797_v34 = vpop.f32.mrb[2].mxu1 }
 0x11a   : > { %v18137_v35 = vadd.f32 %v797_v34, %v18740_v33  ;;  %v799_v36 = vpop.f32.mrb[3].mxu1 }
 0x11b   : > { %v18138_v37 = vadd.f32 %v799_v36, %v18740_v33 }
 0x11c   : > { %v18744_v38 = vmax.f32 %v18137_v35, 0.0  ;;  %v8744_v35 = vsub.f32 %v18859_v21, %v8743_v25 }
 0x11d   : > { %v18746_v39 = vmax.f32 %v18138_v37, 0.0 }
 0x11e   : > { %8173 = vrot.lane.b32.xlu0 %v18744_v38, %s18625_s9  ;;  %v8745_v37 = vand.u32 4294901760, %v8744_v35 }
 0x11f   : > { %8175 = vrot.lane.b32.xlu1 %v18746_v39, %s18625_s9 }
 0x122   : > { %8659 = vrot.lane.b32.xlu0 %v18746_v39, %s18626_s10 }
 0x123   : > { %8657 = vrot.lane.b32.xlu1 %v18744_v38, %s18626_s10 }
 0x126   : > { %9141 = vrot.lane.b32.xlu0 %v18744_v38, %s18627_s13 }
 0x127   : > { %266 = vperm.xlu1 %18611, %v260_v40  }
 0x12b   : > { %9143 = vrot.lane.b32.xlu1 %v18746_v39, %s18627_s13 }
 0x190   : > { %v8174_v49 = vpop.permute.xlu0 %8173 }
 0x191   : > { %v8176_v52 = vpop.permute.xlu1 %8175 }
 0x192   : > { %v8177_v53 = vsel %vm825_vm7, %v8174_v49, %v8176_v52  ;;  %v8178_v54 = vsel %vm825_vm7, %v8176_v52, %v8174_v49 }
 0x193   : > { %v8179_v56 = vmul.f32 %v8178_v54, %v18789_v50  ;;  %v8180_v57 = vmul.f32 %v8177_v53, %v18794_v51  ;;  %v18942_v53 = vsel %vm1806_vm13, 1.0, %v21389_v1  ;;  %vm9629_vm13 = vcmp.lt.s32.totalorder %v18763_v42, 14 }
 0x194   : > { %v8660_v58 = vpop.permute.xlu0 %8659 }
 0x195   : > { %v8185_v59 = vsel %vm5271_vm9, %v8179_v56, 0  ;;  %v8188_v60 = vsel %vm5271_vm9, %v8180_v57, 0  ;;  %v8658_v61 = vpop.permute.xlu1 %8657  ;;  %v5220_v57 = vld [vmem:[%s21374_s4 + $0x20] sm:$0xf] }
 0x196   : > { %v18808_v62 = vand.u32 4294901760, %v8188_v60  ;;  %v18810_v63 = vand.u32 4294901760, %v8185_v59  ;;  %v8661_v0 = vsel %vm842_vm8, %v8658_v61, %v8660_v58  ;;  %v8662_v4 = vsel %vm842_vm8, %v8660_v58, %v8658_v61 }
 0x197   : > { %v8672_v5 = vsel %vm5271_vm9, %v8661_v0, 0  ;;  %v8663_v9 = vmul.f32 %v8662_v4, %v18818_v3 }
 0x198   : > { %21442 = vst [vmem:[#allocation5_spill] sm:$0xff] %v18808_v62  ;;  %21443 = vst [vmem:[#allocation6_spill] sm:$0xff] %v18810_v63  ;;  %v18824_v6 = vsub.f32 %v8188_v60, %v18808_v62  ;;  %v18827_v7 = vsub.f32 %v8185_v59, %v18810_v63  ;;  %8428 = vmatprep.subr.mxu0 %v18808_v62  ;;  %v18835_v10 = vand.u32 4294901760, %v8672_v5  ;;  %v9142_v45 = vpop.permute.xlu0 %9141  ;;  %v9150_v60 = vsel %vm5267_vm2, %v5220_v57, 0 }
 0x199   : > { %8430 = vmatpush1.msra.mxu0 %v18810_v63  ;;  %v8669_v16 = vsel %vm5271_vm9, %v8663_v9, 0  ;;  %v18968_v4 = vand.u32 4294901760, %v9150_v60 }
 0x19a   : > { %21444 = vst [vmem:[#allocation7_spill] sm:$0xff] %v18824_v6  ;;  %21445 = vst [vmem:[#allocation8_spill] sm:$0xff] %v18827_v7  ;;  %8497 = vmatmul.mubr.f32.vlgmr.msra.gmra.mrb[0].mxu0 %v21379_v2  ;;  %v21380_v12 = vand.u32 4294901760, %v18824_v6  ;;  %v21377_v14 = vand.u32 4294901760, %v18827_v7  ;;  %v18849_v17 = vsub.f32 %v8672_v5, %v18835_v10  ;;  %v18854_v19 = vand.u32 4294901760, %v8669_v16 }
 0x19b   : > { %8573 = vmatprep.mubr.f32.mxu0 %v21389_v1  ;;  %v9226_v9 = vsub.f32 %v9150_v60, %v18968_v4  ;;  %v19093_v60 = vsel %vm7201_vm15, 1.0, %v21389_v1 }
 0x19c   : > { %8506 = vmatprep.subr.mxu0 %v21380_v12  ;;  %v8754_v20 = vand.u32 4294901760, %v18849_v17  ;;  %v18865_v22 = vsub.f32 %v8669_v16, %v18854_v19 }
 0x19d   : > { %8510 = vmatpush1.msra.mxu0 %v21377_v14  ;;  %v9227_v16 = vand.u32 4294901760, %v9226_v9 }
 0x19e   : > { %8582 = vmatprep.subr.mxu0 %v18808_v62  ;;  %v8755_v24 = vsub.f32 %v18849_v17, %v8754_v20  ;;  %v8760_v30 = vand.u32 4294901760, %v18865_v22  ;;  %v21454_v62 = vmov 0.0  }
 0x1a0   : > { %v8756_v34 = vand.u32 4294901760, %v8755_v24  ;;  %v8761_v36 = vsub.f32 %v18865_v22, %v8760_v30 }
 0x1a2   : > { %8575 = vmatmul.mubr.f32.vlgmr.msra.gmra.mrb[0].mxu0 %v18785_v48  ;;  %v8762_v40 = vand.u32 4294901760, %v8761_v36 }
 0x1a3   : > { %8584 = vmatpush1.msra.mxu0 %v18810_v63  ;;  %8647 = vmatprep.mubr.f32.mxu0 %v21389_v1 }
 0x1a4   : > { %8675 = vmatprep.subr.mxu0 %v18835_v10 }
 0x1a6   : > { %v267_v23 = vpop.permute.xlu1 %266 }
 0x1a7   : > { %v18870_v26 = vadd.f32 %v18736_v31, %v267_v23  ;;  %v18873_v27 = vadd.f32 %v18738_v32, %v267_v23  ;;  %v807_v23 = vld [vmem:[%s21373_s3 + $0x8] sm:$0xff] }
 0x1a8   : > { %v850_v24 = vsel %vm276_vm0, %v807_v23, 0 }
 0x1a9   : > { %21446 = vst [vmem:[#allocation9_spill] sm:$0xff] %v18870_v26  ;;  %21447 = vst [vmem:[#allocation10_spill] sm:$0xff] %v18873_v27  ;;  %v21382_v28 = vmax.f32 %v18870_v26, 0.0  ;;  %v21381_v29 = vmax.f32 %v18873_v27, 0.0 }
 0x1aa   : > { %8649 = vmatmul.mubr.f32.vlgmr.msra.gmra.mrb[0].mxu0 %v18785_v48  ;;  %v9144_v41 = vpop.permute.xlu1 %9143 }
 0x1ab   : > { %v18884_v31 = vrot.slane %v21382_v28, 4  ;;  %v18888_v32 = vrot.slane %v21381_v29, 4  ;;  %8677 = vmatpush1.msra.mxu0 %v18854_v19  ;;  %8740 = vmatprep.mubr.f32.mxu0 %v21389_v1  ;;  %v9145_v49 = vsel %vm1801_vm10, %v9142_v45, %v9144_v41  ;;  %v9146_v54 = vsel %vm1801_vm10, %v9144_v41, %v9142_v45 }
 0x1ac   : > { %8757 = vmatprep.subr.mxu0 %v8756_v34  ;;  %v9148_v52 = vmul.f32 %v9145_v49, %v18920_v47  ;;  %v9147_v58 = vmul.f32 %v9146_v54, %v18942_v53 }
 0x1ad   : > { %840 = vrot.lane.b32.xlu1 %v18888_v32, %s18626_s10  ;;  %838 = vrot.lane.b32.xlu0 %v18884_v31, %s18626_s10 }
 0x1ae   : > { %v9156_v56 = vsel %vm5271_vm9, %v9148_v52, 0  ;;  %v9153_v61 = vsel %vm5271_vm9, %v9147_v58, 0 }
 0x1af   : > { %v18955_v59 = vand.u32 4294901760, %v9156_v56  ;;  %v18970_v5 = vand.u32 4294901760, %v9153_v61 }
 0x1b1   : > { %9627 = vrot.lane.b32.xlu1 %v18746_v39, %s18628_s18  ;;  %9625 = vrot.lane.b32.xlu0 %v18744_v38, %s18628_s18  ;;  %v9237_v0 = vsub.f32 %v9156_v56, %v18955_v59  ;;  %s18644_s18 = smov 30  }
 0x1b2   : > { %8746 = vmatmul.mubr.f32.vlgmr.msra.gmra.mrb[0].mxu0 %v8745_v37 }
 0x1b3   : > { %8763 = vmatpush1.msra.mxu0 %v8762_v40  ;;  %8826 = vmatprep.mubr.f32.mxu0 %v21389_v1  ;;  %v9238_v8 = vand.u32 4294901760, %v9237_v0 }
 0x1b4   : > { %8836 = vmatprep.subr.mxu0 %v18849_v17 }
 0x1b5   : > { %823 = vrot.lane.b32.xlu1 %v18888_v32, %s18625_s9  ;;  %821 = vrot.lane.b32.xlu0 %v18884_v31, %s18625_s9  ;;  %v9239_v15 = vsub.f32 %v9237_v0, %v9238_v8 }
 0x1b9   : > { %10116 = vrot.lane.b32.xlu1 %v18746_v39, %s18629_s19  ;;  %10114 = vrot.lane.b32.xlu0 %v18744_v38, %s18629_s19 }
 0x1ba   : > { %8828 = vmatmul.mubr.f32.vlgmr.msra.gmra.mrb[0].mxu0 %v18852_v18 }
 0x1bb   : > { %8839 = vmatpush1.msra.mxu0 %v18865_v22  ;;  %8902 = vmatprep.mubr.f32.mxu0 %v21389_v1 }
 0x1bc   : > { %8912 = vmatprep.subr.mxu0 %v18835_v10 }
 0x1bd   : > { %1799 = vrot.lane.b32.xlu1 %v18888_v32, %s18627_s13  ;;  %1797 = vrot.lane.b32.xlu0 %v18884_v31, %s18627_s13 }
 0x1c1   : > { %10603 = vrot.lane.b32.xlu1 %v18746_v39, %s18630_s20  ;;  %10601 = vrot.lane.b32.xlu0 %v18744_v38, %s18630_s20 }
 0x1c2   : > { %8905 = vmatmul.mubr.f32.vlgmr.msra.gmra.mrb[0].mxu0 %v18859_v21 }
 0x1c3   : > { %8914 = vmatpush1.msra.mxu0 %v18854_v19  ;;  %8977 = vmatprep.mubr.f32.mxu0 %v21389_v1 }
 0x1c4   : > { %8990 = vmatprep.subr.mxu0 %v8754_v20  ;;  %v9228_v20 = vsub.f32 %v9226_v9, %v9227_v16 }
 0x1c5   : > { %2290 = vrot.lane.b32.xlu1 %v18888_v32, %s18630_s20  ;;  %2288 = vrot.lane.b32.xlu0 %v18884_v31, %s18630_s20 }
 0x1c6   : > { %v9229_v22 = vand.u32 4294901760, %v9228_v20 }
 0x1c9   : > { %11563 = vrot.lane.b32.xlu1 %v18746_v39, %s18631_s25  ;;  %11561 = vrot.lane.b32.xlu0 %v18744_v38, %s18631_s25 }
 0x1ca   : > { %8981 = vmatmul.mubr.f32.vlgmr.msra.gmra.mrb[0].mxu0 %v8743_v25  ;;  %v5221_v25 = vld [vmem:[%s21374_s4 + $0x24] sm:$0xf] }
 0x1cb   : > { %8994 = vmatpush1.msra.mxu0 %v8760_v30  ;;  %9057 = vmatprep.mubr.f32.mxu0 %v21389_v1  ;;  %v19047_v30 = vand.u32 4294901760, %v850_v24  ;;  %v9639_v34 = vsel %vm5267_vm2, %v5221_v25, 0 }
 0x1cc   : > { %9066 = vmatprep.subr.mxu0 %v18835_v10  ;;  %v9243_v10 = vsub.f32 %v9153_v61, %v18970_v5  ;;  %v19055_v36 = vand.u32 4294901760, %v9639_v34  ;;  %v9634_v61 = vsel %vm9632_vm6, 1.0, %v21389_v1  ;;  %vm5247_vm6 = vcmp.ge.s32.totalorder %v18775_v46, 2 }
 0x1cd   : > { %3251 = vrot.lane.b32.xlu1 %v18888_v32, %s18631_s25  ;;  %3249 = vrot.lane.b32.xlu0 %v18884_v31, %s18631_s25  ;;  %v19053_v35 = vsub.f32 %v850_v24, %v19047_v30 }
 0x1ce   : > { %v9244_v17 = vand.u32 4294901760, %v9243_v10  ;;  %v19061_v40 = vsub.f32 %v9639_v34, %v19055_v36 }
 0x1cf   : > { %v927_v37 = vand.u32 4294901760, %v19053_v35 }
 0x1d0   : > { %v9245_v21 = vsub.f32 %v9243_v10, %v9244_v17  ;;  %v9716_v52 = vand.u32 4294901760, %v19061_v40 }
 0x1d1   : > { %12047 = vrot.lane.b32.xlu1 %v18746_v39, %s18632_s26  ;;  %12045 = vrot.lane.b32.xlu0 %v18744_v38, %s18632_s26  ;;  %v928_v49 = vsub.f32 %v19053_v35, %v927_v37 }
 0x1d2   : > { %9059 = vmatmul.mubr.f32.vlgmr.msra.gmra.mrb[0].mxu0 %v18852_v18 }
 0x1d3   : > { %9068 = vmatpush1.msra.mxu0 %v18854_v19  ;;  %9131 = vmatprep.mubr.f32.mxu0 %v21389_v1  ;;  %v9240_v19 = vand.u32 4294901760, %v9239_v15 }
 0x1d4   : > { %9159 = vmatprep.subr.mxu0 %v18955_v59 }
 0x1d5   : > { %3738 = vrot.lane.b32.xlu1 %v18888_v32, %s18633_s27  ;;  %3736 = vrot.lane.b32.xlu0 %v18884_v31, %s18633_s27 }
 0x1d9   : > { %12534 = vrot.lane.b32.xlu1 %v18746_v39, %s18634_s28  ;;  %12532 = vrot.lane.b32.xlu0 %v18744_v38, %s18634_s28 }
 0x1da   : > { %9133 = vmatmul.mubr.f32.vlgmr.msra.gmra.mrb[0].mxu0 %v18852_v18  ;;  %v9246_v18 = vand.u32 4294901760, %v9245_v21 }
 0x1db   : > { %9161 = vmatpush1.msra.mxu0 %v18970_v5  ;;  %9224 = vmatprep.mubr.f32.mxu0 %v21389_v1 }
 0x1dc   : > { %9241 = vmatprep.subr.mxu0 %v9240_v19 }
 0x1dd   : > { %4229 = vrot.lane.b32.xlu1 %v18888_v32, %s18635_s29  ;;  %4227 = vrot.lane.b32.xlu0 %v18884_v31, %s18635_s29 }
 0x1e1   : > { %13023 = vrot.lane.b32.xlu1 %v18746_v39, %s18633_s27  ;;  %13021 = vrot.lane.b32.xlu0 %v18744_v38, %s18633_s27 }
 0x1e2   : > { %9230 = vmatmul.mubr.f32.vlgmr.msra.gmra.mrb[0].mxu0 %v9229_v22 }
 0x1e3   : > { %9247 = vmatpush1.msra.mxu0 %v9246_v18  ;;  %9310 = vmatprep.mubr.f32.mxu0 %v21389_v1 }
 0x1e4   : > { %9320 = vmatprep.subr.mxu0 %v9237_v0 }
 0x1e5   : > { %4716 = vrot.lane.b32.xlu1 %v18888_v32, %s18636_s30  ;;  %4714 = vrot.lane.b32.xlu0 %v18884_v31, %s18636_s30 }
 0x1e9   : > { %13507 = vrot.lane.b32.xlu1 %v18746_v39, %s18635_s29  ;;  %13505 = vrot.lane.b32.xlu0 %v18744_v38, %s18635_s29 }
 0x1ea   : > { %9312 = vmatmul.mubr.f32.vlgmr.msra.gmra.mrb[0].mxu0 %v18968_v4 }
 0x1eb   : > { %9323 = vmatpush1.msra.mxu0 %v9243_v10  ;;  %9386 = vmatprep.mubr.f32.mxu0 %v21389_v1 }
 0x1ec   : > { %9396 = vmatprep.subr.mxu0 %v18955_v59 }
 0x1ed   : > { %5256 = vrot.lane.b32.xlu1 %v18746_v39, %s18637_s7  ;;  %5254 = vrot.lane.b32.xlu0 %v18744_v38, %s18637_s7  ;;  %s18646_s7 = smov 18  }
 0x1f1   : > { %13991 = vrot.lane.b32.xlu1 %v18746_v39, %s18636_s30  ;;  %13989 = vrot.lane.b32.xlu0 %v18744_v38, %s18636_s30 }
 0x1f2   : > { %9389 = vmatmul.mubr.f32.vlgmr.msra.gmra.mrb[0].mxu0 %v9226_v9  ;;  %v9717_v9 = vsub.f32 %v19061_v40, %v9716_v52 }
 0x1f3   : > { %9398 = vmatpush1.msra.mxu0 %v18970_v5  ;;  %9461 = vmatprep.mubr.f32.mxu0 %v21389_v1 }
 0x1f4   : > { %9474 = vmatprep.subr.mxu0 %v9238_v8  ;;  %v929_v8 = vand.u32 4294901760, %v928_v49 }
 0x1f5   : > { %5239 = vrot.lane.b32.xlu1 %v18746_v39, %s18638_s11  ;;  %5237 = vrot.lane.b32.xlu0 %v18744_v38, %s18638_s11  ;;  %s18647_s11 = smov 95  }
 0x1f9   : > { %14475 = vrot.lane.b32.xlu1 %v18746_v39, %s18639_s12  ;;  %14473 = vrot.lane.b32.xlu0 %v18744_v38, %s18639_s12 }
 0x1fa   : > { %9465 = vmatmul.mubr.f32.vlgmr.msra.gmra.mrb[0].mxu0 %v9227_v16 }
 0x1fb   : > { %9478 = vmatpush1.msra.mxu0 %v9244_v17  ;;  %9541 = vmatprep.mubr.f32.mxu0 %v21389_v1 }
 0x1fc   : > { %9550 = vmatprep.subr.mxu0 %v18955_v59 }
 0x1fd   : > { %6219 = vrot.lane.b32.xlu1 %v18746_v39, %s18640_s14  ;;  %6217 = vrot.lane.b32.xlu0 %v18744_v38, %s18640_s14 }
 0x201   : > { %14964 = vrot.lane.b32.xlu1 %v18746_v39, %s18641_s15  ;;  %14962 = vrot.lane.b32.xlu0 %v18744_v38, %s18641_s15 }
 0x202   : > { %9543 = vmatmul.mubr.f32.vlgmr.msra.gmra.mrb[0].mxu0 %v18968_v4 }
 0x203   : > { %9552 = vmatpush1.msra.mxu0 %v18970_v5  ;;  %9615 = vmatprep.mubr.f32.mxu0 %v21389_v1 }
 0x205   : > { %6706 = vrot.lane.b32.xlu1 %v18746_v39, %s18642_s16  ;;  %6704 = vrot.lane.b32.xlu0 %v18744_v38, %s18642_s16 }
 0x209   : > { %15455 = vrot.lane.b32.xlu1 %v18746_v39, %s18643_s17  ;;  %15453 = vrot.lane.b32.xlu0 %v18744_v38, %s18643_s17 }
 0x20a   : > { %9617 = vmatmul.mubr.f32.vlgmr.msra.gmra.mrb[0].mxu0 %v18968_v4 }
 0x20b   : > { %9713 = vmatprep.mubr.f32.mxu0 %v21389_v1 }
 0x20d   : > { %7195 = vrot.lane.b32.xlu1 %v18746_v39, %s18644_s18  ;;  %7193 = vrot.lane.b32.xlu0 %v18744_v38, %s18644_s18 }
 0x211   : > { %15944 = vrot.lane.b32.xlu1 %v18746_v39, %s18645_s24  ;;  %15942 = vrot.lane.b32.xlu0 %v18744_v38, %s18645_s24 }
 0x215   : > { %7686 = vrot.lane.b32.xlu1 %v18746_v39, %s18646_s7  ;;  %7684 = vrot.lane.b32.xlu0 %v18744_v38, %s18646_s7 }
 0x219   : > { %16431 = vrot.lane.b32.xlu1 %v18746_v39, %s18647_s11  ;;  %16429 = vrot.lane.b32.xlu0 %v18744_v38, %s18647_s11 }
 0x21d   : > { %17419 = vrot.lane.b32.xlu1 %v18718_v13, %s18625_s9  ;;  %17417 = vrot.lane.b32.xlu0 %v18714_v11, %s18625_s9  ;;  %s18648_s9 = smov 94  }
 0x21f   : > { %v841_v41 = vpop.permute.xlu1 %840  ;;  %v839_v45 = vpop.permute.xlu0 %838 }
 0x220   : > { %v843_v54 = vsel %vm842_vm8, %v839_v45, %v841_v41  ;;  %v844_v56 = vsel %vm842_vm8, %v841_v41, %v839_v45  ;;  %v9718_v45 = vand.u32 4294901760, %v9717_v9 }
 0x221   : > { %v847_v57 = vmul.f32 %v18818_v3, %v844_v56  ;;  %v856_v58 = vsel %vm283_vm1, %v843_v54, 0  ;;  %17438 = vrot.lane.b32.xlu1 %v18718_v13, %s18626_s10  ;;  %17436 = vrot.lane.b32.xlu0 %v18714_v11, %s18626_s10 }
 0x222   : > { %v19088_v59 = vand.u32 4294901760, %v856_v58 }
 0x223   : > { %v853_v0 = vsel %vm283_vm1, %v847_v57, 0  ;;  %v9628_v4 = vpop.permute.xlu1 %9627  ;;  %v9626_v5 = vpop.permute.xlu0 %9625 }
 0x224   : > { %v19100_v10 = vand.u32 4294901760, %v853_v0  ;;  %v19103_v15 = vsub.f32 %v856_v58, %v19088_v59  ;;  %v9630_v16 = vsel %vm9629_vm13, %v9626_v5, %v9628_v4  ;;  %v9631_v17 = vsel %vm9629_vm13, %v9628_v4, %v9626_v5  ;;  %859 = vmatprep.subr.mxu1 %v19088_v59 }
 0x225   : > { %v9636_v19 = vmul.f32 %v9634_v61, %v9631_v17  ;;  %v9637_v20 = vmul.f32 %v9630_v16, %v19093_v60  ;;  %17457 = vrot.lane.b32.xlu1 %v18718_v13, %s18627_s13  ;;  %17455 = vrot.lane.b32.xlu0 %v18714_v11, %s18627_s13  ;;  %vm10118_vm13 = vcmp.lt.s32.totalorder %v18763_v42, 2 }
 0x226   : > { %v19112_v21 = vsub.f32 %v853_v0, %v19100_v10  ;;  %861 = vmatpush1.msra.mxu1 %v19100_v10  ;;  %v938_v22 = vand.u32 4294901760, %v19103_v15 }
 0x227   : > { %v9642_v18 = vsel %vm5271_vm9, %v9636_v19, 0  ;;  %v9645_v23 = vsel %vm5271_vm9, %v9637_v20, 0  ;;  %v19118_v24 = vpop.permute.xlu1 %823  ;;  %930 = vmatmul.mubr.f32.vlgmr.msra.gmra.mrb[4].mxu1 %v929_v8  ;;  %v19120_v25 = vpop.permute.xlu0 %821 }
 0x228   : > { %v19122_v34 = vand.u32 4294901760, %v9645_v23  ;;  %v19124_v41 = vand.u32 4294901760, %v9642_v18  ;;  %1010 = vmatprep.mubr.f32.mxu1 %v21389_v1  ;;  %v939_v49 = vsub.f32 %v19103_v15, %v938_v22  ;;  %v944_v54 = vand.u32 4294901760, %v19112_v21 }
 0x229   : > { %17476 = vrot.lane.b32.xlu1 %v18718_v13, %s18630_s20  ;;  %17474 = vrot.lane.b32.xlu0 %v18714_v11, %s18630_s20 }
 0x22a   : > { %v19134_v56 = vsub.f32 %v9645_v23, %v19122_v34  ;;  %v19137_v57 = vsub.f32 %v9642_v18, %v19124_v41  ;;  %9648 = vmatprep.subr.mxu0 %v19122_v34  ;;  %v940_v0 = vand.u32 4294901760, %v939_v49  ;;  %v945_v4 = vsub.f32 %v19112_v21, %v944_v54 }
 0x22b   : > { %v19140_v58 = vpop.permute.xlu1 %10116  ;;  %9650 = vmatpush1.msra.mxu0 %v19124_v41  ;;  %v19143_v61 = vpop.permute.xlu0 %10114  ;;  %v826_v49 = vsel %vm825_vm7, %v19120_v25, %v19118_v24 }
 0x22c   : > { %9719 = vmatmul.mubr.f32.vlgmr.msra.gmra.mrb[0].mxu0 %v9718_v45  ;;  %941 = vmatprep.subr.mxu1 %v940_v0  ;;  %v946_v5 = vand.u32 4294901760, %v945_v4  ;;  %v9727_v8 = vand.u32 4294901760, %v19134_v56  ;;  %v9733_v9 = vand.u32 4294901760, %v19137_v57 }
 0x22d   : > { %17495 = vrot.lane.b32.xlu1 %v18718_v13, %s18631_s25  ;;  %17493 = vrot.lane.b32.xlu0 %v18714_v11, %s18631_s25 }
 0x22e   : > { %9799 = vmatprep.mubr.f32.mxu0 %v21389_v1  ;;  %947 = vmatpush1.msra.mxu1 %v946_v5  ;;  %v9728_v19 = vsub.f32 %v19134_v56, %v9727_v8  ;;  %v9734_v18 = vsub.f32 %v19137_v57, %v9733_v9  ;;  %v837_v5 = vmul.f32 %v18794_v51, %v826_v49 }
 0x22f   : > { %v19155_v16 = vpop.permute.xlu1 %1799  ;;  %v19157_v17 = vpop.permute.xlu0 %1797  ;;  %1012 = vmatmul.mubr.f32.vlgmr.msra.gmra.mrb[4].mxu1 %v19047_v30  ;;  %1020 = vmatprep.subr.mxu1 %v19103_v15 }
 0x230   : > { %1023 = vmatpush1.msra.mxu1 %v19112_v21  ;;  %v9729_v20 = vand.u32 4294901760, %v9728_v19  ;;  %v9735_v45 = vand.u32 4294901760, %v9734_v18  ;;  %1086 = vmatprep.mubr.f32.mxu1 %v21389_v1  ;;  %v263_v18 = vld [vmem:[%s21375_s5 + $0x8] sm:$0xf] }
 0x231   : > { %17514 = vrot.lane.b32.xlu1 %v18718_v13, %s18633_s27  ;;  %17512 = vrot.lane.b32.xlu0 %v18714_v11, %s18633_s27 }
 0x232   : > { %1096 = vmatprep.subr.mxu1 %v19088_v59  ;;  %9730 = vmatprep.subr.mxu0 %v9729_v20  ;;  %v19210_v20 = vsel %vm5247_vm6, 1.0, %v21389_v1 }
 0x233   : > { %v19171_v23 = vpop.permute.xlu1 %10603  ;;  %v19173_v15 = vpop.permute.xlu0 %10601  ;;  %9736 = vmatpush1.msra.mxu0 %v9735_v45  ;;  %21448 = vst [vmem:[#allocation11_spill] sm:$0xff] %v19210_v20  ;;  %v806_v45 = vld [vmem:[%s21373_s3] sm:$0xff] }
 0x234   : > { %9801 = vmatmul.mubr.f32.vlgmr.msra.gmra.mrb[0].mxu0 %v19055_v36  ;;  %9809 = vmatprep.subr.mxu0 %v19134_v56  ;;  %v1324_v2 = vsel %vm276_vm0, %v806_v45, 0 }
 0x235   : > { %17533 = vrot.lane.b32.xlu1 %v18718_v13, %s18635_s29  ;;  %17531 = vrot.lane.b32.xlu0 %v18714_v11, %s18635_s29 }
 0x236   : > { %9812 = vmatpush1.msra.mxu0 %v19137_v57  ;;  %9875 = vmatprep.mubr.f32.mxu0 %v21389_v1 }
 0x237   : > { %v19187_v0 = vpop.permute.xlu1 %2290  ;;  %v19189_v4 = vpop.permute.xlu0 %2288  ;;  %9885 = vmatprep.subr.mxu0 %v19122_v34  ;;  %1089 = vmatmul.mubr.f32.vlgmr.msra.gmra.mrb[4].mxu1 %v19053_v35  ;;  %v10120_v35 = vsel %vm10118_vm13, %v19140_v58, %v19143_v61 }
 0x238   : > { %1098 = vmatpush1.msra.mxu1 %v19100_v10  ;;  %1161 = vmatprep.mubr.f32.mxu1 %v21389_v1 }
 0x239   : > { %17552 = vrot.lane.b32.xlu1 %v18718_v13, %s18636_s30  ;;  %1174 = vmatprep.subr.mxu1 %v938_v22  ;;  %v10119_v13 = vsel %vm10118_vm13, %v19143_v61, %v19140_v58  ;;  %v1330_v22 = vsel %vm283_vm1, %v837_v5, 0  ;;  %v5222_v58 = vld [vmem:[%s21374_s4 + $0x28] sm:$0xf]  ;;  %vm2292_vm13 = vcmp.lt.s32.totalorder %v18763_v42, 1 }
 0x23a   : > { %17550 = vrot.lane.b32.xlu0 %v18714_v11, %s18636_s30  ;;  %v827_v11 = vsel %vm825_vm7, %v19118_v24, %v19120_v25  ;;  %v10124_v49 = vmul.f32 %v10119_v13, %v19210_v20  ;;  %v19237_v14 = vand.u32 4294901760, %v1330_v22  ;;  %v262_v13 = vld [vmem:[%s21375_s5] sm:$0xff]  ;;  %v10605_v20 = vsel %vm2292_vm13, %v19173_v15, %v19171_v23 }
 0x23b   : > { %v19202_v56 = vpop.permute.xlu1 %11563  ;;  %v19204_v19 = vpop.permute.xlu0 %11561  ;;  %v836_v5 = vmul.f32 %v18789_v50, %v827_v11 }
 0x23c   : > { %9878 = vmatmul.mubr.f32.vlgmr.msra.gmra.mrb[0].mxu0 %v19061_v40  ;;  %v19267_v11 = vsub.f32 %v1330_v22, %v19237_v14 }
 0x23d   : > { %16920 = vrot.lane.b32.xlu1 %v18746_v39, %s18648_s9  ;;  %9887 = vmatpush1.msra.mxu0 %v19124_v41 }
 0x23e   : > { %16918 = vrot.lane.b32.xlu0 %v18744_v38, %s18648_s9  ;;  %9963 = vmatprep.subr.mxu0 %v9727_v8  ;;  %v19253_v8 = vsel %vm21436_vm3, 1.0, %v21389_v1  ;;  %v21383_v40 = vand.u32 4294901760, %v19267_v11  ;;  %vm16922_vm3 = vcmp.lt.s32.totalorder %v18763_v42, 94 }
 0x23f   : > { %v19232_v24 = vpop.permute.xlu1 %3251  ;;  %v19234_v25 = vpop.permute.xlu0 %3249  ;;  %1165 = vmatmul.mubr.f32.vlgmr.msra.gmra.mrb[4].mxu1 %v927_v37  ;;  %9950 = vmatprep.mubr.f32.mxu0 %v21389_v1  ;;  %v10132_v37 = vsel %vm5271_vm9, %v10124_v49, 0  ;;  %v10123_v61 = vmul.f32 %v19253_v8, %v10120_v35 }
 0x240   : > { %1178 = vmatpush1.msra.mxu1 %v944_v54  ;;  %1241 = vmatprep.mubr.f32.mxu1 %v21389_v1  ;;  %v19275_v45 = vand.u32 4294901760, %v10132_v37 }
 0x241   : > { %17409 = vperm.xlu1 %18611, %v263_v18   ;;  %1250 = vmatprep.subr.mxu1 %v19088_v59  ;;  %v1327_v59 = vsel %vm283_vm1, %v836_v5, 0  ;;  %v19269_v18 = vand.u32 4294901760, %v1324_v2  ;;  %v10129_v57 = vsel %vm5271_vm9, %v10123_v61, 0 }
 0x242   : > { %5205 = vperm.xlu0 %18610, %v262_v13   ;;  %v19279_v49 = vand.u32 4294901760, %v1327_v59  ;;  %v10126_v13 = vsel %vm5267_vm2, %v5222_v58, 0  ;;  %v19315_v12 = vand.u32 4294901760, %v10129_v57 }
 0x243   : > { %v19260_v21 = vpop.permute.xlu1 %12047  ;;  %v19262_v54 = vpop.permute.xlu0 %12045  ;;  %v19302_v35 = vand.u32 4294901760, %v10126_v13 }
 0x244   : > { %9954 = vmatmul.mubr.f32.vlgmr.msra.gmra.mrb[0].mxu0 %v9716_v52  ;;  %v19293_v52 = vsub.f32 %v1324_v2, %v19269_v18  ;;  %v19335_v33 = vsub.f32 %v10129_v57, %v19315_v12 }
 0x245   : > { %9967 = vmatpush1.msra.mxu0 %v9733_v9  ;;  %10030 = vmatprep.mubr.f32.mxu0 %v21389_v1  ;;  %v19299_v9 = vsub.f32 %v10132_v37, %v19275_v45  ;;  %v19320_v29 = vsub.f32 %v10126_v13, %v19302_v35 }
 0x246   : > { %10039 = vmatprep.subr.mxu0 %v19122_v34  ;;  %v19305_v34 = vsub.f32 %v1327_v59, %v19279_v49  ;;  %v21449_v37 = vand.u32 4294901760, %v19293_v52  ;;  %v21397_v63 = vand.u32 4294901760, %v19335_v33 }
 0x247   : > { %v19283_v22 = vpop.permute.xlu1 %3738  ;;  %v19285_v5 = vpop.permute.xlu0 %3736  ;;  %1243 = vmatmul.mubr.f32.vlgmr.msra.gmra.mrb[4].mxu1 %v19047_v30  ;;  %v21396_v48 = vand.u32 4294901760, %v19320_v29 }
 0x248   : > { %1252 = vmatpush1.msra.mxu1 %v19100_v10  ;;  %1315 = vmatprep.mubr.f32.mxu1 %v21389_v1  ;;  %v1413_v10 = vsub.f32 %v19267_v11, %v21383_v40  ;;  %v1402_v13 = vsub.f32 %v19293_v52, %v21449_v37  ;;  %v21451_v37 = vand.u32 4294901760, %v19305_v34 }
 0x249   : > { %1333 = vmatprep.subr.mxu1 %v19237_v14 }
 0x24a   : > { %v1414_v61 = vand.u32 4294901760, %v1413_v10  ;;  %v1419_v57 = vsub.f32 %v19305_v34, %v21451_v37  ;;  %v1403_v7 = vand.u32 4294901760, %v1402_v13 }
 0x24b   : > { %v19307_v58 = vpop.permute.xlu1 %12534  ;;  %v19309_v2 = vpop.permute.xlu0 %12532 }
 0x24c   : > { %10032 = vmatmul.mubr.f32.vlgmr.msra.gmra.mrb[0].mxu0 %v19055_v36  ;;  %v1420_v55 = vand.u32 4294901760, %v1419_v57 }
 0x24d   : > { %10041 = vmatpush1.msra.mxu0 %v19124_v41  ;;  %10104 = vmatprep.mubr.f32.mxu0 %v21389_v1  ;;  %v21450_v41 = vand.u32 4294901760, %v19299_v9 }
 0x24e   : > { %10135 = vmatprep.subr.mxu0 %v19275_v45 }
 0x24f   : > { %v19323_v59 = vpop.permute.xlu1 %4229  ;;  %v19325_v28 = vpop.permute.xlu0 %4227  ;;  %1317 = vmatmul.mubr.f32.vlgmr.msra.gmra.mrb[4].mxu1 %v19047_v30  ;;  %v10215_v40 = vsub.f32 %v19299_v9, %v21450_v41  ;;  %v10204_v41 = vsub.f32 %v19320_v29, %v21396_v48 }
 0x250   : > { %1335 = vmatpush1.msra.mxu1 %v19279_v49  ;;  %1398 = vmatprep.mubr.f32.mxu1 %v21389_v1 }
 0x251   : > { %1415 = vmatprep.subr.mxu1 %v1414_v61  ;;  %v10216_v61 = vand.u32 4294901760, %v10215_v40  ;;  %v10205_v40 = vand.u32 4294901760, %v10204_v41  ;;  %v1802_v41 = vsel %vm1801_vm10, %v19157_v17, %v19155_v16 }
 0x253   : > { %v19343_v30 = vpop.permute.xlu1 %13023  ;;  %v19345_v10 = vpop.permute.xlu0 %13021 }
 0x254   : > { %10106 = vmatmul.mubr.f32.vlgmr.msra.gmra.mrb[0].mxu0 %v19055_v36  ;;  %v10221_v36 = vsub.f32 %v19335_v33, %v21397_v63  ;;  %v21463_v63 = vand.u32 4294901760, %v19267_v11 }
 0x255   : > { %10137 = vmatpush1.msra.mxu0 %v19315_v12  ;;  %10200 = vmatprep.mubr.f32.mxu0 %v21454_v62 }
 0x256   : > { %10217 = vmatprep.subr.mxu0 %v10216_v61  ;;  %v10222_v57 = vand.u32 4294901760, %v10221_v36 }
 0x257   : > { %v19356_v1 = vpop.permute.xlu1 %4716  ;;  %v19358_v6 = vpop.permute.xlu0 %4714  ;;  %1404 = vmatmul.mubr.f32.vlgmr.msra.gmra.mrb[4].mxu1 %v1403_v7 }
 0x258   : > { %21452 = vst [vmem:[#allocation12_spill] sm:$0xff] %v19356_v1  ;;  %21453 = vst [vmem:[#allocation13_spill] sm:$0xff] %v19358_v6  ;;  %1421 = vmatpush1.msra.mxu1 %v1420_v55  ;;  %1484 = vmatprep.mubr.f32.mxu1 %v21454_v62 }
 0x259   : > { %1494 = vmatprep.subr.mxu1 %v19267_v11  ;;  %v10608_v11 = vmul.f32 %v10605_v20, %v18794_v51  ;;  %v21470_v20 = vand.u32 4294901760, %v19305_v34 }
 0x25b   : > { %v19366_v13 = vpop.permute.xlu1 %13507  ;;  %v19368_v37 = vpop.permute.xlu0 %13505 }
 0x25c   : > { %21455 = vst [vmem:[#allocation14_spill] sm:$0xff] %v19366_v13  ;;  %21456 = vst [vmem:[#allocation15_spill] sm:$0xff] %v19368_v37  ;;  %10206 = vmatmul.mubr.f32.vlgmr.msra.gmra.mrb[0].mxu0 %v10205_v40 }
 0x25d   : > { %10223 = vmatpush1.msra.mxu0 %v10222_v57  ;;  %10286 = vmatprep.mubr.f32.mxu0 %v21454_v62  ;;  %v1811_v57 = vmul.f32 %v18920_v47, %v1802_v41  ;;  %v1803_v41 = vsel %vm1801_vm10, %v19155_v16, %v19157_v17 }
 0x25e   : > { %10296 = vmatprep.subr.mxu0 %v19299_v9  ;;  %v1810_v16 = vmul.f32 %v18942_v53, %v1803_v41  ;;  %v19442_v41 = vsel %vm830_vm4, 1.0, %v21454_v62 }
 0x25f   : > { %v19370_v48 = vpop.permute.xlu1 %5256  ;;  %v19372_v7 = vpop.permute.xlu0 %5254  ;;  %1486 = vmatmul.mubr.f32.vlgmr.msra.gmra.mrb[4].mxu1 %v19269_v18 }
 0x260   : > { %21457 = vst [vmem:[#allocation16_spill] sm:$0xff] %v19370_v48  ;;  %21458 = vst [vmem:[#allocation17_spill] sm:$0xff] %v19372_v7  ;;  %1497 = vmatpush1.msra.mxu1 %v19305_v34  ;;  %1560 = vmatprep.mubr.f32.mxu1 %v21454_v62 }
 0x261   : > { %1570 = vmatprep.subr.mxu1 %v19237_v14 }
 0x263   : > { %v19380_v55 = vpop.permute.xlu1 %13991  ;;  %v19382_v61 = vpop.permute.xlu0 %13989 }
 0x264   : > { %21459 = vst [vmem:[#allocation18_spill] sm:$0xff] %v19380_v55  ;;  %21460 = vst [vmem:[#allocation19_spill] sm:$0xff] %v19382_v61  ;;  %10288 = vmatmul.mubr.f32.vlgmr.msra.gmra.mrb[0].mxu0 %v19302_v35 }
 0x265   : > { %10299 = vmatpush1.msra.mxu0 %v19335_v33  ;;  %10362 = vmatprep.mubr.f32.mxu0 %v21454_v62 }
 0x266   : > { %10372 = vmatprep.subr.mxu0 %v19275_v45 }
 0x267   : > { %v19390_v36 = vpop.permute.xlu1 %5239  ;;  %v19392_v40 = vpop.permute.xlu0 %5237  ;;  %1563 = vmatmul.mubr.f32.vlgmr.msra.gmra.mrb[4].mxu1 %v19293_v52 }
 0x268   : > { %21461 = vst [vmem:[#allocation20_spill] sm:$0xff] %v19390_v36  ;;  %21462 = vst [vmem:[#allocation21_spill] sm:$0xff] %v19392_v40  ;;  %1572 = vmatpush1.msra.mxu1 %v19279_v49  ;;  %1635 = vmatprep.mubr.f32.mxu1 %v21454_v62  ;;  %v1819_v40 = vsel %vm283_vm1, %v1811_v57, 0  ;;  %v21468_v57 = vand.u32 4294901760, %v19299_v9  ;;  %v21469_v36 = vand.u32 4294901760, %v19293_v52  ;;  %v10606_v52 = vsel %vm2292_vm13, %v19171_v23, %v19173_v15 }
 0x269   : > { %1648 = vmatprep.subr.mxu1 %v21463_v63  ;;  %v808_v63 = vld [vmem:[%s21373_s3 + $0x10] sm:$0xff]  ;;  %v19428_v17 = vand.u32 4294901760, %v1819_v40  ;;  %v10616_v9 = vsel %vm5271_vm9, %v10608_v11, 0  ;;  %v21473_v15 = vand.u32 4294901760, %v19320_v29 }
 0x26a   : > { %v19463_v23 = vand.u32 4294901760, %v10616_v9 }
 0x26b   : > { %v19403_v27 = vpop.permute.xlu1 %14475  ;;  %v19405_v26 = vpop.permute.xlu0 %14473 }
 0x26c   : > { %21464 = vst [vmem:[#allocation22_spill] sm:$0xff] %v19403_v27  ;;  %21465 = vst [vmem:[#allocation23_spill] sm:$0xff] %v19405_v26  ;;  %10365 = vmatmul.mubr.f32.vlgmr.msra.gmra.mrb[0].mxu0 %v19320_v29 }
 0x26d   : > { %10374 = vmatpush1.msra.mxu0 %v19315_v12  ;;  %10437 = vmatprep.mubr.f32.mxu0 %v21454_v62 }
 0x26e   : > { %10450 = vmatprep.subr.mxu0 %v21468_v57 }
 0x26f   : > { %v19422_v27 = vpop.permute.xlu1 %6219  ;;  %v19424_v26 = vpop.permute.xlu0 %6217  ;;  %1639 = vmatmul.mubr.f32.vlgmr.msra.gmra.mrb[4].mxu1 %v21469_v36 }
 0x270   : > { %21466 = vst [vmem:[#allocation24_spill] sm:$0xff] %v19422_v27  ;;  %21467 = vst [vmem:[#allocation25_spill] sm:$0xff] %v19424_v26  ;;  %1652 = vmatpush1.msra.mxu1 %v21470_v20  ;;  %1715 = vmatprep.mubr.f32.mxu1 %v21454_v62  ;;  %v1813_v27 = vsel %vm276_vm0, %v808_v63, 0  ;;  %v1816_v63 = vsel %vm283_vm1, %v1810_v16, 0  ;;  %v5223_v20 = vld [vmem:[%s21374_s4 + $0x2c] sm:$0xf]  ;;  %v10607_v26 = vmul.f32 %v10606_v52, %v19442_v41 }
 0x271   : > { %1724 = vmatprep.subr.mxu1 %v19237_v14  ;;  %v19455_v14 = vsub.f32 %v1819_v40, %v19428_v17  ;;  %v19457_v57 = vand.u32 4294901760, %v1813_v27  ;;  %v19467_v11 = vand.u32 4294901760, %v1816_v63  ;;  %v21474_v16 = vand.u32 4294901760, %v19335_v33 }
 0x272   : > { %v10613_v33 = vsel %vm5271_vm9, %v10607_v26, 0 }
 0x273   : > { %v19449_v34 = vpop.permute.xlu1 %14964  ;;  %v19451_v36 = vpop.permute.xlu0 %14962  ;;  %v21413_v29 = vand.u32 4294901760, %v19455_v14  ;;  %v19481_v52 = vsub.f32 %v1813_v27, %v19457_v57 }
 0x274   : > { %21471 = vst [vmem:[#allocation26_spill] sm:$0xff] %v19449_v34  ;;  %21472 = vst [vmem:[#allocation27_spill] sm:$0xff] %v19451_v36  ;;  %10441 = vmatmul.mubr.f32.vlgmr.msra.gmra.mrb[0].mxu0 %v21473_v15  ;;  %v10610_v36 = vsel %vm5267_vm2, %v5223_v20, 0  ;;  %v19487_v15 = vsub.f32 %v10616_v9, %v19463_v23 }
 0x275   : > { %10454 = vmatpush1.msra.mxu0 %v21474_v16  ;;  %10517 = vmatprep.mubr.f32.mxu0 %v21454_v62  ;;  %v19490_v20 = vand.u32 4294901760, %v10610_v36  ;;  %v21481_v9 = vand.u32 4294901760, %v19481_v52 }
 0x276   : > { %10526 = vmatprep.subr.mxu0 %v19275_v45  ;;  %v19493_v45 = vsub.f32 %v1816_v63, %v19467_v11 }
 0x277   : > { %v19471_v40 = vpop.permute.xlu1 %6706  ;;  %v19473_v34 = vpop.permute.xlu0 %6704  ;;  %1717 = vmatmul.mubr.f32.vlgmr.msra.gmra.mrb[4].mxu1 %v19269_v18 }
 0x278   : > { %21475 = vst [vmem:[#allocation28_spill] sm:$0xff] %v19471_v40  ;;  %21476 = vst [vmem:[#allocation29_spill] sm:$0xff] %v19473_v34  ;;  %1726 = vmatpush1.msra.mxu1 %v19279_v49  ;;  %1789 = vmatprep.mubr.f32.mxu1 %v21454_v62  ;;  %v1902_v49 = vsub.f32 %v19455_v14, %v21413_v29  ;;  %v19503_v34 = vand.u32 4294901760, %v10613_v33  ;;  %v19508_v40 = vsub.f32 %v10610_v36, %v19490_v20 }
 0x279   : > { %1822 = vmatprep.subr.mxu1 %v19428_v17  ;;  %v1891_v36 = vsub.f32 %v19481_v52, %v21481_v9  ;;  %v21485_v9 = vand.u32 4294901760, %v19493_v45 }
 0x27a   : > { %v1903_v26 = vand.u32 4294901760, %v1902_v49 }
 0x27b   : > { %v19495_v16 = vpop.permute.xlu1 %15455  ;;  %v19497_v27 = vpop.permute.xlu0 %15453 }
 0x27c   : > { %21477 = vst [vmem:[#allocation30_spill] sm:$0xff] %v19495_v16  ;;  %21478 = vst [vmem:[#allocation31_spill] sm:$0xff] %v19497_v27  ;;  %10519 = vmatmul.mubr.f32.vlgmr.msra.gmra.mrb[0].mxu0 %v19302_v35  ;;  %v19523_v27 = vsub.f32 %v10613_v33, %v19503_v34  ;;  %v1908_v33 = vsub.f32 %v19493_v45, %v21485_v9 }
 0x27d   : > { %10528 = vmatpush1.msra.mxu0 %v19315_v12  ;;  %10591 = vmatprep.mubr.f32.mxu0 %v21454_v62  ;;  %v21482_v12 = vand.u32 4294901760, %v19487_v15 }
 0x27e   : > { %10619 = vmatprep.subr.mxu0 %v19463_v23  ;;  %v21423_v55 = vand.u32 4294901760, %v19523_v27 }
 0x27f   : > { %v19511_v63 = vpop.permute.xlu1 %7195  ;;  %v19513_v16 = vpop.permute.xlu0 %7193  ;;  %1791 = vmatmul.mubr.f32.vlgmr.msra.gmra.mrb[4].mxu1 %v19269_v18  ;;  %v10699_v29 = vsub.f32 %v19487_v15, %v21482_v12 }
 0x280   : > { %21479 = vst [vmem:[#allocation32_spill] sm:$0xff] %v19511_v63  ;;  %21480 = vst [vmem:[#allocation33_spill] sm:$0xff] %v19513_v16  ;;  %1824 = vmatpush1.msra.mxu1 %v19467_v11  ;;  %1887 = vmatprep.mubr.f32.mxu1 %v21454_v62  ;;  %v21421_v16 = vand.u32 4294901760, %v19508_v40  ;;  %v1892_v63 = vand.u32 4294901760, %v1891_v36 }
 0x281   : > { %1904 = vmatprep.subr.mxu1 %v1903_v26  ;;  %v10700_v26 = vand.u32 4294901760, %v10699_v29 }
 0x282   : > { %v10688_v12 = vsub.f32 %v19508_v40, %v21421_v16  ;;  %v17426_v16 = vsub.f32 1.0, %v18794_v51 }
 0x283   : > { %v19531_v18 = vpop.permute.xlu1 %15944  ;;  %v19533_v49 = vpop.permute.xlu0 %15942 }
 0x284   : > { %21483 = vst [vmem:[#allocation34_spill] sm:$0xff] %v19531_v18  ;;  %21484 = vst [vmem:[#allocation35_spill] sm:$0xff] %v19533_v49  ;;  %10593 = vmatmul.mubr.f32.vlgmr.msra.gmra.mrb[0].mxu0 %v19302_v35  ;;  %v1909_v18 = vand.u32 4294901760, %v1908_v33  ;;  %v10705_v35 = vsub.f32 %v19523_v27, %v21423_v55  ;;  %v10689_v29 = vand.u32 4294901760, %v10688_v12  ;;  %v17425_v33 = vsub.f32 1.0, %v18789_v50 }
 0x285   : > { %10621 = vmatpush1.msra.mxu0 %v19503_v34  ;;  %10684 = vmatprep.mubr.f32.mxu0 %v21454_v62  ;;  %v17444_v12 = vsub.f32 1.0, %v18818_v3 }
 0x286   : > { %10701 = vmatprep.subr.mxu0 %v10700_v26  ;;  %v10706_v26 = vand.u32 4294901760, %v10705_v35 }
 0x287   : > { %v19544_v61 = vpop.permute.xlu1 %7686  ;;  %v19546_v49 = vpop.permute.xlu0 %7684  ;;  %1893 = vmatmul.mubr.f32.vlgmr.msra.gmra.mrb[4].mxu1 %v1892_v63  ;;  %v17446_v7 = vmul.f32 -3.4028235e+38, %v17444_v12 }
 0x288   : > { %21486 = vst [vmem:[#allocation36_spill] sm:$0xff] %v19544_v61  ;;  %21487 = vst [vmem:[#allocation37_spill] sm:$0xff] %v19546_v49  ;;  %1910 = vmatpush1.msra.mxu1 %v1909_v18  ;;  %1973 = vmatprep.mubr.f32.mxu1 %v21454_v62  ;;  %v17427_v18 = vmul.f32 -3.4028235e+38, %v17425_v33  ;;  %v19560_v49 = vmul.f32 -3.4028235e+38, %v17426_v16 }
 0x289   : > { %1983 = vmatprep.subr.mxu1 %v19455_v14  ;;  %v17463_v33 = vsub.f32 1.0, %v18942_v53 }
 0x28b   : > { %v19554_v36 = vpop.permute.xlu1 %16431  ;;  %v19556_v9 = vpop.permute.xlu0 %16429  ;;  %v17465_v12 = vmul.f32 -3.4028235e+38, %v17463_v33 }
 0x28c   : > { %21488 = vst [vmem:[#allocation38_spill] sm:$0xff] %v19554_v36  ;;  %21489 = vst [vmem:[#allocation39_spill] sm:$0xff] %v19556_v9  ;;  %10690 = vmatmul.mubr.f32.vlgmr.msra.gmra.mrb[0].mxu0 %v10689_v29 }
 0x28d   : > { %10707 = vmatpush1.msra.mxu0 %v10706_v26  ;;  %10770 = vmatprep.mubr.f32.mxu0 %v21454_v62 }
 0x28e   : > { %10780 = vmatprep.subr.mxu0 %v19487_v15 }
 0x28f   : > { %v17420_v63 = vpop.permute.xlu1 %17419  ;;  %v17418_v55 = vpop.permute.xlu0 %17417  ;;  %1975 = vmatmul.mubr.f32.vlgmr.msra.gmra.mrb[4].mxu1 %v19457_v57 }
 0x290   : > { %v17421_v36 = vsel %vm825_vm7, %v17418_v55, %v17420_v63  ;;  %v17422_v35 = vsel %vm825_vm7, %v17420_v63, %v17418_v55  ;;  %1986 = vmatpush1.msra.mxu1 %v19493_v45  ;;  %2049 = vmatprep.mubr.f32.mxu1 %v21454_v62  ;;  %v17464_v55 = vsub.f32 1.0, %v18920_v47  ;;  %vm3744_vm7 = vcmp.lt.s32.totalorder %v18766_v43, 240 }
 0x291   : > { %v17423_v16 = vmul.f32 %v17422_v35, %v18789_v50  ;;  %v17424_v29 = vmul.f32 %v17421_v36, %v18794_v51  ;;  %2059 = vmatprep.subr.mxu1 %v19428_v17  ;;  %v2293_v36 = vsel %vm2292_vm13, %v19189_v4, %v19187_v0 }
 0x292   : > { %v19590_v1 = vmul.f32 -3.4028235e+38, %v17464_v55  ;;  %v19609_v55 = vsel %vm21435_vm12, 1.0, %v21454_v62 }
 0x293   : > { %v17429_v26 = vadd.f32 %v17427_v18, %v17423_v16  ;;  %v17430_v9 = vadd.f32 %v19560_v49, %v17424_v29  ;;  %v17439_v61 = vpop.permute.xlu1 %17438  ;;  %v17437_v48 = vpop.permute.xlu0 %17436  ;;  %v18613_v16 = vld [vmem:[%s18711_s8] sm:$0xff]  ;;  %s18575_s8 = smul.u32 48, %s21552_s22 }
 0x294   : > { %v17441_v50 = vsel %vm842_vm8, %v17439_v61, %v17437_v48  ;;  %v17440_v18 = vsel %vm842_vm8, %v17437_v48, %v17439_v61  ;;  %10772 = vmatmul.mubr.f32.vlgmr.msra.gmra.mrb[0].mxu0 %v19490_v20  ;;  %vm19617_vm8 = vmand %vm3744_vm7, %vm21434_vm5  ;;  %vm4718_vm5 = vcmp.lt.s32.totalorder %v18763_v42, 111 }
 0x295   : > { %v17433_v63 = vcombine.low %v17429_v26, %v17430_v9  ;;  %v17442_v35 = vmul.f32 %v17441_v50, %v18818_v3  ;;  %10783 = vmatpush1.msra.mxu0 %v19523_v27  ;;  %10846 = vmatprep.mubr.f32.mxu0 %v21454_v62  ;;  %v17482_v9 = vsub.f32 1.0, %v19442_v41  ;;  %v2298_v3 = vmul.f32 %v2293_v36, %v18794_v51  ;;  %s21123_s19 = scalar_lea.vmem %s21376_s6, %s18575_s8 }
 0x296   : > { %10856 = vmatprep.subr.mxu0 %v19463_v23  ;;  %v21490_v50 = vand.u32 4294901760, %v19455_v14  ;;  %v2294_v14 = vsel %vm2292_vm13, %v19187_v0, %v19189_v4  ;;  %v19643_v0 = vsel %vm19617_vm8, 1.0, %v21454_v62  ;;  %vm4722_vm8 = vmand %vm3744_vm7, %vm21433_vm11  ;;  %vm14970_vm11 = vcmp.lt.s32.totalorder %v18766_v43, 224 }
 0x297   : > { %v17435_v29 = vmax.f32 %v18613_v16, %v17433_v63  ;;  %v17448_v13 = vadd.f32 %v17446_v7, %v17442_v35  ;;  %v17458_v37 = vpop.permute.xlu1 %17457  ;;  %v17456_v6 = vpop.permute.xlu0 %17455  ;;  %2052 = vmatmul.mubr.f32.vlgmr.msra.gmra.mrb[4].mxu1 %v19481_v52  ;;  %v19622_v63 = vmul.f32 -3.4028235e+38, %v17482_v9  ;;  %vm19753_vm12 = vmand %vm14970_vm11, %vm7201_vm15 }
 0x298   : > { %v17459_v48 = vsel %vm1801_vm10, %v17456_v6, %v17458_v37  ;;  %v17460_v7 = vsel %vm1801_vm10, %v17458_v37, %v17456_v6  ;;  %2061 = vmatpush1.msra.mxu1 %v19467_v11  ;;  %2124 = vmatprep.mubr.f32.mxu1 %v21454_v62  ;;  %vm3253_vm10 = vcmp.lt.s32.totalorder %v18763_v42, 127  ;;  %v21493_v6 = vand.u32 4294901760, %v19487_v15 }
 0x299   : > { %v17452_v61 = vcombine.low %v17448_v13, %v17440_v18  ;;  %v17461_v33 = vmul.f32 %v17460_v7, %v18942_v53  ;;  %v17462_v26 = vmul.f32 %v17459_v48, %v18920_v47  ;;  %2137 = vmatprep.subr.mxu1 %v21490_v50  ;;  %v17521_v50 = vsub.f32 1.0, %v19643_v0 }
 0x29b   : > { %v17454_v53 = vmax.f32 %v17435_v29, %v17452_v61  ;;  %v17467_v13 = vadd.f32 %v17465_v12, %v17461_v33  ;;  %v17468_v37 = vadd.f32 %v19590_v1, %v17462_v26  ;;  %v17477_v36 = vpop.permute.xlu1 %17476  ;;  %v17475_v35 = vpop.permute.xlu0 %17474  ;;  %v17501_v29 = vsub.f32 1.0, %v19609_v55  ;;  %v809_v61 = vld [vmem:[%s21373_s3 + $0x18] sm:$0xff] }
 0x29c   : > { %v17478_v18 = vsel %vm2292_vm13, %v17475_v35, %v17477_v36  ;;  %v17479_v16 = vsel %vm2292_vm13, %v17477_v36, %v17475_v35  ;;  %v2306_v12 = vsel %vm283_vm1, %v2298_v3, 0  ;;  %10849 = vmatmul.mubr.f32.vlgmr.msra.gmra.mrb[0].mxu0 %v19508_v40  ;;  %v2300_v35 = vsel %vm276_vm0, %v809_v61, 0 }
 0x29d   : > { %v17471_v48 = vcombine.low %v17467_v13, %v17468_v37  ;;  %v17480_v9 = vmul.f32 %v17479_v16, %v19442_v41  ;;  %v17481_v7 = vmul.f32 %v17478_v18, %v18794_v51  ;;  %10858 = vmatpush1.msra.mxu0 %v19503_v34  ;;  %10921 = vmatprep.mubr.f32.mxu0 %v21454_v62  ;;  %v19652_v37 = vand.u32 4294901760, %v2306_v12 }
 0x29e   : > { %v2297_v13 = vmul.f32 %v19442_v41, %v2294_v14  ;;  %10934 = vmatprep.subr.mxu0 %v21493_v6  ;;  %v19658_v36 = vmul.f32 -3.4028235e+38, %v17501_v29  ;;  %v21495_v16 = vand.u32 4294901760, %v19493_v45  ;;  %vm3740_vm13 = vcmp.lt.s32.totalorder %v18763_v42, 113 }
 0x29f   : > { %v17473_v4 = vmax.f32 %v17454_v53, %v17471_v48  ;;  %v17486_v3 = vadd.f32 %v19622_v63, %v17480_v9  ;;  %v17487_v33 = vadd.f32 %v17481_v7, %v19560_v49  ;;  %v17496_v26 = vpop.permute.xlu1 %17495  ;;  %v21494_v53 = vand.u32 4294901760, %v19481_v52  ;;  %v17494_v49 = vpop.permute.xlu0 %17493 }
 0x2a0   : > { %v17497_v14 = vsel %vm3253_vm10, %v17494_v49, %v17496_v26  ;;  %v17498_v48 = vsel %vm3253_vm10, %v17496_v26, %v17494_v49  ;;  %v11092_v45 = vsel %vm5271_vm9, %v18746_v39, 0  ;;  %v19677_v29 = vsel %vm3744_vm7, 1.0, %v21454_v62 }
 0x2a1   : > { %2128 = vmatmul.mubr.f32.vlgmr.msra.gmra.mrb[4].mxu1 %v21494_v53  ;;  %v17490_v18 = vcombine.low %v17486_v3, %v17487_v33  ;;  %v17499_v52 = vmul.f32 %v17497_v14, %v19609_v55  ;;  %v17500_v15 = vmul.f32 %v17498_v48, %v18920_v47  ;;  %v17523_v61 = vmul.f32 -3.4028235e+38, %v17521_v50 }
 0x2a2   : > { %2141 = vmatpush1.msra.mxu1 %v21495_v16  ;;  %2204 = vmatprep.mubr.f32.mxu1 %v21454_v62  ;;  %v19679_v3 = vand.u32 4294901760, %v2300_v35  ;;  %v2303_v33 = vsel %vm283_vm1, %v2297_v13, 0  ;;  %v19683_v26 = vsub.f32 %v2306_v12, %v19652_v37  ;;  %v17540_v13 = vsub.f32 1.0, %v19677_v29 }
 0x2a3   : > { %2213 = vmatprep.subr.mxu1 %v19428_v17  ;;  %v17492_v9 = vmax.f32 %v17473_v4, %v17490_v18  ;;  %v17515_v7 = vpop.permute.xlu1 %17514  ;;  %v17505_v39 = vadd.f32 %v19658_v36, %v17499_v52  ;;  %v17506_v17 = vadd.f32 %v17500_v15, %v19590_v1  ;;  %v17513_v6 = vpop.permute.xlu0 %17512  ;;  %v5224_v4 = vld [vmem:[%s21374_s4 + $0x30] sm:$0xf]  ;;  %v19699_v53 = vand.u32 4294901760, %v11092_v45 }
 0x2a4   : > { %v17516_v50 = vsel %vm3740_vm13, %v17513_v6, %v17515_v7  ;;  %v17517_v12 = vsel %vm3740_vm13, %v17515_v7, %v17513_v6  ;;  %v21496_v16 = vand.u32 4294901760, %v19508_v40  ;;  %v11089_v14 = vsel %vm5271_vm9, %v18744_v38, 0 }
 0x2a5   : > { %v17509_v49 = vcombine.low %v17505_v39, %v17506_v17  ;;  %v17518_v18 = vmul.f32 %v17516_v50, %v19442_v41  ;;  %v17519_v1 = vmul.f32 %v17517_v12, %v19643_v0  ;;  %v19707_v48 = vand.u32 4294901760, %v2303_v33 }
 0x2a6   : > { %10925 = vmatmul.mubr.f32.vlgmr.msra.gmra.mrb[0].mxu0 %v21496_v16  ;;  %v19710_v52 = vsel %vm4722_vm8, 1.0, %v21454_v62  ;;  %v21497_v15 = vand.u32 4294901760, %v19523_v27  ;;  %v19716_v39 = vsub.f32 %v2300_v35, %v19679_v3  ;;  %v11086_v40 = vsel %vm5267_vm2, %v5224_v4, 0 }
 0x2a7   : > { %v17534_v7 = vpop.permute.xlu1 %17533  ;;  %11001 = vmatprep.mubr.f32.mxu0 %v21454_v62  ;;  %v17524_v17 = vadd.f32 %v17518_v18, %v19622_v63  ;;  %v17525_v6 = vadd.f32 %v17523_v61, %v17519_v1  ;;  %v17511_v38 = vmax.f32 %v17492_v9, %v17509_v49  ;;  %v21437_v50 = vand.u32 4294901760, %v19683_v26  ;;  %v17532_v12 = vpop.permute.xlu0 %17531 }
 0x2a8   : > { %10938 = vmatpush1.msra.mxu0 %v21497_v15  ;;  %vm4231_vm8 = vcmp.lt.s32.totalorder %v18763_v42, 112  ;;  %v17542_v27 = vmul.f32 -3.4028235e+38, %v17540_v13  ;;  %v17559_v35 = vsub.f32 1.0, %v19710_v52  ;;  %v19728_v63 = vsub.f32 %v11092_v45, %v19699_v53 }
 0x2a9   : > { %11010 = vmatprep.subr.mxu0 %v19463_v23  ;;  %2206 = vmatmul.mubr.f32.vlgmr.msra.gmra.mrb[4].mxu1 %v19457_v57  ;;  %v17528_v61 = vcombine.low %v17524_v17, %v17525_v6  ;;  %v17536_v23 = vsel %vm4231_vm8, %v17534_v7, %v17532_v12  ;;  %v19733_v9 = vand.u32 4294901760, %v11086_v40  ;;  %v19736_v4 = vsub.f32 %v2303_v33, %v19707_v48 }
 0x2aa   : > { %2215 = vmatpush1.msra.mxu1 %v19467_v11  ;;  %2278 = vmatprep.mubr.f32.mxu1 %v21454_v62  ;;  %v17538_v11 = vmul.f32 %v17536_v23, %v19677_v29  ;;  %v19740_v49 = vand.u32 4294901760, %v11089_v14  ;;  %v17535_v18 = vsel %vm4231_vm8, %v17532_v12, %v17534_v7  ;;  %v2389_v1 = vsub.f32 %v19683_v26, %v21437_v50 }
 0x2ab   : > { %2309 = vmatprep.subr.mxu1 %v19652_v37  ;;  %v17553_v13 = vpop.permute.xlu1 %17552  ;;  %v17530_v45 = vmax.f32 %v17511_v38, %v17528_v61  ;;  %v21438_v16 = vand.u32 4294901760, %v19716_v39  ;;  %v17561_v15 = vmul.f32 -3.4028235e+38, %v17559_v35  ;;  %v11174_v7 = vand.u32 4294901760, %v19728_v63 }
 0x2ac   : > { %v17544_v33 = vadd.f32 %v17542_v27, %v17538_v11  ;;  %v17551_v17 = vpop.permute.xlu0 %17550  ;;  %v19765_v27 = vsub.f32 %v11086_v40, %v19733_v9  ;;  %v16928_v40 = vsel %vm19753_vm12, 1.0, %v21454_v62  ;;  %vm12049_vm12 = vcmp.lt.s32.totalorder %v18763_v42, 126 }
 0x2ad   : > { %v17554_v38 = vsel %vm4718_vm5, %v17551_v17, %v17553_v13  ;;  %v17555_v12 = vsel %vm4718_vm5, %v17553_v13, %v17551_v17  ;;  %v2394_v13 = vand.u32 4294901760, %v19736_v4 }
 0x2ae   : > { %11003 = vmatmul.mubr.f32.vlgmr.msra.gmra.mrb[0].mxu0 %v19490_v20  ;;  %v17547_v35 = vcombine.low %v17535_v18, %v17544_v33  ;;  %v17556_v61 = vmul.f32 %v17554_v38, %v19609_v55  ;;  %v17557_v23 = vmul.f32 %v17555_v12, %v19710_v52  ;;  %v2390_v18 = vand.u32 4294901760, %v2389_v1 }
 0x2af   : > { %11012 = vmatpush1.msra.mxu0 %v19503_v34  ;;  %v19770_v11 = vpop.permute.xlu1 %16920  ;;  %11075 = vmatprep.mubr.f32.mxu0 %v21454_v62  ;;  %v19780_v33 = vsub.f32 %v11089_v14, %v19740_v49  ;;  %v2378_v34 = vsub.f32 %v19716_v39, %v21438_v16  ;;  %v11175_v14 = vsub.f32 %v19728_v63, %v11174_v7 }
 0x2b0   : > { %11095 = vmatprep.subr.mxu0 %v19699_v53  ;;  %v17549_v17 = vmax.f32 %v17530_v45, %v17547_v35  ;;  %v17562_v38 = vadd.f32 %v17556_v61, %v19658_v36  ;;  %v17563_v12 = vadd.f32 %v17561_v15, %v17557_v23  ;;  %v19787_v50 = vpop.permute.xlu0 %16918  ;;  %v11163_v45 = vand.u32 4294901760, %v19765_v27 }
 0x2b1   : > { %2280 = vmatmul.mubr.f32.vlgmr.msra.gmra.mrb[4].mxu1 %v19457_v57  ;;  %v16924_v57 = vsel %vm16922_vm3, %v19770_v11, %v19787_v50  ;;  %v2395_v15 = vsub.f32 %v19736_v4, %v2394_v13  ;;  %v2379_v6 = vand.u32 4294901760, %v2378_v34  ;;  %v11180_v61 = vand.u32 4294901760, %v19780_v33 }
 0x2b2   : > { %2311 = vmatpush1.msra.mxu1 %v19707_v48  ;;  %2374 = vmatprep.mubr.f32.mxu1 %v21454_v62  ;;  %v17566_v36 = vcombine.low %v17562_v38, %v17563_v12  ;;  %v19798_v1 = vmul.f32 %v16928_v40, %v16924_v57  ;;  %v11176_v23 = vand.u32 4294901760, %v11175_v14  ;;  %v5225_v57 = vld [vmem:[%s21374_s4 + $0x34] sm:$0xf] }
 0x2b3   : > { %2391 = vmatprep.subr.mxu1 %v2390_v18  ;;  %v11164_v18 = vsub.f32 %v19765_v27, %v11163_v45  ;;  %v2396_v16 = vand.u32 4294901760, %v2395_v15  ;;  %v11181_v40 = vsub.f32 %v19780_v33, %v11180_v61 }
 0x2b4   : > { %v19801_v35 = vmax.f32 %v17549_v17, %v17566_v36 }
 0x2b5   : > { %v11165_v34 = vand.u32 4294901760, %v11164_v18  ;;  %v11182_v17 = vand.u32 4294901760, %v11181_v40 }
 0x2b6   : > { %11077 = vmatmul.mubr.f32.vlgmr.msra.gmra.mrb[0].mxu0 %v19490_v20  ;;  %v21500_v20 = vand.u32 4294901760, %v19683_v26 }
 0x2b7   : > { %11097 = vmatpush1.msra.mxu0 %v19740_v49  ;;  %11160 = vmatprep.mubr.f32.mxu0 %v21454_v62 }
 0x2b8   : > { %11177 = vmatprep.subr.mxu0 %v11176_v23 }
 0x2b9   : > { %2380 = vmatmul.mubr.f32.vlgmr.msra.gmra.mrb[4].mxu1 %v2379_v6 }
 0x2ba   : > { %2397 = vmatpush1.msra.mxu1 %v2396_v16  ;;  %2460 = vmatprep.mubr.f32.mxu1 %v21454_v62  ;;  %v2780_v16 = vsel %vm283_vm1, %v18888_v32, 0 }
 0x2bb   : > { %2470 = vmatprep.subr.mxu1 %v19683_v26  ;;  %v21501_v26 = vand.u32 4294901760, %v19716_v39  ;;  %v19843_v12 = vand.u32 4294901760, %v2780_v16 }
 0x2be   : > { %11166 = vmatmul.mubr.f32.vlgmr.msra.gmra.mrb[0].mxu0 %v11165_v34 }
 0x2bf   : > { %11183 = vmatpush1.msra.mxu0 %v11182_v17  ;;  %11246 = vmatprep.mubr.f32.mxu0 %v21454_v62 }
 0x2c0   : > { %11256 = vmatprep.subr.mxu0 %v19728_v63 }
 0x2c1   : > { %2462 = vmatmul.mubr.f32.vlgmr.msra.gmra.mrb[4].mxu1 %v19679_v3 }
 0x2c2   : > { %2473 = vmatpush1.msra.mxu1 %v19736_v4  ;;  %2536 = vmatprep.mubr.f32.mxu1 %v21454_v62  ;;  %v11566_v4 = vsel %vm3253_vm10, %v19202_v56, %v19204_v19 }
 0x2c3   : > { %2546 = vmatprep.subr.mxu1 %v19652_v37  ;;  %v11568_v38 = vmul.f32 %v11566_v4, %v18920_v47 }
 0x2c5   : > { %v11576_v63 = vsel %vm5271_vm9, %v11568_v38, 0 }
 0x2c6   : > { %11248 = vmatmul.mubr.f32.vlgmr.msra.gmra.mrb[0].mxu0 %v19733_v9  ;;  %v19864_v14 = vand.u32 4294901760, %v11576_v63 }
 0x2c7   : > { %11259 = vmatpush1.msra.mxu0 %v19780_v33  ;;  %11322 = vmatprep.mubr.f32.mxu0 %v21454_v62  ;;  %v810_v33 = vld [vmem:[%s21373_s3 + $0x20] sm:$0xff] }
 0x2c8   : > { %11332 = vmatprep.subr.mxu0 %v19699_v53  ;;  %v2776_v32 = vsel %vm276_vm0, %v810_v33, 0  ;;  %v19880_v15 = vsub.f32 %v11576_v63, %v19864_v14 }
 0x2c9   : > { %2539 = vmatmul.mubr.f32.vlgmr.msra.gmra.mrb[4].mxu1 %v19716_v39  ;;  %v2778_v39 = vsel %vm283_vm1, %v18884_v31, 0  ;;  %v11570_v31 = vsel %vm5267_vm2, %v5225_v57, 0 }
 0x2ca   : > { %2548 = vmatpush1.msra.mxu1 %v19707_v48  ;;  %2611 = vmatprep.mubr.f32.mxu1 %v21454_v62  ;;  %v19883_v6 = vand.u32 4294901760, %v11570_v31 }
 0x2cb   : > { %2624 = vmatprep.subr.mxu1 %v21500_v20 }
 0x2cc   : > { %v19895_v40 = vsub.f32 %v11570_v31, %v19883_v6  ;;  %v3254_v31 = vsel %vm3253_vm10, %v19234_v25, %v19232_v24 }
 0x2ce   : > { %11325 = vmatmul.mubr.f32.vlgmr.msra.gmra.mrb[0].mxu0 %v19765_v27  ;;  %v11565_v27 = vsel %vm3253_vm10, %v19204_v19, %v19202_v56  ;;  %v19867_v56 = vand.u32 4294901760, %v2778_v39 }
 0x2cf   : > { %11334 = vmatpush1.msra.mxu0 %v19740_v49  ;;  %11397 = vmatprep.mubr.f32.mxu0 %v21454_v62 }
 0x2d0   : > { %11410 = vmatprep.subr.mxu0 %v11174_v7  ;;  %v19856_v7 = vsub.f32 %v2780_v16, %v19843_v12  ;;  %v11647_v16 = vand.u32 4294901760, %v19895_v40 }
 0x2d1   : > { %2615 = vmatmul.mubr.f32.vlgmr.msra.gmra.mrb[4].mxu1 %v21501_v26 }
 0x2d2   : > { %2628 = vmatpush1.msra.mxu1 %v2394_v13  ;;  %2691 = vmatprep.mubr.f32.mxu1 %v21454_v62  ;;  %v19858_v13 = vand.u32 4294901760, %v2776_v32  ;;  %v2862_v19 = vand.u32 4294901760, %v19856_v7 }
 0x2d3   : > { %2700 = vmatprep.subr.mxu1 %v19652_v37  ;;  %v11567_v37 = vmul.f32 %v11565_v27, %v19609_v55 }
 0x2d4   : > { %v19874_v36 = vsub.f32 %v2776_v32, %v19858_v13  ;;  %v11648_v32 = vsub.f32 %v19895_v40, %v11647_v16 }
 0x2d6   : > { %11401 = vmatmul.mubr.f32.vlgmr.msra.gmra.mrb[0].mxu0 %v11163_v45  ;;  %v11573_v45 = vsel %vm5271_vm9, %v11567_v37, 0  ;;  %v2851_v23 = vand.u32 4294901760, %v19874_v36  ;;  %v12051_v37 = vsel %vm12049_vm12, %v19260_v21, %v19262_v54 }
 0x2d7   : > { %11414 = vmatpush1.msra.mxu0 %v11180_v61  ;;  %11477 = vmatprep.mubr.f32.mxu0 %v21454_v62  ;;  %v2863_v61 = vsub.f32 %v19856_v7, %v2862_v19  ;;  %v19890_v18 = vand.u32 4294901760, %v11573_v45 }
 0x2d8   : > { %11486 = vmatprep.subr.mxu0 %v19699_v53  ;;  %v19886_v53 = vsub.f32 %v2778_v39, %v19867_v56  ;;  %v2852_v20 = vsub.f32 %v19874_v36, %v2851_v23  ;;  %v11649_v39 = vand.u32 4294901760, %v11648_v32 }
 0x2d9   : > { %2693 = vmatmul.mubr.f32.vlgmr.msra.gmra.mrb[4].mxu1 %v19679_v3  ;;  %v2864_v17 = vand.u32 4294901760, %v2863_v61  ;;  %v19906_v4 = vsub.f32 %v11573_v45, %v19890_v18 }
 0x2da   : > { %2702 = vmatpush1.msra.mxu1 %v19707_v48  ;;  %2765 = vmatprep.mubr.f32.mxu1 %v21454_v62  ;;  %v11658_v48 = vand.u32 4294901760, %v19880_v15  ;;  %v2868_v34 = vand.u32 4294901760, %v19886_v53 }
 0x2db   : > { %2783 = vmatprep.subr.mxu1 %v19843_v12  ;;  %v11664_v38 = vand.u32 4294901760, %v19906_v4 }
 0x2dc   : > { %v2869_v33 = vsub.f32 %v19886_v53, %v2868_v34 }
 0x2dd   : > { %v11665_v63 = vsub.f32 %v19906_v4, %v11664_v38 }
 0x2de   : > { %11479 = vmatmul.mubr.f32.vlgmr.msra.gmra.mrb[0].mxu0 %v19733_v9  ;;  %v2870_v27 = vand.u32 4294901760, %v2869_v33 }
 0x2df   : > { %11488 = vmatpush1.msra.mxu0 %v19740_v49  ;;  %11551 = vmatprep.mubr.f32.mxu0 %v21454_v62  ;;  %v11659_v49 = vsub.f32 %v19880_v15, %v11658_v48  ;;  %v11666_v57 = vand.u32 4294901760, %v11665_v63 }
 0x2e0   : > { %11579 = vmatprep.subr.mxu0 %v19864_v14 }
 0x2e1   : > { %2767 = vmatmul.mubr.f32.vlgmr.msra.gmra.mrb[4].mxu1 %v19679_v3  ;;  %v2853_v3 = vand.u32 4294901760, %v2852_v20  ;;  %v11660_v26 = vand.u32 4294901760, %v11659_v49 }
 0x2e2   : > { %2785 = vmatpush1.msra.mxu1 %v19867_v56  ;;  %2848 = vmatprep.mubr.f32.mxu1 %v21454_v62 }
 0x2e3   : > { %2865 = vmatprep.subr.mxu1 %v2864_v17 }
 0x2e6   : > { %11553 = vmatmul.mubr.f32.vlgmr.msra.gmra.mrb[0].mxu0 %v19733_v9  ;;  %v3255_v9 = vsel %vm3253_vm10, %v19232_v24, %v19234_v25  ;;  %v19967_v25 = vsel %vm7200_vm14, 1.0, %v21454_v62  ;;  %vm12536_vm10 = vcmp.lt.s32.totalorder %v18763_v42, 114 }
 0x2e7   : > { %11581 = vmatpush1.msra.mxu0 %v19890_v18  ;;  %11644 = vmatprep.mubr.f32.mxu0 %v21454_v62 }
 0x2e8   : > { %11661 = vmatprep.subr.mxu0 %v11660_v26 }
 0x2e9   : > { %2854 = vmatmul.mubr.f32.vlgmr.msra.gmra.mrb[4].mxu1 %v2853_v3 }
 0x2ea   : > { %2871 = vmatpush1.msra.mxu1 %v2870_v27  ;;  %2934 = vmatprep.mubr.f32.mxu1 %v21454_v62 }
 0x2eb   : > { %2944 = vmatprep.subr.mxu1 %v19856_v7  ;;  %v3259_v7 = vmul.f32 %v3255_v9, %v18920_v47 }
 0x2ed   : > { %v3267_v45 = vsel %vm283_vm1, %v3259_v7, 0 }
 0x2ee   : > { %11650 = vmatmul.mubr.f32.vlgmr.msra.gmra.mrb[0].mxu0 %v11649_v39  ;;  %v19957_v61 = vand.u32 4294901760, %v3267_v45 }
 0x2ef   : > { %11667 = vmatpush1.msra.mxu0 %v11666_v57  ;;  %11730 = vmatprep.mubr.f32.mxu0 %v21454_v62 }
 0x2f0   : > { %11740 = vmatprep.subr.mxu0 %v19880_v15  ;;  %v811_v15 = vld [vmem:[%s21373_s3 + $0x28] sm:$0xff] }
 0x2f1   : > { %2936 = vmatmul.mubr.f32.vlgmr.msra.gmra.mrb[4].mxu1 %v19858_v13  ;;  %v3261_v24 = vsel %vm276_vm0, %v811_v15, 0 }
 0x2f2   : > { %2947 = vmatpush1.msra.mxu1 %v19886_v53  ;;  %3010 = vmatprep.mubr.f32.mxu1 %v21454_v62  ;;  %v3258_v53 = vmul.f32 %v19609_v55, %v3254_v31 }
 0x2f3   : > { %3020 = vmatprep.subr.mxu1 %v19843_v12 }
 0x2f6   : > { %11732 = vmatmul.mubr.f32.vlgmr.msra.gmra.mrb[0].mxu0 %v19883_v6 }
 0x2f7   : > { %11743 = vmatpush1.msra.mxu0 %v19906_v4  ;;  %11806 = vmatprep.mubr.f32.mxu0 %v21454_v62 }
 0x2f8   : > { %11816 = vmatprep.subr.mxu0 %v19864_v14 }
 0x2f9   : > { %3013 = vmatmul.mubr.f32.vlgmr.msra.gmra.mrb[4].mxu1 %v19874_v36 }
 0x2fa   : > { %3022 = vmatpush1.msra.mxu1 %v19867_v56  ;;  %3085 = vmatprep.mubr.f32.mxu1 %v21454_v62 }
 0x2fb   : > { %3098 = vmatprep.subr.mxu1 %v2862_v19  ;;  %v12055_v19 = vmul.f32 %v12051_v37, %v19093_v60 }
 0x2fd   : > { %v12063_v36 = vsel %vm5271_vm9, %v12055_v19, 0 }
 0x2fe   : > { %11809 = vmatmul.mubr.f32.vlgmr.msra.gmra.mrb[0].mxu0 %v19895_v40  ;;  %v19976_v40 = vsub.f32 %v3267_v45, %v19957_v61  ;;  %v19984_v20 = vand.u32 4294901760, %v12063_v36 }
 0x2ff   : > { %11818 = vmatpush1.msra.mxu0 %v19890_v18  ;;  %11881 = vmatprep.mubr.f32.mxu0 %v21454_v62 }
 0x300   : > { %11894 = vmatprep.subr.mxu0 %v11658_v48  ;;  %v12050_v48 = vsel %vm12049_vm12, %v19262_v54, %v19260_v21  ;;  %v3349_v54 = vand.u32 4294901760, %v19976_v40  ;;  %v20000_v33 = vsub.f32 %v12063_v36, %v19984_v20  ;;  %vm12540_vm12 = vmand %vm3744_vm7, %vm5247_vm6 }
 0x301   : > { %3089 = vmatmul.mubr.f32.vlgmr.msra.gmra.mrb[4].mxu1 %v2851_v23  ;;  %v3264_v23 = vsel %vm283_vm1, %v3258_v53, 0  ;;  %v12054_v17 = vmul.f32 %v19967_v25, %v12050_v48 }
 0x302   : > { %3102 = vmatpush1.msra.mxu1 %v2868_v34  ;;  %3165 = vmatprep.mubr.f32.mxu1 %v21454_v62  ;;  %v19978_v34 = vand.u32 4294901760, %v3261_v24  ;;  %v19986_v4 = vand.u32 4294901760, %v3264_v23  ;;  %v12145_v32 = vand.u32 4294901760, %v20000_v33 }
 0x303   : > { %3174 = vmatprep.subr.mxu1 %v19843_v12  ;;  %v5226_v12 = vld [vmem:[%s21374_s4 + $0x38] sm:$0xf] }
 0x304   : > { %v12057_v21 = vsel %vm5267_vm2, %v5226_v12, 0  ;;  %v19994_v49 = vsub.f32 %v3261_v24, %v19978_v34  ;;  %v12538_v12 = vsel %vm12536_vm10, %v19307_v58, %v19309_v2 }
 0x305   : > { %v20003_v3 = vand.u32 4294901760, %v12057_v21 }
 0x306   : > { %11885 = vmatmul.mubr.f32.vlgmr.msra.gmra.mrb[0].mxu0 %v11647_v16  ;;  %v12060_v16 = vsel %vm5271_vm9, %v12054_v17, 0  ;;  %v3741_v17 = vsel %vm3740_vm13, %v19285_v5, %v19283_v22 }
 0x307   : > { %11898 = vmatpush1.msra.mxu0 %v11664_v38  ;;  %11961 = vmatprep.mubr.f32.mxu0 %v21454_v62  ;;  %v3350_v38 = vsub.f32 %v19976_v40, %v3349_v54  ;;  %v20012_v26 = vand.u32 4294901760, %v12060_v16  ;;  %v20017_v27 = vsub.f32 %v12057_v21, %v20003_v3 }
 0x308   : > { %11970 = vmatprep.subr.mxu0 %v19864_v14  ;;  %v20006_v14 = vsub.f32 %v3264_v23, %v19986_v4  ;;  %v12542_v23 = vsel %vm12540_vm12, 1.0, %v21454_v62 }
 0x309   : > { %3167 = vmatmul.mubr.f32.vlgmr.msra.gmra.mrb[4].mxu1 %v19858_v13  ;;  %v3351_v39 = vand.u32 4294901760, %v3350_v38  ;;  %v20028_v9 = vsub.f32 %v12060_v16, %v20012_v26  ;;  %v12134_v7 = vand.u32 4294901760, %v20017_v27  ;;  %v3749_v16 = vmul.f32 %v3741_v17, %v19442_v41 }
 0x30a   : > { %3176 = vmatpush1.msra.mxu1 %v19867_v56  ;;  %3239 = vmatprep.mubr.f32.mxu1 %v21454_v62  ;;  %v3338_v56 = vand.u32 4294901760, %v19994_v49  ;;  %v3355_v63 = vand.u32 4294901760, %v20006_v14 }
 0x30b   : > { %3270 = vmatprep.subr.mxu1 %v19957_v61  ;;  %v12151_v31 = vand.u32 4294901760, %v20028_v9  ;;  %v12135_v15 = vsub.f32 %v20017_v27, %v12134_v7  ;;  %v3755_v38 = vsel %vm283_vm1, %v3749_v16, 0  ;;  %v13026_v16 = vsel %vm3740_vm13, %v19343_v30, %v19345_v10 }
 0x30c   : > { %v3339_v57 = vsub.f32 %v19994_v49, %v3338_v56  ;;  %v3356_v37 = vsub.f32 %v20006_v14, %v3355_v63 }
 0x30d   : > { %v12152_v53 = vsub.f32 %v20028_v9, %v12151_v31  ;;  %v12136_v24 = vand.u32 4294901760, %v12135_v15 }
 0x30e   : > { %11963 = vmatmul.mubr.f32.vlgmr.msra.gmra.mrb[0].mxu0 %v19883_v6  ;;  %v3357_v19 = vand.u32 4294901760, %v3356_v37 }
 0x30f   : > { %11972 = vmatpush1.msra.mxu0 %v19890_v18  ;;  %12035 = vmatprep.mubr.f32.mxu0 %v21454_v62  ;;  %v12146_v18 = vsub.f32 %v20000_v33, %v12145_v32  ;;  %v12153_v48 = vand.u32 4294901760, %v12152_v53 }
 0x310   : > { %12066 = vmatprep.subr.mxu0 %v19984_v20 }
 0x311   : > { %3241 = vmatmul.mubr.f32.vlgmr.msra.gmra.mrb[4].mxu1 %v19858_v13  ;;  %v3340_v13 = vand.u32 4294901760, %v3339_v57  ;;  %v12147_v45 = vand.u32 4294901760, %v12146_v18 }
 0x312   : > { %3272 = vmatpush1.msra.mxu1 %v19986_v4  ;;  %3335 = vmatprep.mubr.f32.mxu1 %v21454_v62 }
 0x313   : > { %3352 = vmatprep.subr.mxu1 %v3351_v39 }
 0x316   : > { %12037 = vmatmul.mubr.f32.vlgmr.msra.gmra.mrb[0].mxu0 %v19883_v6  ;;  %v3742_v6 = vsel %vm3740_vm13, %v19283_v22, %v19285_v5  ;;  %v12537_v5 = vsel %vm12536_vm10, %v19309_v2, %v19307_v58 }
 0x317   : > { %12068 = vmatpush1.msra.mxu0 %v20012_v26  ;;  %12131 = vmatprep.mubr.f32.mxu0 %v21454_v62  ;;  %v3750_v36 = vmul.f32 %v19643_v0, %v3742_v6 }
 0x318   : > { %12148 = vmatprep.subr.mxu0 %v12147_v45 }
 0x319   : > { %3341 = vmatmul.mubr.f32.vlgmr.msra.gmra.mrb[4].mxu1 %v3340_v13  ;;  %v3758_v21 = vsel %vm283_vm1, %v3750_v36, 0 }
 0x31a   : > { %3358 = vmatpush1.msra.mxu1 %v3357_v19  ;;  %3421 = vmatprep.mubr.f32.mxu1 %v21454_v62 }
 0x31b   : > { %3431 = vmatprep.subr.mxu1 %v19976_v40  ;;  %v812_v40 = vld [vmem:[%s21373_s3 + $0x30] sm:$0xff] }
 0x31c   : > { %v3752_v22 = vsel %vm276_vm0, %v812_v40, 0 }
 0x31e   : > { %12137 = vmatmul.mubr.f32.vlgmr.msra.gmra.mrb[0].mxu0 %v12136_v24 }
 0x31f   : > { %12154 = vmatpush1.msra.mxu0 %v12153_v48  ;;  %12217 = vmatprep.mubr.f32.mxu0 %v21454_v62 }
 0x320   : > { %12227 = vmatprep.subr.mxu0 %v20000_v33  ;;  %v20085_v33 = vand.u32 4294901760, %v3758_v21 }
 0x321   : > { %3423 = vmatmul.mubr.f32.vlgmr.msra.gmra.mrb[4].mxu1 %v19978_v34 }
 0x322   : > { %3434 = vmatpush1.msra.mxu1 %v20006_v14  ;;  %3497 = vmatprep.mubr.f32.mxu1 %v21454_v62 }
 0x323   : > { %3507 = vmatprep.subr.mxu1 %v19957_v61 }
 0x326   : > { %12219 = vmatmul.mubr.f32.vlgmr.msra.gmra.mrb[0].mxu0 %v20003_v3 }
 0x327   : > { %12230 = vmatpush1.msra.mxu0 %v20028_v9  ;;  %12293 = vmatprep.mubr.f32.mxu0 %v21454_v62 }
 0x328   : > { %12303 = vmatprep.subr.mxu0 %v19984_v20 }
 0x329   : > { %3500 = vmatmul.mubr.f32.vlgmr.msra.gmra.mrb[4].mxu1 %v19994_v49  ;;  %v20101_v49 = vand.u32 4294901760, %v3752_v22 }
 0x32a   : > { %3509 = vmatpush1.msra.mxu1 %v19986_v4  ;;  %3572 = vmatprep.mubr.f32.mxu1 %v21454_v62 }
 0x32b   : > { %3585 = vmatprep.subr.mxu1 %v3349_v54  ;;  %v12544_v54 = vmul.f32 %v12542_v23, %v12538_v12  ;;  %v20117_v39 = vsub.f32 %v3752_v22, %v20101_v49 }
 0x32d   : > { %v12552_v14 = vsel %vm5271_vm9, %v12544_v54, 0  ;;  %v3829_v37 = vand.u32 4294901760, %v20117_v39 }
 0x32e   : > { %12296 = vmatmul.mubr.f32.vlgmr.msra.gmra.mrb[0].mxu0 %v20017_v27  ;;  %v20107_v27 = vand.u32 4294901760, %v12552_v14 }
 0x32f   : > { %12305 = vmatpush1.msra.mxu0 %v20012_v26  ;;  %12368 = vmatprep.mubr.f32.mxu0 %v21454_v62  ;;  %v3830_v19 = vsub.f32 %v20117_v39, %v3829_v37 }
 0x330   : > { %12381 = vmatprep.subr.mxu0 %v12145_v32  ;;  %v20099_v32 = vsub.f32 %v3758_v21, %v20085_v33  ;;  %v20123_v9 = vsub.f32 %v12552_v14, %v20107_v27  ;;  %v13028_v14 = vmul.f32 %v13026_v16, %v19643_v0  ;;  %v13025_v0 = vsel %vm3740_vm13, %v19345_v10, %v19343_v30 }
 0x331   : > { %3576 = vmatmul.mubr.f32.vlgmr.msra.gmra.mrb[4].mxu1 %v3338_v56  ;;  %v5227_v56 = vld [vmem:[%s21374_s4 + $0x3c] sm:$0xf]  ;;  %v3831_v6 = vand.u32 4294901760, %v3830_v19  ;;  %vm5244_vm13 = vcmp.ge.s32.totalorder %v18763_v42, 32 }
 0x332   : > { %3589 = vmatpush1.msra.mxu1 %v3355_v63  ;;  %3652 = vmatprep.mubr.f32.mxu1 %v21454_v62  ;;  %v20109_v63 = vand.u32 4294901760, %v3755_v38  ;;  %v12546_v58 = vsel %vm5267_vm2, %v5227_v56, 0  ;;  %v3840_v2 = vand.u32 4294901760, %v20099_v32  ;;  %vm5261_vm10 = vmand %vm5244_vm13, %vm830_vm4  ;;  %vm5241_vm4 = vcmp.lt.s32.totalorder %v18763_v42, 34 }
 0x333   : > { %3661 = vmatprep.subr.mxu1 %v19957_v61  ;;  %v12543_v61 = vmul.f32 %v12537_v5, %v19253_v8  ;;  %v20126_v18 = vand.u32 4294901760, %v12546_v58  ;;  %v813_v5 = vld [vmem:[%s21373_s3 + $0x38] sm:$0xff] }
 0x334   : > { %v4239_v56 = vsel %vm276_vm0, %v813_v5, 0  ;;  %v21505_v5 = vld [vmem:[#allocation14_spill] sm:$0xff] }
 0x335   : > { %v12549_v57 = vsel %vm5271_vm9, %v12543_v61, 0  ;;  %v13036_v61 = vsel %vm5271_vm9, %v13028_v14, 0 }
 0x336   : > { %12372 = vmatmul.mubr.f32.vlgmr.msra.gmra.mrb[0].mxu0 %v12134_v7  ;;  %v3841_v7 = vsub.f32 %v20099_v32, %v3840_v2  ;;  %v20133_v13 = vand.u32 4294901760, %v12549_v57 }
 0x337   : > { %12385 = vmatpush1.msra.mxu0 %v12151_v31  ;;  %12448 = vmatprep.mubr.f32.mxu0 %v21454_v62  ;;  %v20138_v31 = vsub.f32 %v12546_v58, %v20126_v18 }
 0x338   : > { %12457 = vmatprep.subr.mxu0 %v19984_v20  ;;  %v20129_v20 = vsub.f32 %v3755_v38, %v20109_v63  ;;  %v3842_v15 = vand.u32 4294901760, %v3841_v7  ;;  %v20147_v53 = vsub.f32 %v12549_v57, %v20133_v13 }
 0x339   : > { %3654 = vmatmul.mubr.f32.vlgmr.msra.gmra.mrb[4].mxu1 %v19978_v34  ;;  %v12623_v24 = vand.u32 4294901760, %v20138_v31 }
 0x33a   : > { %3663 = vmatpush1.msra.mxu1 %v19986_v4  ;;  %3726 = vmatprep.mubr.f32.mxu1 %v21454_v62  ;;  %v12634_v4 = vand.u32 4294901760, %v20123_v9  ;;  %v3846_v45 = vand.u32 4294901760, %v20129_v20 }
 0x33b   : > { %3761 = vmatprep.subr.mxu1 %v20085_v33  ;;  %v12624_v23 = vsub.f32 %v20138_v31, %v12623_v24 }
 0x33c   : > { %v3847_v48 = vsub.f32 %v20129_v20, %v3846_v45 }
 0x33d   : > { %v12625_v21 = vand.u32 4294901760, %v12624_v23 }
 0x33e   : > { %12450 = vmatmul.mubr.f32.vlgmr.msra.gmra.mrb[0].mxu0 %v20003_v3  ;;  %v3848_v12 = vand.u32 4294901760, %v3847_v48 }
 0x33f   : > { %12459 = vmatpush1.msra.mxu0 %v20012_v26  ;;  %12522 = vmatprep.mubr.f32.mxu0 %v21454_v62  ;;  %v12635_v26 = vsub.f32 %v20123_v9, %v12634_v4 }
 0x340   : > { %12555 = vmatprep.subr.mxu0 %v20107_v27 }
 0x341   : > { %3728 = vmatmul.mubr.f32.vlgmr.msra.gmra.mrb[4].mxu1 %v19978_v34  ;;  %v12640_v34 = vand.u32 4294901760, %v20147_v53  ;;  %v12636_v36 = vand.u32 4294901760, %v12635_v26 }
 0x342   : > { %3763 = vmatpush1.msra.mxu1 %v20109_v63  ;;  %3826 = vmatprep.mubr.f32.mxu1 %v21454_v62 }
 0x343   : > { %3843 = vmatprep.subr.mxu1 %v3842_v15  ;;  %v12641_v17 = vsub.f32 %v20147_v53, %v12640_v34 }
 0x345   : > { %v12642_v40 = vand.u32 4294901760, %v12641_v17 }
 0x346   : > { %12524 = vmatmul.mubr.f32.vlgmr.msra.gmra.mrb[0].mxu0 %v20003_v3  ;;  %v4233_v3 = vsel %vm4231_vm8, %v19323_v59, %v19325_v28 }
 0x347   : > { %12557 = vmatpush1.msra.mxu0 %v20133_v13  ;;  %12620 = vmatprep.mubr.f32.mxu0 %v21454_v62  ;;  %v4237_v54 = vmul.f32 %v19677_v29, %v4233_v3  ;;  %v21503_v3 = vld [vmem:[#allocation12_spill] sm:$0xff] }
 0x348   : > { %12637 = vmatprep.subr.mxu0 %v12636_v36 }
 0x349   : > { %3832 = vmatmul.mubr.f32.vlgmr.msra.gmra.mrb[4].mxu1 %v3831_v6  ;;  %v4245_v22 = vsel %vm283_vm1, %v4237_v54, 0 }
 0x34a   : > { %3849 = vmatpush1.msra.mxu1 %v3848_v12  ;;  %3912 = vmatprep.mubr.f32.mxu1 %v21454_v62  ;;  %v20192_v38 = vand.u32 4294901760, %v4245_v22 }
 0x34b   : > { %3922 = vmatprep.subr.mxu1 %v20099_v32  ;;  %v4232_v32 = vsel %vm4231_vm8, %v19325_v28, %v19323_v59  ;;  %v20210_v28 = vand.u32 4294901760, %v4239_v56  ;;  %v5228_v59 = vld [vmem:[%s21374_s4 + $0x40] sm:$0xf] }
 0x34c   : > { %v4242_v58 = vsel %vm283_vm1, %v4232_v32, 0  ;;  %v13030_v30 = vsel %vm5267_vm2, %v5228_v59, 0 }
 0x34d   : > { %v20218_v57 = vand.u32 4294901760, %v4242_v58 }
 0x34e   : > { %12626 = vmatmul.mubr.f32.vlgmr.msra.gmra.mrb[0].mxu0 %v12625_v21 }
 0x34f   : > { %12643 = vmatpush1.msra.mxu0 %v12642_v40  ;;  %12706 = vmatprep.mubr.f32.mxu0 %v21454_v62 }
 0x350   : > { %12716 = vmatprep.subr.mxu0 %v20123_v9  ;;  %v20226_v9 = vsub.f32 %v4239_v56, %v20210_v28 }
 0x351   : > { %3914 = vmatmul.mubr.f32.vlgmr.msra.gmra.mrb[4].mxu1 %v20101_v49 }
 0x352   : > { %3925 = vmatpush1.msra.mxu1 %v20129_v20  ;;  %3988 = vmatprep.mubr.f32.mxu1 %v21454_v62 }
 0x353   : > { %3998 = vmatprep.subr.mxu1 %v20085_v33 }
 0x356   : > { %12708 = vmatmul.mubr.f32.vlgmr.msra.gmra.mrb[0].mxu0 %v20126_v18 }
 0x357   : > { %12719 = vmatpush1.msra.mxu0 %v20147_v53  ;;  %12782 = vmatprep.mubr.f32.mxu0 %v21454_v62 }
 0x358   : > { %12792 = vmatprep.subr.mxu0 %v20107_v27 }
 0x359   : > { %3991 = vmatmul.mubr.f32.vlgmr.msra.gmra.mrb[4].mxu1 %v20117_v39  ;;  %v20216_v39 = vand.u32 4294901760, %v13036_v61 }
 0x35a   : > { %4000 = vmatpush1.msra.mxu1 %v20109_v63  ;;  %4063 = vmatprep.mubr.f32.mxu1 %v21454_v62 }
 0x35b   : > { %4076 = vmatprep.subr.mxu1 %v3840_v2  ;;  %v20208_v2 = vsub.f32 %v4245_v22, %v20192_v38  ;;  %v20232_v7 = vsub.f32 %v13036_v61, %v20216_v39  ;;  %v21504_v22 = vld [vmem:[#allocation15_spill] sm:$0xff] }
 0x35c   : > { %v13510_v14 = vsel %vm4231_vm8, %v21505_v5, %v21504_v22 }
 0x35d   : > { %v4327_v10 = vand.u32 4294901760, %v20208_v2  ;;  %v13512_v61 = vmul.f32 %v13510_v14, %v19677_v29 }
 0x35e   : > { %12785 = vmatmul.mubr.f32.vlgmr.msra.gmra.mrb[0].mxu0 %v20138_v31  ;;  %v4316_v31 = vand.u32 4294901760, %v20226_v9 }
 0x35f   : > { %12794 = vmatpush1.msra.mxu0 %v20133_v13  ;;  %12857 = vmatprep.mubr.f32.mxu0 %v21454_v62  ;;  %v13520_v29 = vsel %vm5271_vm9, %v13512_v61, 0  ;;  %v21508_v61 = vld [vmem:[#allocation19_spill] sm:$0xff] }
 0x360   : > { %12870 = vmatprep.subr.mxu0 %v12634_v4  ;;  %v4328_v4 = vsub.f32 %v20208_v2, %v4327_v10  ;;  %v4317_v26 = vsub.f32 %v20226_v9, %v4316_v31 }
 0x361   : > { %4067 = vmatmul.mubr.f32.vlgmr.msra.gmra.mrb[4].mxu1 %v3829_v37  ;;  %v20235_v37 = vand.u32 4294901760, %v13030_v30 }
 0x362   : > { %4080 = vmatpush1.msra.mxu1 %v3846_v45  ;;  %4143 = vmatprep.mubr.f32.mxu1 %v21454_v62  ;;  %v4329_v53 = vand.u32 4294901760, %v4328_v4 }
 0x363   : > { %4152 = vmatprep.subr.mxu1 %v20085_v33  ;;  %v13027_v33 = vmul.f32 %v13025_v0, %v19442_v41  ;;  %v20247_v15 = vsub.f32 %v13030_v30, %v20235_v37  ;;  %v814_v0 = vld [vmem:[%s21373_s3 + $0x40] sm:$0xff] }
 0x364   : > { %v4728_v59 = vsel %vm276_vm0, %v814_v0, 0 }
 0x365   : > { %v13033_v20 = vsel %vm5271_vm9, %v13027_v33, 0  ;;  %v13107_v48 = vand.u32 4294901760, %v20247_v15 }
 0x366   : > { %12861 = vmatmul.mubr.f32.vlgmr.msra.gmra.mrb[0].mxu0 %v12623_v24  ;;  %v20242_v45 = vand.u32 4294901760, %v13033_v20 }
 0x367   : > { %12874 = vmatpush1.msra.mxu0 %v12640_v34  ;;  %12937 = vmatprep.mubr.f32.mxu0 %v21454_v62  ;;  %v13108_v23 = vsub.f32 %v20247_v15, %v13107_v48 }
 0x368   : > { %12946 = vmatprep.subr.mxu0 %v20107_v27  ;;  %v20238_v27 = vsub.f32 %v4242_v58, %v20218_v57  ;;  %v20258_v24 = vsub.f32 %v13033_v20, %v20242_v45  ;;  %v20325_v20 = vand.u32 4294901760, %v13520_v29 }
 0x369   : > { %4145 = vmatmul.mubr.f32.vlgmr.msra.gmra.mrb[4].mxu1 %v20101_v49  ;;  %v13109_v21 = vand.u32 4294901760, %v13108_v23 }
 0x36a   : > { %4154 = vmatpush1.msra.mxu1 %v20109_v63  ;;  %4217 = vmatprep.mubr.f32.mxu1 %v21454_v62  ;;  %v13118_v63 = vand.u32 4294901760, %v20232_v7  ;;  %v4333_v19 = vand.u32 4294901760, %v20238_v27  ;;  %v13124_v34 = vand.u32 4294901760, %v20258_v24 }
 0x36b   : > { %4248 = vmatprep.subr.mxu1 %v20192_v38 }
 0x36c   : > { %v4334_v6 = vsub.f32 %v20238_v27, %v4333_v19  ;;  %v13125_v17 = vsub.f32 %v20258_v24, %v13124_v34 }
 0x36e   : > { %12939 = vmatmul.mubr.f32.vlgmr.msra.gmra.mrb[0].mxu0 %v20126_v18  ;;  %v4335_v12 = vand.u32 4294901760, %v4334_v6  ;;  %v13126_v40 = vand.u32 4294901760, %v13125_v17 }
 0x36f   : > { %12948 = vmatpush1.msra.mxu0 %v20133_v13  ;;  %13011 = vmatprep.mubr.f32.mxu0 %v21454_v62  ;;  %v13119_v13 = vsub.f32 %v20232_v7, %v13118_v63 }
 0x370   : > { %13039 = vmatprep.subr.mxu0 %v20216_v39 }
 0x371   : > { %4219 = vmatmul.mubr.f32.vlgmr.msra.gmra.mrb[4].mxu1 %v20101_v49  ;;  %v4318_v49 = vand.u32 4294901760, %v4317_v26  ;;  %v13120_v36 = vand.u32 4294901760, %v13119_v13 }
 0x372   : > { %4250 = vmatpush1.msra.mxu1 %v20218_v57  ;;  %4313 = vmatprep.mubr.f32.mxu1 %v21454_v62 }
 0x373   : > { %4330 = vmatprep.subr.mxu1 %v4329_v53 }
 0x376   : > { %13013 = vmatmul.mubr.f32.vlgmr.msra.gmra.mrb[0].mxu0 %v20126_v18  ;;  %v21502_v18 = vld [vmem:[#allocation13_spill] sm:$0xff] }
 0x377   : > { %13041 = vmatpush1.msra.mxu0 %v20242_v45  ;;  %13104 = vmatprep.mubr.f32.mxu0 %v21454_v62  ;;  %v4720_v54 = vsel %vm4718_vm5, %v21503_v3, %v21502_v18  ;;  %v4719_v32 = vsel %vm4718_vm5, %v21502_v18, %v21503_v3 }
 0x378   : > { %13121 = vmatprep.subr.mxu0 %v13120_v36  ;;  %v4726_v16 = vmul.f32 %v19710_v52, %v4720_v54  ;;  %v4725_v58 = vmul.f32 %v4719_v32, %v19609_v55  ;;  %v21506_v54 = vld [vmem:[#allocation16_spill] sm:$0xff] }
 0x379   : > { %4319 = vmatmul.mubr.f32.vlgmr.msra.gmra.mrb[4].mxu1 %v4318_v49 }
 0x37a   : > { %4336 = vmatpush1.msra.mxu1 %v4335_v12  ;;  %4399 = vmatprep.mubr.f32.mxu1 %v21454_v62  ;;  %v4734_v56 = vsel %vm283_vm1, %v4726_v16, 0  ;;  %v4731_v33 = vsel %vm283_vm1, %v4725_v58, 0  ;;  %v21507_v16 = vld [vmem:[#allocation17_spill] sm:$0xff]  ;;  %v21509_v58 = vld [vmem:[#allocation18_spill] sm:$0xff] }
 0x37b   : > { %4409 = vmatprep.subr.mxu1 %v20208_v2  ;;  %v20308_v2 = vand.u32 4294901760, %v4734_v56 }
 0x37d   : > { %v20318_v30 = vsub.f32 %v4734_v56, %v20308_v2  ;;  %v5213_v56 = vld [vmem:[%s21374_s4 + $0x4] sm:$0xf] }
 0x37e   : > { %13110 = vmatmul.mubr.f32.vlgmr.msra.gmra.mrb[0].mxu0 %v13109_v21 }
 0x37f   : > { %13127 = vmatpush1.msra.mxu0 %v13126_v40  ;;  %13190 = vmatprep.mubr.f32.mxu0 %v21454_v62  ;;  %v4816_v4 = vand.u32 4294901760, %v20318_v30 }
 0x380   : > { %13200 = vmatprep.subr.mxu0 %v20232_v7  ;;  %v20327_v7 = vand.u32 4294901760, %v4731_v33 }
 0x381   : > { %4401 = vmatmul.mubr.f32.vlgmr.msra.gmra.mrb[4].mxu1 %v20210_v28  ;;  %v4817_v53 = vsub.f32 %v20318_v30, %v4816_v4 }
 0x382   : > { %4412 = vmatpush1.msra.mxu1 %v20238_v27  ;;  %4475 = vmatprep.mubr.f32.mxu1 %v21454_v62 }
 0x383   : > { %4485 = vmatprep.subr.mxu1 %v20192_v38  ;;  %v4818_v6 = vand.u32 4294901760, %v4817_v53 }
 0x386   : > { %13192 = vmatmul.mubr.f32.vlgmr.msra.gmra.mrb[0].mxu0 %v20235_v37 }
 0x387   : > { %13203 = vmatpush1.msra.mxu0 %v20258_v24  ;;  %13266 = vmatprep.mubr.f32.mxu0 %v21454_v62 }
 0x388   : > { %13276 = vmatprep.subr.mxu0 %v20216_v39 }
 0x389   : > { %4478 = vmatmul.mubr.f32.vlgmr.msra.gmra.mrb[4].mxu1 %v20226_v9  ;;  %v5229_v9 = vld [vmem:[%s21374_s4 + $0x44] sm:$0xf] }
 0x38a   : > { %4487 = vmatpush1.msra.mxu1 %v20218_v57  ;;  %4550 = vmatprep.mubr.f32.mxu1 %v21454_v62  ;;  %v13514_v27 = vsel %vm5267_vm2, %v5229_v9, 0 }
 0x38b   : > { %4563 = vmatprep.subr.mxu1 %v4327_v10  ;;  %v20320_v10 = vand.u32 4294901760, %v4728_v59 }
 0x38e   : > { %13269 = vmatmul.mubr.f32.vlgmr.msra.gmra.mrb[0].mxu0 %v20247_v15  ;;  %v20345_v15 = vsub.f32 %v13520_v29, %v20325_v20 }
 0x38f   : > { %13278 = vmatpush1.msra.mxu0 %v20242_v45  ;;  %13341 = vmatprep.mubr.f32.mxu0 %v21454_v62 }
 0x390   : > { %13354 = vmatprep.subr.mxu0 %v13118_v63  ;;  %v13602_v24 = vand.u32 4294901760, %v20345_v15 }
 0x391   : > { %4554 = vmatmul.mubr.f32.vlgmr.msra.gmra.mrb[4].mxu1 %v4316_v31  ;;  %v20339_v31 = vsub.f32 %v4728_v59, %v20320_v10  ;;  %v13994_v59 = vsel %vm4718_vm5, %v21509_v58, %v21508_v61 }
 0x392   : > { %4567 = vmatpush1.msra.mxu1 %v4333_v19  ;;  %4630 = vmatprep.mubr.f32.mxu1 %v21454_v62  ;;  %v20348_v19 = vand.u32 4294901760, %v13514_v27 }
 0x393   : > { %4639 = vmatprep.subr.mxu1 %v20192_v38  ;;  %v13509_v38 = vsel %vm4231_vm8, %v21504_v22, %v21505_v5  ;;  %vm5258_vm8 = vcmp.lt.s32.totalorder %v18763_v42, 33  ;;  %v5263_v5 = vsel %vm5261_vm10, 1.0, %v21454_v62  ;;  %vm14481_vm10 = vmand %vm3744_vm7, %vm7201_vm15  ;;  %vm6221_vm15 = vcmp.lt.s32.totalorder %v18763_v42, 32 }
 0x394   : > { %v13517_v63 = vsel %vm5271_vm9, %v13509_v38, 0  ;;  %v20362_v13 = vsub.f32 %v13514_v27, %v20348_v19  ;;  %v5259_v22 = vsel %vm5258_vm8, %v21507_v16, %v21506_v54  ;;  %v5260_v14 = vsel %vm5258_vm8, %v21506_v54, %v21507_v16 }
 0x395   : > { %v20357_v26 = vand.u32 4294901760, %v13517_v63  ;;  %v5266_v32 = vmul.f32 %v5259_v22, %v18794_v51  ;;  %v5265_v0 = vmul.f32 %v5263_v5, %v5260_v14  ;;  %v5269_v51 = vsel %vm5267_vm2, %v5213_v56, 0  ;;  %v21510_v22 = vld [vmem:[#allocation20_spill] sm:$0xff]  ;;  %v21511_v5 = vld [vmem:[#allocation21_spill] sm:$0xff] }
 0x396   : > { %13345 = vmatmul.mubr.f32.vlgmr.msra.gmra.mrb[0].mxu0 %v13107_v48  ;;  %v13591_v36 = vand.u32 4294901760, %v20362_v13  ;;  %v20443_v38 = vand.u32 4294901760, %v5269_v51  ;;  %v13993_v27 = vsel %vm4718_vm5, %v21508_v61, %v21509_v58  ;;  %v5242_v14 = vsel %vm5241_vm4, %v21511_v5, %v21510_v22 }
 0x397   : > { %13358 = vmatpush1.msra.mxu0 %v13124_v34  ;;  %13421 = vmatprep.mubr.f32.mxu0 %v21454_v62  ;;  %v20373_v34 = vsub.f32 %v13517_v63, %v20357_v26  ;;  %v5276_v29 = vsel %vm5271_vm9, %v5266_v32, 0  ;;  %v21512_v32 = vld [vmem:[#allocation11_spill] sm:$0xff]  ;;  %vm21513_vm5 = vcmp.ge.s32.totalorder %v18769_v44, 2  ;;  %v5243_v61 = vsel %vm5241_vm4, %v21510_v22, %v21511_v5  ;;  %vm14972_vm4 = vmand %vm14970_vm11, %vm5247_vm6 }
 0x398   : > { %13430 = vmatprep.subr.mxu0 %v20216_v39  ;;  %v20351_v39 = vsub.f32 %v4731_v33, %v20327_v7  ;;  %v13592_v21 = vsub.f32 %v20362_v13, %v13591_v36  ;;  %v13996_v33 = vmul.f32 %v13994_v59, %v19710_v52  ;;  %v20437_v9 = vand.u32 4294901760, %v5276_v29  ;;  %vm5248_vm12 = vmand %vm5244_vm13, %vm21513_vm5  ;;  %v5212_v59 = vld [vmem:[%s21374_s4] sm:$0xf] }
 0x399   : > { %4632 = vmatmul.mubr.f32.vlgmr.msra.gmra.mrb[4].mxu1 %v20210_v28  ;;  %v13608_v12 = vand.u32 4294901760, %v20373_v34  ;;  %v20460_v63 = vsub.f32 %v5269_v51, %v20443_v38  ;;  %v5253_v56 = vmul.f32 %v21512_v32, %v5242_v14  ;;  %vm14477_vm8 = vcmp.lt.s32.totalorder %v18763_v42, 110 }
 0x39a   : > { %4641 = vmatpush1.msra.mxu1 %v20218_v57  ;;  %4704 = vmatprep.mubr.f32.mxu1 %v21454_v62  ;;  %v4805_v57 = vand.u32 4294901760, %v20339_v31  ;;  %v4822_v48 = vand.u32 4294901760, %v20351_v39  ;;  %vm14966_vm7 = vcmp.lt.s32.totalorder %v18763_v42, 98  ;;  %vm6708_vm6 = vcmp.lt.s32.totalorder %v18763_v42, 31 }
 0x39b   : > { %4737 = vmatprep.subr.mxu1 %v20308_v2  ;;  %v13609_v18 = vsub.f32 %v20373_v34, %v13608_v12  ;;  %v5750_v58 = vsel %vm5271_vm9, %v5253_v56, 0  ;;  %vm21522_vm5 = vcmp.lt.s32.totalorder %v18769_v44, 15 }
 0x39c   : > { %v4806_v49 = vsub.f32 %v20339_v31, %v4805_v57  ;;  %v20567_v51 = vand.u32 4294901760, %v5750_v58 }
 0x39d   : > { %v13610_v3 = vand.u32 4294901760, %v13609_v18 }
 0x39e   : > { %13423 = vmatmul.mubr.f32.vlgmr.msra.gmra.mrb[0].mxu0 %v20235_v37  ;;  %v4807_v23 = vand.u32 4294901760, %v4806_v49 }
 0x39f   : > { %13432 = vmatpush1.msra.mxu0 %v20242_v45  ;;  %13495 = vmatprep.mubr.f32.mxu0 %v21454_v62  ;;  %v13603_v45 = vsub.f32 %v20345_v15, %v13602_v24 }
 0x3a0   : > { %13523 = vmatprep.subr.mxu0 %v20325_v20 }
 0x3a1   : > { %4706 = vmatmul.mubr.f32.vlgmr.msra.gmra.mrb[4].mxu1 %v20210_v28  ;;  %v4823_v28 = vsub.f32 %v20351_v39, %v4822_v48  ;;  %v13604_v17 = vand.u32 4294901760, %v13603_v45 }
 0x3a2   : > { %4739 = vmatpush1.msra.mxu1 %v20327_v7  ;;  %4802 = vmatprep.mubr.f32.mxu1 %v21454_v62 }
 0x3a3   : > { %4819 = vmatprep.subr.mxu1 %v4818_v6  ;;  %v4824_v40 = vand.u32 4294901760, %v4823_v28 }
 0x3a6   : > { %13497 = vmatmul.mubr.f32.vlgmr.msra.gmra.mrb[0].mxu0 %v20235_v37  ;;  %v13593_v37 = vand.u32 4294901760, %v13592_v21 }
 0x3a7   : > { %13525 = vmatpush1.msra.mxu0 %v20357_v26  ;;  %13588 = vmatprep.mubr.f32.mxu0 %v21454_v62 }
 0x3a8   : > { %13605 = vmatprep.subr.mxu0 %v13604_v17 }
 0x3a9   : > { %4808 = vmatmul.mubr.f32.vlgmr.msra.gmra.mrb[4].mxu1 %v4807_v23 }
 0x3aa   : > { %4825 = vmatpush1.msra.mxu1 %v4824_v40  ;;  %4888 = vmatprep.mubr.f32.mxu1 %v21454_v62 }
 0x3ab   : > { %4898 = vmatprep.subr.mxu1 %v20318_v30  ;;  %v5273_v30 = vsel %vm5271_vm9, %v5265_v0, 0  ;;  %v5250_v0 = vsel %vm5248_vm12, 1.0, %v21454_v62  ;;  %vm6711_vm12 = vmand %vm5244_vm13, %vm21522_vm5  ;;  %vm21533_vm5 = vcmp.ge.s32.totalorder %v18763_v42, 16 }
 0x3ac   : > { %v20449_v52 = vand.u32 4294901760, %v5273_v30 }
 0x3ae   : > { %13594 = vmatmul.mubr.f32.vlgmr.msra.gmra.mrb[0].mxu0 %v13593_v37  ;;  %v20471_v53 = vsub.f32 %v5273_v30, %v20449_v52  ;;  %v21514_v30 = vld [vmem:[#allocation23_spill] sm:$0xff] }
 0x3af   : > { %13611 = vmatpush1.msra.mxu0 %v13610_v3  ;;  %13674 = vmatprep.mubr.f32.mxu0 %v21454_v62 }
 0x3b0   : > { %13684 = vmatprep.subr.mxu0 %v20345_v15  ;;  %v5230_v15 = vld [vmem:[%s21374_s4 + $0x48] sm:$0xf] }
 0x3b1   : > { %4890 = vmatmul.mubr.f32.vlgmr.msra.gmra.mrb[4].mxu1 %v20320_v10 }
 0x3b2   : > { %4901 = vmatpush1.msra.mxu1 %v20351_v39  ;;  %4964 = vmatprep.mubr.f32.mxu1 %v21454_v62 }
 0x3b3   : > { %4974 = vmatprep.subr.mxu1 %v20308_v2 }
 0x3b6   : > { %13676 = vmatmul.mubr.f32.vlgmr.msra.gmra.mrb[0].mxu0 %v20348_v19 }
 0x3b7   : > { %13687 = vmatpush1.msra.mxu0 %v20373_v34  ;;  %13750 = vmatprep.mubr.f32.mxu0 %v21454_v62 }
 0x3b8   : > { %13760 = vmatprep.subr.mxu0 %v20325_v20 }
 0x3b9   : > { %4967 = vmatmul.mubr.f32.vlgmr.msra.gmra.mrb[4].mxu1 %v20339_v31  ;;  %v20457_v31 = vsub.f32 %v5276_v29, %v20437_v9  ;;  %v5252_v29 = vmul.f32 %v5250_v0, %v5243_v61  ;;  %v21516_v0 = vld [vmem:[#allocation24_spill] sm:$0xff]  ;;  %v21517_v61 = vld [vmem:[#allocation25_spill] sm:$0xff] }
 0x3ba   : > { %4976 = vmatpush1.msra.mxu1 %v20327_v7  ;;  %5039 = vmatprep.mubr.f32.mxu1 %v21454_v62 }
 0x3bb   : > { %5052 = vmatprep.subr.mxu1 %v4816_v4  ;;  %v14004_v4 = vsel %vm5271_vm9, %v13996_v33, 0  ;;  %v14483_v33 = vsel %vm14481_vm10, 1.0, %v21454_v62  ;;  %vm21523_vm10 = vcmp.ge.s32.totalorder %v18775_v46, 1 }
 0x3bc   : > { %v20466_v39 = vand.u32 4294901760, %v14004_v4 }
 0x3be   : > { %13753 = vmatmul.mubr.f32.vlgmr.msra.gmra.mrb[0].mxu0 %v20362_v13  ;;  %v20485_v6 = vsub.f32 %v14004_v4, %v20466_v39 }
 0x3bf   : > { %13762 = vmatpush1.msra.mxu0 %v20357_v26  ;;  %13825 = vmatprep.mubr.f32.mxu0 %v21454_v62 }
 0x3c0   : > { %13838 = vmatprep.subr.mxu0 %v13602_v24  ;;  %v5358_v24 = vand.u32 4294901760, %v20457_v31 }
 0x3c1   : > { %5043 = vmatmul.mubr.f32.vlgmr.msra.gmra.mrb[4].mxu1 %v4805_v57  ;;  %v13998_v57 = vsel %vm5267_vm2, %v5230_v15, 0 }
 0x3c2   : > { %5056 = vmatpush1.msra.mxu1 %v4822_v48  ;;  %5119 = vmatprep.mubr.f32.mxu1 %v21454_v62  ;;  %v5347_v48 = vand.u32 4294901760, %v20460_v63  ;;  %v20488_v49 = vand.u32 4294901760, %v13998_v57  ;;  %v5359_v34 = vsub.f32 %v20457_v31, %v5358_v24 }
 0x3c3   : > { %5128 = vmatprep.subr.mxu1 %v20308_v2  ;;  %v13995_v2 = vmul.f32 %v13993_v27, %v19609_v55  ;;  %v21515_v27 = vld [vmem:[#allocation22_spill] sm:$0xff] }
 0x3c4   : > { %v5348_v45 = vsub.f32 %v20460_v63, %v5347_v48  ;;  %v20500_v28 = vsub.f32 %v13998_v57, %v20488_v49  ;;  %v14479_v4 = vsel %vm14477_vm8, %v21515_v27, %v21514_v30 }
 0x3c5   : > { %v14001_v13 = vsel %vm5271_vm9, %v13995_v2, 0  ;;  %v14485_v15 = vmul.f32 %v14483_v33, %v14479_v4  ;;  %v5747_v2 = vsel %vm5271_vm9, %v5252_v29, 0  ;;  %v6223_v29 = vsel %vm6221_vm15, %v21516_v0, %v21517_v61 }
 0x3c6   : > { %13829 = vmatmul.mubr.f32.vlgmr.msra.gmra.mrb[0].mxu0 %v13591_v36  ;;  %v14086_v36 = vand.u32 4294901760, %v20485_v6  ;;  %v5349_v17 = vand.u32 4294901760, %v5348_v45  ;;  %v14075_v40 = vand.u32 4294901760, %v20500_v28  ;;  %v20592_v57 = vand.u32 4294901760, %v5747_v2 }
 0x3c7   : > { %13842 = vmatpush1.msra.mxu0 %v13608_v12  ;;  %13905 = vmatprep.mubr.f32.mxu0 %v21454_v62  ;;  %v5360_v12 = vand.u32 4294901760, %v5359_v34 }
 0x3c8   : > { %13914 = vmatprep.subr.mxu0 %v20325_v20  ;;  %v5364_v20 = vand.u32 4294901760, %v20471_v53  ;;  %v14076_v3 = vsub.f32 %v20500_v28, %v14075_v40  ;;  %v20616_v45 = vsub.f32 %v5747_v2, %v20592_v57  ;;  %v21519_v2 = vld [vmem:[#allocation26_spill] sm:$0xff] }
 0x3c9   : > { %5121 = vmatmul.mubr.f32.vlgmr.msra.gmra.mrb[4].mxu1 %v20320_v10 }
 0x3ca   : > { %5130 = vmatpush1.msra.mxu1 %v20327_v7  ;;  %5193 = vmatprep.mubr.f32.mxu1 %v21454_v62  ;;  %v20495_v7 = vand.u32 4294901760, %v14001_v13  ;;  %v5365_v23 = vsub.f32 %v20471_v53, %v5364_v20  ;;  %v14077_v16 = vand.u32 4294901760, %v14076_v3 }
 0x3cb   : > { %5279 = vmatprep.subr.mxu1 %v20437_v9 }
 0x3cc   : > { %v20510_v21 = vsub.f32 %v14001_v13, %v20495_v7  ;;  %v5366_v18 = vand.u32 4294901760, %v5365_v23 }
 0x3ce   : > { %13907 = vmatmul.mubr.f32.vlgmr.msra.gmra.mrb[0].mxu0 %v20348_v19 }
 0x3cf   : > { %13916 = vmatpush1.msra.mxu0 %v20357_v26  ;;  %13979 = vmatprep.mubr.f32.mxu0 %v21454_v62  ;;  %v14087_v26 = vsub.f32 %v20485_v6, %v14086_v36 }
 0x3d0   : > { %14007 = vmatprep.subr.mxu0 %v20466_v39 }
 0x3d1   : > { %5195 = vmatmul.mubr.f32.vlgmr.msra.gmra.mrb[4].mxu1 %v20320_v10  ;;  %v14092_v10 = vand.u32 4294901760, %v20510_v21  ;;  %v14088_v37 = vand.u32 4294901760, %v14087_v26 }
 0x3d2   : > { %5281 = vmatpush1.msra.mxu1 %v20449_v52  ;;  %5344 = vmatprep.mubr.f32.mxu1 %v21454_v62 }
 0x3d3   : > { %5361 = vmatprep.subr.mxu1 %v5360_v12  ;;  %v14093_v54 = vsub.f32 %v20510_v21, %v14092_v10 }
 0x3d5   : > { %5350 = vmatmul.mubr.f32.vlgmr.msra.gmra.mrb[6].mxu1 %v5349_v17 }
 0x3d6   : > { %5367 = vmatpush1.msra.mxu1 %v5366_v18  ;;  %5430 = vmatprep.mubr.f32.mxu1 %v21454_v62 }
 0x3d7   : > { %5440 = vmatprep.subr.mxu1 %v20457_v31  ;;  %13981 = vmatmul.mubr.f32.vlgmr.msra.gmra.mrb[0].mxu0 %v20348_v19  ;;  %v14094_v19 = vand.u32 4294901760, %v14093_v54  ;;  %v5744_v31 = vsel %vm5267_vm2, %v5212_v59, 0  ;;  %v6224_v59 = vsel %vm5244_vm13, 1.0, %v21454_v62 }
 0x3d8   : > { %14009 = vmatpush1.msra.mxu0 %v20495_v7  ;;  %14072 = vmatprep.mubr.f32.mxu0 %v21454_v62 }
 0x3d9   : > { %14089 = vmatprep.subr.mxu0 %v14088_v37 }
 0x3dd   : > { %5432 = vmatmul.mubr.f32.vlgmr.msra.gmra.mrb[6].mxu1 %v20443_v38 }
 0x3de   : > { %5443 = vmatpush1.msra.mxu1 %v20471_v53  ;;  %5506 = vmatprep.mubr.f32.mxu1 %v21454_v62  ;;  %v20590_v53 = vand.u32 4294901760, %v5744_v31 }
 0x3df   : > { %5516 = vmatprep.subr.mxu1 %v20437_v9  ;;  %14078 = vmatmul.mubr.f32.vlgmr.msra.gmra.mrb[0].mxu0 %v14077_v16 }
 0x3e0   : > { %14095 = vmatpush1.msra.mxu0 %v14094_v19  ;;  %14158 = vmatprep.mubr.f32.mxu0 %v21454_v62  ;;  %v20602_v13 = vsub.f32 %v5744_v31, %v20590_v53  ;;  %v14974_v31 = vsel %vm14972_vm4, 1.0, %v21454_v62  ;;  %vm7202_vm4 = vmand %vm5244_vm13, %vm7200_vm14  ;;  %vm15946_vm14 = vcmp.lt.s32.totalorder %v18763_v42, 96  ;;  %vm7688_vm13 = vcmp.lt.s32.totalorder %v18763_v42, 18 }
 0x3e1   : > { %14168 = vmatprep.subr.mxu0 %v20485_v6  ;;  %v5231_v6 = vld [vmem:[%s21374_s4 + $0x4c] sm:$0xf] }
 0x3e2   : > { %v5821_v23 = vand.u32 4294901760, %v20602_v13 }
 0x3e5   : > { %5509 = vmatmul.mubr.f32.vlgmr.msra.gmra.mrb[6].mxu1 %v20460_v63  ;;  %v20586_v63 = vsub.f32 %v5750_v58, %v20567_v51  ;;  %v6222_v58 = vsel %vm6221_vm15, %v21517_v61, %v21516_v0  ;;  %vm15461_vm15 = vmand %vm14970_vm11, %vm21523_vm10  ;;  %vm21534_vm10 = vcmp.lt.s32.totalorder %v18775_v46, 15 }
 0x3e6   : > { %5518 = vmatpush1.msra.mxu1 %v20449_v52  ;;  %5581 = vmatprep.mubr.f32.mxu1 %v21454_v62  ;;  %v6235_v33 = vsel %vm5271_vm9, %v6222_v58, 0  ;;  %v21520_v58 = vld [vmem:[#allocation28_spill] sm:$0xff] }
 0x3e7   : > { %5594 = vmatprep.subr.mxu1 %v5358_v24  ;;  %14160 = vmatmul.mubr.f32.vlgmr.msra.gmra.mrb[0].mxu0 %v20488_v49  ;;  %v14493_v24 = vsel %vm5271_vm9, %v14485_v15, 0  ;;  %v20704_v4 = vand.u32 4294901760, %v6235_v33  ;;  %v21518_v15 = vld [vmem:[#allocation27_spill] sm:$0xff] }
 0x3e8   : > { %14171 = vmatpush1.msra.mxu0 %v20510_v21  ;;  %14234 = vmatprep.mubr.f32.mxu0 %v21454_v62  ;;  %v20610_v34 = vand.u32 4294901760, %v14493_v24  ;;  %v5838_v21 = vand.u32 4294901760, %v20616_v45 }
 0x3e9   : > { %14244 = vmatprep.subr.mxu0 %v20466_v39 }
 0x3ea   : > { %v20629_v12 = vsub.f32 %v14493_v24, %v20610_v34 }
 0x3ec   : > { %v14575_v18 = vand.u32 4294901760, %v20629_v12 }
 0x3ed   : > { %5585 = vmatmul.mubr.f32.vlgmr.msra.gmra.mrb[6].mxu1 %v5347_v48  ;;  %v5832_v48 = vand.u32 4294901760, %v20586_v63 }
 0x3ee   : > { %5598 = vmatpush1.msra.mxu1 %v5364_v20  ;;  %5661 = vmatprep.mubr.f32.mxu1 %v21454_v62  ;;  %v14576_v54 = vsub.f32 %v20629_v12, %v14575_v18 }
 0x3ef   : > { %5670 = vmatprep.subr.mxu1 %v20437_v9  ;;  %14237 = vmatmul.mubr.f32.vlgmr.msra.gmra.mrb[0].mxu0 %v20500_v28  ;;  %v14478_v9 = vsel %vm14477_vm8, %v21514_v30, %v21515_v27  ;;  %v5214_v30 = vld [vmem:[%s21374_s4 + $0x8] sm:$0xf]  ;;  %v6226_v27 = vmul.f32 %v6224_v59, %v6223_v29  ;;  %v21521_v59 = vld [vmem:[#allocation29_spill] sm:$0xff]  ;;  %vm15457_vm8 = vcmp.lt.s32.totalorder %v18763_v42, 97 }
 0x3f0   : > { %14246 = vmatpush1.msra.mxu0 %v20495_v7  ;;  %14309 = vmatprep.mubr.f32.mxu0 %v21454_v62  ;;  %v14484_v20 = vmul.f32 %v14478_v9, %v19967_v25  ;;  %v14577_v22 = vand.u32 4294901760, %v14576_v54  ;;  %v6229_v9 = vsel %vm5267_vm2, %v5214_v30, 0  ;;  %v6709_v29 = vsel %vm6708_vm6, %v21521_v59, %v21520_v58 }
 0x3f1   : > { %14322 = vmatprep.subr.mxu0 %v14086_v36  ;;  %v5833_v36 = vsub.f32 %v20586_v63, %v5832_v48  ;;  %v6710_v30 = vsel %vm6708_vm6, %v21520_v58, %v21521_v59  ;;  %v21526_v59 = vld [vmem:[#allocation32_spill] sm:$0xff]  ;;  %vm21532_vm6 = vcmp.ge.s32.totalorder %v18769_v44, 2 }
 0x3f2   : > { %v14490_v28 = vsel %vm5271_vm9, %v14484_v20, 0 }
 0x3f3   : > { %v5834_v26 = vand.u32 4294901760, %v5833_v36 }
 0x3f5   : > { %5663 = vmatmul.mubr.f32.vlgmr.msra.gmra.mrb[6].mxu1 %v20443_v38 }
 0x3f6   : > { %5672 = vmatpush1.msra.mxu1 %v20449_v52  ;;  %5735 = vmatprep.mubr.f32.mxu1 %v21454_v62  ;;  %v14487_v52 = vsel %vm5267_vm2, %v5231_v6, 0  ;;  %v20727_v6 = vand.u32 4294901760, %v6229_v9 }
 0x3f7   : > { %5753 = vmatprep.subr.mxu1 %v20567_v51  ;;  %14313 = vmatmul.mubr.f32.vlgmr.msra.gmra.mrb[0].mxu0 %v14075_v40  ;;  %v20631_v17 = vand.u32 4294901760, %v14487_v52  ;;  %v20638_v40 = vand.u32 4294901760, %v14490_v28 }
 0x3f8   : > { %14326 = vmatpush1.msra.mxu0 %v14092_v10  ;;  %14389 = vmatprep.mubr.f32.mxu0 %v21454_v62  ;;  %v20739_v36 = vsub.f32 %v6229_v9, %v20727_v6  ;;  %v21524_v9 = vld [vmem:[#allocation31_spill] sm:$0xff] }
 0x3f9   : > { %14398 = vmatprep.subr.mxu0 %v20466_v39  ;;  %v5822_v39 = vsub.f32 %v20602_v13, %v5821_v23  ;;  %v20645_v10 = vsub.f32 %v14487_v52, %v20631_v17  ;;  %v20654_v3 = vsub.f32 %v14490_v28, %v20638_v40 }
 0x3fb   : > { %v5823_v37 = vand.u32 4294901760, %v5822_v39  ;;  %v14564_v16 = vand.u32 4294901760, %v20645_v10 }
 0x3fd   : > { %5737 = vmatmul.mubr.f32.vlgmr.msra.gmra.mrb[6].mxu1 %v20443_v38  ;;  %v5839_v38 = vsub.f32 %v20616_v45, %v5838_v21  ;;  %v14565_v5 = vsub.f32 %v20645_v10, %v14564_v16 }
 0x3fe   : > { %5755 = vmatpush1.msra.mxu1 %v20592_v57  ;;  %5818 = vmatprep.mubr.f32.mxu1 %v21454_v62 }
 0x3ff   : > { %5835 = vmatprep.subr.mxu1 %v5834_v26  ;;  %14391 = vmatmul.mubr.f32.vlgmr.msra.gmra.mrb[0].mxu0 %v20488_v49  ;;  %v5840_v19 = vand.u32 4294901760, %v5839_v38  ;;  %v14566_v56 = vand.u32 4294901760, %v14565_v5  ;;  %v6306_v26 = vand.u32 4294901760, %v20739_v36 }
 0x400   : > { %14400 = vmatpush1.msra.mxu0 %v20495_v7  ;;  %14463 = vmatprep.mubr.f32.mxu0 %v21454_v62  ;;  %v14581_v7 = vand.u32 4294901760, %v20654_v3 }
 0x401   : > { %14496 = vmatprep.subr.mxu0 %v20610_v34 }
 0x402   : > { %v14582_v14 = vsub.f32 %v20654_v3, %v14581_v7 }
 0x405   : > { %5824 = vmatmul.mubr.f32.vlgmr.msra.gmra.mrb[6].mxu1 %v5823_v37 }
 0x406   : > { %5841 = vmatpush1.msra.mxu1 %v5840_v19  ;;  %5904 = vmatprep.mubr.f32.mxu1 %v21454_v62 }
 0x407   : > { %5914 = vmatprep.subr.mxu1 %v20586_v63  ;;  %14465 = vmatmul.mubr.f32.vlgmr.msra.gmra.mrb[0].mxu0 %v20488_v49  ;;  %v14583_v49 = vand.u32 4294901760, %v14582_v14  ;;  %v14968_v63 = vsel %vm14966_vm7, %v21519_v2, %v21518_v15 }
 0x408   : > { %14498 = vmatpush1.msra.mxu0 %v20638_v40  ;;  %14561 = vmatprep.mubr.f32.mxu0 %v21454_v62  ;;  %v14976_v24 = vmul.f32 %v14974_v31, %v14968_v63  ;;  %v5215_v31 = vld [vmem:[%s21374_s4 + $0xc] sm:$0xf]  ;;  %v15463_v63 = vsel %vm15461_vm15, 1.0, %v21454_v62  ;;  %vm16437_vm15 = vmand %vm14970_vm11, %vm21534_vm10 }
 0x409   : > { %14578 = vmatprep.subr.mxu0 %v14577_v22 }
 0x40d   : > { %5906 = vmatmul.mubr.f32.vlgmr.msra.gmra.mrb[6].mxu1 %v20590_v53 }
 0x40e   : > { %5917 = vmatpush1.msra.mxu1 %v20616_v45  ;;  %5980 = vmatprep.mubr.f32.mxu1 %v21454_v62  ;;  %v14984_v45 = vsel %vm5271_vm9, %v14976_v24, 0  ;;  %v21525_v24 = vld [vmem:[#allocation30_spill] sm:$0xff] }
 0x40f   : > { %5990 = vmatprep.subr.mxu1 %v20567_v51  ;;  %14567 = vmatmul.mubr.f32.vlgmr.msra.gmra.mrb[0].mxu0 %v14566_v56 }
 0x410   : > { %14584 = vmatpush1.msra.mxu0 %v14583_v49  ;;  %14647 = vmatprep.mubr.f32.mxu0 %v21454_v62 }
 0x411   : > { %14657 = vmatprep.subr.mxu0 %v20629_v12  ;;  %v20747_v12 = vand.u32 4294901760, %v14984_v45 }
 0x415   : > { %5983 = vmatmul.mubr.f32.vlgmr.msra.gmra.mrb[6].mxu1 %v20602_v13  ;;  %v20723_v13 = vsub.f32 %v6235_v33, %v20704_v4  ;;  %v6716_v33 = vmul.f32 %v6709_v29, %v18920_v47  ;;  %v6713_v47 = vsel %vm6711_vm12, 1.0, %v21454_v62  ;;  %v21527_v29 = vld [vmem:[#allocation33_spill] sm:$0xff]  ;;  %vm7691_vm12 = vmand %vm21533_vm5, %vm21532_vm6 }
 0x416   : > { %5992 = vmatpush1.msra.mxu1 %v20592_v57  ;;  %6055 = vmatprep.mubr.f32.mxu1 %v21454_v62  ;;  %v7693_v44 = vsel %vm7691_vm12, 1.0, %v21454_v62 }
 0x417   : > { %6068 = vmatprep.subr.mxu1 %v5832_v48  ;;  %14649 = vmatmul.mubr.f32.vlgmr.msra.gmra.mrb[0].mxu0 %v20631_v17  ;;  %v6232_v48 = vsel %vm5271_vm9, %v6226_v27, 0  ;;  %v6317_v52 = vand.u32 4294901760, %v20723_v13  ;;  %v6724_v27 = vsel %vm5271_vm9, %v6716_v33, 0 }
 0x418   : > { %14660 = vmatpush1.msra.mxu0 %v20654_v3  ;;  %14723 = vmatprep.mubr.f32.mxu0 %v21454_v62  ;;  %v20729_v20 = vand.u32 4294901760, %v6232_v48 }
 0x419   : > { %14733 = vmatprep.subr.mxu0 %v20610_v34 }
 0x41d   : > { %6059 = vmatmul.mubr.f32.vlgmr.msra.gmra.mrb[6].mxu1 %v5821_v23  ;;  %v5232_v23 = vld [vmem:[%s21374_s4 + $0x50] sm:$0xf] }
 0x41e   : > { %6072 = vmatpush1.msra.mxu1 %v5838_v21  ;;  %6135 = vmatprep.mubr.f32.mxu1 %v21454_v62  ;;  %v20753_v21 = vsub.f32 %v6232_v48, %v20729_v20  ;;  %v15459_v48 = vsel %vm15457_vm8, %v21525_v24, %v21524_v9 }
 0x41f   : > { %6144 = vmatprep.subr.mxu1 %v20567_v51  ;;  %14726 = vmatmul.mubr.f32.vlgmr.msra.gmra.mrb[0].mxu0 %v20645_v10  ;;  %v14967_v51 = vsel %vm14966_vm7, %v21518_v15, %v21519_v2  ;;  %v6715_v15 = vmul.f32 %v6713_v47, %v6710_v30  ;;  %v20848_v2 = vand.u32 4294901760, %v6724_v27  ;;  %vm7197_vm7 = vcmp.lt.s32.totalorder %v18763_v42, 30 }
 0x420   : > { %14735 = vmatpush1.msra.mxu0 %v20638_v40  ;;  %14798 = vmatprep.mubr.f32.mxu0 %v21454_v62  ;;  %v14975_v28 = vmul.f32 %v14967_v51, %v19253_v8  ;;  %v6318_v8 = vsub.f32 %v20723_v13, %v6317_v52  ;;  %v6323_v38 = vand.u32 4294901760, %v20753_v21  ;;  %v15465_v51 = vmul.f32 %v15463_v63, %v15459_v48  ;;  %v21529_v48 = vld [vmem:[#allocation34_spill] sm:$0xff] }
 0x421   : > { %14811 = vmatprep.subr.mxu0 %v14575_v18  ;;  %v20766_v18 = vsub.f32 %v14984_v45, %v20747_v12  ;;  %v6721_v45 = vsel %vm5271_vm9, %v6715_v15, 0  ;;  %v7198_v33 = vsel %vm7197_vm7, %v21527_v29, %v21526_v59  ;;  %v7199_v30 = vsel %vm7197_vm7, %v21526_v59, %v21527_v29  ;;  %v21531_v59 = vld [vmem:[#allocation37_spill] sm:$0xff] }
 0x422   : > { %v14981_v39 = vsel %vm5271_vm9, %v14975_v28, 0  ;;  %v6319_v37 = vand.u32 4294901760, %v6318_v8  ;;  %v15473_v28 = vsel %vm5271_vm9, %v15465_v51, 0  ;;  %v5233_v8 = vld [vmem:[%s21374_s4 + $0x54] sm:$0xf]  ;;  %v7207_v47 = vmul.f32 %v19093_v60, %v7198_v33  ;;  %v5206_v33 = vpop.permute.xlu0 %5205 }
 0x423   : > { %v20775_v3 = vand.u32 4294901760, %v14981_v39  ;;  %v15066_v54 = vand.u32 4294901760, %v20766_v18  ;;  %v7204_v60 = vsel %vm7202_vm4, 1.0, %v21454_v62 }
 0x424   : > { %v7206_v15 = vmul.f32 %v7204_v60, %v7199_v30 }
 0x425   : > { %6137 = vmatmul.mubr.f32.vlgmr.msra.gmra.mrb[6].mxu1 %v20590_v53  ;;  %v15067_v22 = vsub.f32 %v20766_v18, %v15066_v54 }
 0x426   : > { %6146 = vmatpush1.msra.mxu1 %v20592_v57  ;;  %6209 = vmatprep.mubr.f32.mxu1 %v21454_v62  ;;  %v14978_v57 = vsel %vm5267_vm2, %v5232_v23, 0  ;;  %v20873_v23 = vand.u32 4294901760, %v6721_v45 }
 0x427   : > { %6238 = vmatprep.subr.mxu1 %v20704_v4  ;;  %14802 = vmatmul.mubr.f32.vlgmr.msra.gmra.mrb[0].mxu0 %v14564_v16  ;;  %v20768_v10 = vand.u32 4294901760, %v14978_v57  ;;  %v15068_v56 = vand.u32 4294901760, %v15067_v22 }
 0x428   : > { %14815 = vmatpush1.msra.mxu0 %v14581_v7  ;;  %14878 = vmatprep.mubr.f32.mxu0 %v21454_v62  ;;  %v20791_v7 = vsub.f32 %v14981_v39, %v20775_v3  ;;  %v20891_v39 = vand.u32 4294901760, %v15473_v28 }
 0x429   : > { %14887 = vmatprep.subr.mxu0 %v20610_v34  ;;  %v6307_v34 = vsub.f32 %v20739_v36, %v6306_v26  ;;  %v20782_v16 = vsub.f32 %v14978_v57, %v20768_v10 }
 0x42b   : > { %v6308_v19 = vand.u32 4294901760, %v6307_v34  ;;  %v15055_v5 = vand.u32 4294901760, %v20782_v16  ;;  %v20910_v34 = vsub.f32 %v15473_v28, %v20891_v39 }
 0x42d   : > { %6211 = vmatmul.mubr.f32.vlgmr.msra.gmra.mrb[6].mxu1 %v20590_v53  ;;  %v6324_v53 = vsub.f32 %v20753_v21, %v6323_v38  ;;  %v15056_v49 = vsub.f32 %v20782_v16, %v15055_v5 }
 0x42e   : > { %6240 = vmatpush1.msra.mxu1 %v20729_v20  ;;  %6303 = vmatprep.mubr.f32.mxu1 %v21454_v62 }
 0x42f   : > { %6320 = vmatprep.subr.mxu1 %v6319_v37  ;;  %14880 = vmatmul.mubr.f32.vlgmr.msra.gmra.mrb[0].mxu0 %v20631_v17  ;;  %v6325_v14 = vand.u32 4294901760, %v6324_v53  ;;  %v15057_v61 = vand.u32 4294901760, %v15056_v49 }
 0x430   : > { %14889 = vmatpush1.msra.mxu0 %v20638_v40  ;;  %14952 = vmatprep.mubr.f32.mxu0 %v21454_v62  ;;  %v15072_v40 = vand.u32 4294901760, %v20791_v7 }
 0x431   : > { %14987 = vmatprep.subr.mxu0 %v20747_v12 }
 0x432   : > { %v15073_v0 = vsub.f32 %v20791_v7, %v15072_v40 }
 0x435   : > { %6309 = vmatmul.mubr.f32.vlgmr.msra.gmra.mrb[6].mxu1 %v6308_v19 }
 0x436   : > { %6326 = vmatpush1.msra.mxu1 %v6325_v14  ;;  %6389 = vmatprep.mubr.f32.mxu1 %v21454_v62 }
 0x437   : > { %6399 = vmatprep.subr.mxu1 %v20723_v13  ;;  %14954 = vmatmul.mubr.f32.vlgmr.msra.gmra.mrb[0].mxu0 %v20631_v17  ;;  %v15074_v17 = vand.u32 4294901760, %v15073_v0  ;;  %v6718_v13 = vsel %vm5267_vm2, %v5215_v31, 0  ;;  %v5216_v31 = vld [vmem:[%s21374_s4 + $0x10] sm:$0xf] }
 0x438   : > { %14989 = vmatpush1.msra.mxu0 %v20775_v3  ;;  %15052 = vmatprep.mubr.f32.mxu0 %v21454_v62  ;;  %v7209_v51 = vsel %vm5267_vm2, %v5216_v31, 0 }
 0x439   : > { %15069 = vmatprep.subr.mxu0 %v15068_v56  ;;  %v21013_v28 = vand.u32 4294901760, %v7209_v51 }
 0x43d   : > { %6391 = vmatmul.mubr.f32.vlgmr.msra.gmra.mrb[6].mxu1 %v20727_v6 }
 0x43e   : > { %6402 = vmatpush1.msra.mxu1 %v20753_v21  ;;  %6465 = vmatprep.mubr.f32.mxu1 %v21454_v62 }
 0x43f   : > { %6475 = vmatprep.subr.mxu1 %v20704_v4  ;;  %15058 = vmatmul.mubr.f32.vlgmr.msra.gmra.mrb[0].mxu0 %v15057_v61 }
 0x440   : > { %15075 = vmatpush1.msra.mxu0 %v15074_v17  ;;  %15138 = vmatprep.mubr.f32.mxu0 %v21454_v62 }
 0x441   : > { %15148 = vmatprep.subr.mxu0 %v20766_v18  ;;  %v20897_v18 = vsub.f32 %v6721_v45, %v20873_v23 }
 0x445   : > { %6468 = vmatmul.mubr.f32.vlgmr.msra.gmra.mrb[6].mxu1 %v20739_v36  ;;  %v20871_v36 = vand.u32 4294901760, %v6718_v13 }
 0x446   : > { %6477 = vmatpush1.msra.mxu1 %v20729_v20  ;;  %6540 = vmatprep.mubr.f32.mxu1 %v21454_v62 }
 0x447   : > { %6553 = vmatprep.subr.mxu1 %v6317_v52  ;;  %15140 = vmatmul.mubr.f32.vlgmr.msra.gmra.mrb[0].mxu0 %v20768_v10  ;;  %v20867_v52 = vsub.f32 %v6724_v27, %v20848_v2  ;;  %v20883_v57 = vsub.f32 %v6718_v13, %v20871_v36  ;;  %v7215_v27 = vsel %vm5271_vm9, %v7207_v47, 0 }
 0x448   : > { %15151 = vmatpush1.msra.mxu0 %v20791_v7  ;;  %15214 = vmatprep.mubr.f32.mxu0 %v21454_v62  ;;  %v15555_v7 = vand.u32 4294901760, %v20910_v34  ;;  %v20988_v63 = vand.u32 4294901760, %v7215_v27 }
 0x449   : > { %15224 = vmatprep.subr.mxu0 %v20747_v12  ;;  %v6806_v21 = vand.u32 4294901760, %v20867_v52 }
 0x44d   : > { %6544 = vmatmul.mubr.f32.vlgmr.msra.gmra.mrb[6].mxu1 %v6306_v26 }
 0x44e   : > { %6557 = vmatpush1.msra.mxu1 %v6323_v38  ;;  %6620 = vmatprep.mubr.f32.mxu1 %v21454_v62  ;;  %v6795_v38 = vand.u32 4294901760, %v20883_v57 }
 0x44f   : > { %6629 = vmatprep.subr.mxu1 %v20704_v4  ;;  %15217 = vmatmul.mubr.f32.vlgmr.msra.gmra.mrb[0].mxu0 %v20782_v16  ;;  %v15458_v4 = vsel %vm15457_vm8, %v21524_v9, %v21525_v24  ;;  %v6812_v16 = vand.u32 4294901760, %v20897_v18  ;;  %v15950_v9 = vsel %vm14970_vm11, 1.0, %v21454_v62  ;;  %v21528_v24 = vld [vmem:[#allocation35_spill] sm:$0xff]  ;;  %vm16433_vm8 = vcmp.lt.s32.totalorder %v18763_v42, 95 }
 0x450   : > { %15226 = vmatpush1.msra.mxu0 %v20775_v3  ;;  %15289 = vmatprep.mubr.f32.mxu0 %v21454_v62  ;;  %v15464_v26 = vmul.f32 %v15458_v4, %v19442_v41  ;;  %v6807_v41 = vsub.f32 %v20867_v52, %v6806_v21  ;;  %v15948_v13 = vsel %vm15946_vm14, %v21529_v48, %v21528_v24 }
 0x451   : > { %15302 = vmatprep.subr.mxu0 %v15066_v54  ;;  %v15952_v45 = vmul.f32 %v15950_v9, %v15948_v13  ;;  %v21009_v4 = vsub.f32 %v7215_v27, %v20988_v63 }
 0x452   : > { %v15470_v37 = vsel %vm5271_vm9, %v15464_v26, 0  ;;  %v6808_v53 = vand.u32 4294901760, %v6807_v41  ;;  %v5234_v26 = vld [vmem:[%s21374_s4 + $0x58] sm:$0xf]  ;;  %v15947_v41 = vsel %vm15946_vm14, %v21528_v24, %v21529_v48 }
 0x453   : > { %v20919_v19 = vand.u32 4294901760, %v15470_v37 }
 0x455   : > { %6622 = vmatmul.mubr.f32.vlgmr.msra.gmra.mrb[6].mxu1 %v20727_v6  ;;  %v20935_v14 = vsub.f32 %v15470_v37, %v20919_v19 }
 0x456   : > { %6631 = vmatpush1.msra.mxu1 %v20729_v20  ;;  %6694 = vmatprep.mubr.f32.mxu1 %v21454_v62  ;;  %v15467_v20 = vsel %vm5267_vm2, %v5233_v8, 0  ;;  %v21021_v8 = vsub.f32 %v7209_v51, %v21013_v28  ;;  %v21535_v51 = vld [vmem:[#allocation9_spill] sm:$0xff] }
 0x457   : > { %6727 = vmatprep.subr.mxu1 %v20848_v2  ;;  %15293 = vmatmul.mubr.f32.vlgmr.msra.gmra.mrb[0].mxu0 %v15055_v5  ;;  %v20912_v54 = vand.u32 4294901760, %v15467_v20 }
 0x458   : > { %15306 = vmatpush1.msra.mxu0 %v15072_v40  ;;  %15369 = vmatprep.mubr.f32.mxu0 %v21454_v62  ;;  %v15556_v40 = vsub.f32 %v20910_v34, %v15555_v7  ;;  %v7286_v37 = vand.u32 4294901760, %v21021_v8 }
 0x459   : > { %15378 = vmatprep.subr.mxu0 %v20747_v12  ;;  %v6796_v12 = vsub.f32 %v20883_v57, %v6795_v38  ;;  %v20926_v22 = vsub.f32 %v15467_v20, %v20912_v54 }
 0x45a   : > { %v15557_v0 = vand.u32 4294901760, %v15556_v40 }
 0x45b   : > { %v6797_v5 = vand.u32 4294901760, %v6796_v12  ;;  %v15544_v56 = vand.u32 4294901760, %v20926_v22 }
 0x45d   : > { %6696 = vmatmul.mubr.f32.vlgmr.msra.gmra.mrb[6].mxu1 %v20727_v6  ;;  %v6813_v6 = vsub.f32 %v20897_v18, %v6812_v16  ;;  %v15545_v61 = vsub.f32 %v20926_v22, %v15544_v56 }
 0x45e   : > { %6729 = vmatpush1.msra.mxu1 %v20873_v23  ;;  %6792 = vmatprep.mubr.f32.mxu1 %v21454_v62 }
 0x45f   : > { %6809 = vmatprep.subr.mxu1 %v6808_v53  ;;  %15371 = vmatmul.mubr.f32.vlgmr.msra.gmra.mrb[0].mxu0 %v20768_v10  ;;  %v6814_v49 = vand.u32 4294901760, %v6813_v6  ;;  %v15546_v58 = vand.u32 4294901760, %v15545_v61 }
 0x460   : > { %15380 = vmatpush1.msra.mxu0 %v20775_v3  ;;  %15443 = vmatprep.mubr.f32.mxu0 %v21454_v62  ;;  %v15561_v3 = vand.u32 4294901760, %v20935_v14 }
 0x461   : > { %15476 = vmatprep.subr.mxu0 %v20891_v39 }
 0x462   : > { %v15562_v17 = vsub.f32 %v20935_v14, %v15561_v3 }
 0x465   : > { %6798 = vmatmul.mubr.f32.vlgmr.msra.gmra.mrb[6].mxu1 %v6797_v5 }
 0x466   : > { %6815 = vmatpush1.msra.mxu1 %v6814_v49  ;;  %6878 = vmatprep.mubr.f32.mxu1 %v21454_v62 }
 0x467   : > { %6888 = vmatprep.subr.mxu1 %v20867_v52  ;;  %15445 = vmatmul.mubr.f32.vlgmr.msra.gmra.mrb[0].mxu0 %v20768_v10  ;;  %v15563_v10 = vand.u32 4294901760, %v15562_v17  ;;  %v7212_v52 = vsel %vm5271_vm9, %v7206_v15, 0 }
 0x468   : > { %15478 = vmatpush1.msra.mxu0 %v20919_v19  ;;  %15541 = vmatprep.mubr.f32.mxu0 %v21454_v62 }
 0x469   : > { %15558 = vmatprep.subr.mxu0 %v15557_v0 }
 0x46d   : > { %6880 = vmatmul.mubr.f32.vlgmr.msra.gmra.mrb[6].mxu1 %v20871_v36 }
 0x46e   : > { %6891 = vmatpush1.msra.mxu1 %v20897_v18  ;;  %6954 = vmatprep.mubr.f32.mxu1 %v21454_v62 }
 0x46f   : > { %6964 = vmatprep.subr.mxu1 %v20848_v2  ;;  %15547 = vmatmul.mubr.f32.vlgmr.msra.gmra.mrb[0].mxu0 %v15546_v58 }
 0x470   : > { %15564 = vmatpush1.msra.mxu0 %v15563_v10  ;;  %15627 = vmatprep.mubr.f32.mxu0 %v21454_v62  ;;  %v21530_v10 = vld [vmem:[#allocation36_spill] sm:$0xff] }
 0x471   : > { %15637 = vmatprep.subr.mxu0 %v20910_v34  ;;  %v15957_v34 = vsel %vm5271_vm9, %v15947_v41, 0  ;;  %v7689_v29 = vsel %vm7688_vm13, %v21531_v59, %v21530_v10  ;;  %v7690_v24 = vsel %vm7688_vm13, %v21530_v10, %v21531_v59  ;;  %v16439_v41 = vsel %vm16437_vm15, 1.0, %v21454_v62 }
 0x472   : > { %v7696_v27 = vmul.f32 %v7689_v29, %v21512_v32 }
 0x474   : > { %v7704_v48 = vsel %vm5271_vm9, %v7696_v27, 0 }
 0x475   : > { %6957 = vmatmul.mubr.f32.vlgmr.msra.gmra.mrb[6].mxu1 %v20883_v57  ;;  %v7297_v57 = vand.u32 4294901760, %v21009_v4  ;;  %v21152_v43 = vand.u32 4294901760, %v7704_v48 }
 0x476   : > { %6966 = vmatpush1.msra.mxu1 %v20873_v23  ;;  %7029 = vmatprep.mubr.f32.mxu1 %v21454_v62 }
 0x477   : > { %7042 = vmatprep.subr.mxu1 %v6806_v21  ;;  %15629 = vmatmul.mubr.f32.vlgmr.msra.gmra.mrb[0].mxu0 %v20912_v54  ;;  %v21015_v21 = vand.u32 4294901760, %v7212_v52 }
 0x478   : > { %15640 = vmatpush1.msra.mxu0 %v20935_v14  ;;  %15703 = vmatprep.mubr.f32.mxu0 %v21454_v62 }
 0x479   : > { %15713 = vmatprep.subr.mxu0 %v20891_v39  ;;  %v21034_v20 = vsub.f32 %v7212_v52, %v21015_v21 }
 0x47b   : > { %v7303_v12 = vand.u32 4294901760, %v21034_v20 }
 0x47d   : > { %7033 = vmatmul.mubr.f32.vlgmr.msra.gmra.mrb[6].mxu1 %v6795_v38  ;;  %v7298_v38 = vsub.f32 %v21009_v4, %v7297_v57 }
 0x47e   : > { %7046 = vmatpush1.msra.mxu1 %v6812_v16  ;;  %7109 = vmatprep.mubr.f32.mxu1 %v21454_v62 }
 0x47f   : > { %7118 = vmatprep.subr.mxu1 %v20848_v2  ;;  %15706 = vmatmul.mubr.f32.vlgmr.msra.gmra.mrb[0].mxu0 %v20926_v22  ;;  %v15960_v2 = vsel %vm5271_vm9, %v15952_v45, 0  ;;  %v21060_v22 = vand.u32 4294901760, %v15957_v34  ;;  %v21536_v45 = vmax.f32 %v21535_v51, 0.0 }
 0x480   : > { %15715 = vmatpush1.msra.mxu0 %v20919_v19  ;;  %15778 = vmatprep.mubr.f32.mxu0 %v21454_v62  ;;  %v21028_v18 = vand.u32 4294901760, %v15960_v2 }
 0x481   : > { %15791 = vmatprep.subr.mxu0 %v15555_v7  ;;  %v7299_v7 = vand.u32 4294901760, %v7298_v38  ;;  %v21076_v40 = vsub.f32 %v15957_v34, %v21060_v22  ;;  %v21540_v38 = vld [vmem:[#allocation38_spill] sm:$0xff] }
 0x482   : > { %v21051_v16 = vsub.f32 %v15960_v2, %v21028_v18  ;;  %v21537_v2 = vld [vmem:[#allocation10_spill] sm:$0xff] }
 0x484   : > { %v16042_v6 = vand.u32 4294901760, %v21051_v16 }
 0x485   : > { %7111 = vmatmul.mubr.f32.vlgmr.msra.gmra.mrb[6].mxu1 %v20871_v36 }
 0x486   : > { %7120 = vmatpush1.msra.mxu1 %v20873_v23  ;;  %7183 = vmatprep.mubr.f32.mxu1 %v21454_v62  ;;  %v15954_v23 = vsel %vm5267_vm2, %v5234_v26, 0  ;;  %v7695_v26 = vmul.f32 %v7693_v44, %v7690_v24  ;;  %v16938_v44 = vsel %vm5271_vm9, %v19798_v1, 0  ;;  %v5236_v24 = vld [vmem:[%s21374_s4 + $0x60] sm:$0xf] }
 0x487   : > { %7218 = vmatprep.subr.mxu1 %v20988_v63  ;;  %15782 = vmatmul.mubr.f32.vlgmr.msra.gmra.mrb[0].mxu0 %v15544_v56  ;;  %v21053_v53 = vand.u32 4294901760, %v15954_v23  ;;  %v16043_v56 = vsub.f32 %v21051_v16, %v16042_v6  ;;  %v21261_v51 = vand.u32 4294901760, %v16938_v44  ;;  %v16932_v42 = vsel %vm5267_vm2, %v5236_v24, 0 }
 0x488   : > { %15795 = vmatpush1.msra.mxu0 %v15561_v3  ;;  %15858 = vmatprep.mubr.f32.mxu0 %v21454_v62 }
 0x489   : > { %15867 = vmatprep.subr.mxu0 %v20891_v39  ;;  %v7287_v39 = vsub.f32 %v21021_v8, %v7286_v37  ;;  %v21067_v5 = vsub.f32 %v15954_v23, %v21053_v53  ;;  %v16044_v0 = vand.u32 4294901760, %v16043_v56  ;;  %v21539_v23 = vld [vmem:[#allocation39_spill] sm:$0xff] }
 0x48a   : > { %v16435_v34 = vsel %vm16433_vm8, %v21540_v38, %v21539_v23 }
 0x48b   : > { %v7288_v14 = vand.u32 4294901760, %v7287_v39  ;;  %v16031_v49 = vand.u32 4294901760, %v21067_v5  ;;  %v16441_v39 = vmul.f32 %v16439_v41, %v16435_v34  ;;  %v17571_v34 = vcombine.high %v19801_v35, %v19801_v35 }
 0x48d   : > { %7185 = vmatmul.mubr.f32.vlgmr.msra.gmra.mrb[6].mxu1 %v20871_v36  ;;  %v7304_v36 = vsub.f32 %v21034_v20, %v7303_v12  ;;  %v16032_v61 = vsub.f32 %v21067_v5, %v16031_v49 }
 0x48e   : > { %7220 = vmatpush1.msra.mxu1 %v21015_v21  ;;  %7283 = vmatprep.mubr.f32.mxu1 %v21454_v62 }
 0x48f   : > { %7300 = vmatprep.subr.mxu1 %v7299_v7  ;;  %15860 = vmatmul.mubr.f32.vlgmr.msra.gmra.mrb[0].mxu0 %v20912_v54  ;;  %v7305_v3 = vand.u32 4294901760, %v7304_v36  ;;  %v16033_v58 = vand.u32 4294901760, %v16032_v61  ;;  %v7701_v36 = vsel %vm5271_vm9, %v7695_v26, 0 }
 0x490   : > { %15869 = vmatpush1.msra.mxu0 %v20919_v19  ;;  %15932 = vmatprep.mubr.f32.mxu0 %v21454_v62  ;;  %v16048_v19 = vand.u32 4294901760, %v21076_v40 }
 0x491   : > { %15963 = vmatprep.subr.mxu0 %v21028_v18 }
 0x492   : > { %v16049_v17 = vsub.f32 %v21076_v40, %v16048_v19 }
 0x495   : > { %7289 = vmatmul.mubr.f32.vlgmr.msra.gmra.mrb[6].mxu1 %v7288_v14 }
 0x496   : > { %7306 = vmatpush1.msra.mxu1 %v7305_v3  ;;  %7369 = vmatprep.mubr.f32.mxu1 %v21454_v62 }
 0x497   : > { %7379 = vmatprep.subr.mxu1 %v21009_v4  ;;  %15934 = vmatmul.mubr.f32.vlgmr.msra.gmra.mrb[0].mxu0 %v20912_v54  ;;  %v16050_v54 = vand.u32 4294901760, %v16049_v17  ;;  %v5217_v4 = vld [vmem:[%s21374_s4 + $0x14] sm:$0xf] }
 0x498   : > { %15965 = vmatpush1.msra.mxu0 %v21060_v22  ;;  %16028 = vmatprep.mubr.f32.mxu0 %v21454_v62  ;;  %v7698_v7 = vsel %vm5267_vm2, %v5217_v4, 0  ;;  %v21274_v4 = vand.u32 4294901760, %v16932_v42 }
 0x499   : > { %16045 = vmatprep.subr.mxu0 %v16044_v0 }
 0x49d   : > { %7371 = vmatmul.mubr.f32.vlgmr.msra.gmra.mrb[6].mxu1 %v21013_v28 }
 0x49e   : > { %7382 = vmatpush1.msra.mxu1 %v21034_v20  ;;  %7445 = vmatprep.mubr.f32.mxu1 %v21454_v62  ;;  %v21176_v20 = vand.u32 4294901760, %v7698_v7 }
 0x49f   : > { %7455 = vmatprep.subr.mxu1 %v20988_v63  ;;  %16034 = vmatmul.mubr.f32.vlgmr.msra.gmra.mrb[0].mxu0 %v16033_v58 }
 0x4a0   : > { %16051 = vmatpush1.msra.mxu0 %v16050_v54  ;;  %16114 = vmatprep.mubr.f32.mxu0 %v21454_v62  ;;  %v21188_v56 = vsub.f32 %v7698_v7, %v21176_v20 }
 0x4a1   : > { %16124 = vmatprep.subr.mxu0 %v21051_v16  ;;  %v5235_v16 = vld [vmem:[%s21374_s4 + $0x5c] sm:$0xf] }
 0x4a2   : > { %v7775_v61 = vand.u32 4294901760, %v21188_v56 }
 0x4a4   : > { %v5196_v47 = vpop.f32.mrb[4].mxu1  ;;  %v7776_v58 = vsub.f32 %v21188_v56, %v7775_v61 }
 0x4a5   : > { %v5208_v60 = vadd.f32 %v5206_v33, %v5196_v47  ;;  %v5198_v30 = vpop.f32.mrb[5].mxu1  ;;  %7448 = vmatmul.mubr.f32.vlgmr.msra.gmra.mrb[6].mxu1 %v21021_v8  ;;  %v21172_v8 = vsub.f32 %v7704_v48, %v21152_v43 }
 0x4a6   : > { %v5209_v31 = vadd.f32 %v5206_v33, %v5198_v30  ;;  %7457 = vmatpush1.msra.mxu1 %v21015_v21  ;;  %7520 = vmatprep.mubr.f32.mxu1 %v21454_v62 }
 0x4a7   : > { %v5210_v15 = vmax.f32 %v5208_v60, 0.0  ;;  %7533 = vmatprep.subr.mxu1 %v7297_v57  ;;  %16116 = vmatmul.mubr.f32.vlgmr.msra.gmra.mrb[0].mxu0 %v21053_v53  ;;  %v21538_v57 = vmax.f32 %v21537_v2, 0.0  ;;  %v7786_v14 = vand.u32 4294901760, %v21172_v8  ;;  %v21544_v2 = vld [vmem:[#allocation4_spill] sm:$0xff] }
 0x4a8   : > { %v5211_v9 = vmax.f32 %v5209_v31, 0.0  ;;  %16127 = vmatpush1.msra.mxu0 %v21076_v40  ;;  %16190 = vmatprep.mubr.f32.mxu0 %v21454_v62 }
 0x4a9   : > { %v21125_v32 = vrot.slane %v5210_v15, 4  ;;  %16200 = vmatprep.subr.mxu0 %v21028_v18 }
 0x4aa   : > { %v21138_v13 = vrot.slane %v5211_v9, 4 }
 0x4ab   : > { %v18059_v52 = vsel %vm283_vm1, %v21536_v45, %v21125_v32  ;;  %v21541_v45 = vld [vmem:[#allocation5_spill] sm:$0xff] }
 0x4ac   : > { %18063 = vst [vmem:[%s21123_s19] sm:$0xff] %v18059_v52  ;;  %v18060_v46 = vsel %vm283_vm1, %v21538_v57, %v21138_v13  ;;  %v21545_v57 = vand.u32 4294901760, %v21544_v2 }
 0x4ad   : > { %18064 = vst [vmem:[%s21123_s19 + $0x8] sm:$0xff] %v18060_v46  ;;  %7524 = vmatmul.mubr.f32.vlgmr.msra.gmra.mrb[6].mxu1 %v7286_v37  ;;  %v21178_v37 = vand.u32 4294901760, %v7701_v36 }
 0x4ae   : > { %7537 = vmatpush1.msra.mxu1 %v7303_v12  ;;  %7600 = vmatprep.mubr.f32.mxu1 %v21454_v62  ;;  %v16449_v12 = vsel %vm5271_vm9, %v16441_v39, 0  ;;  %v8260_v46 = vsub.f32 %v21544_v2, %v21545_v57  ;;  %v21292_v39 = vsub.f32 %v16932_v42, %v21274_v4 }
 0x4af   : > { %7609 = vmatprep.subr.mxu1 %v20988_v63  ;;  %16193 = vmatmul.mubr.f32.vlgmr.msra.gmra.mrb[0].mxu0 %v21067_v5  ;;  %v16434_v63 = vsel %vm16433_vm8, %v21539_v23, %v21540_v38  ;;  %v21196_v3 = vand.u32 4294901760, %v16449_v12  ;;  %v7791_v0 = vsub.f32 %v7701_v36, %v21178_v37  ;;  %v21546_v38 = vld [vmem:[#allocation6_spill] sm:$0xff]  ;;  %v21547_v36 = vld [vmem:[#allocation8_spill] sm:$0xff] }
 0x4b0   : > { %16202 = vmatpush1.msra.mxu0 %v21060_v22  ;;  %16265 = vmatprep.mubr.f32.mxu0 %v21454_v62 }
 0x4b1   : > { %16278 = vmatprep.subr.mxu0 %v16042_v6  ;;  %v16440_v6 = vmul.f32 %v16434_v63, %v19609_v55  ;;  %v7787_v55 = vsub.f32 %v21172_v8, %v7786_v14  ;;  %v7792_v40 = vand.u32 4294901760, %v7791_v0 }
 0x4b3   : > { %v16446_v5 = vsel %vm5271_vm9, %v16440_v6, 0  ;;  %v7793_v59 = vsub.f32 %v7791_v0, %v7792_v40 }
 0x4b4   : > { %v21217_v54 = vand.u32 4294901760, %v16446_v5 }
 0x4b5   : > { %7602 = vmatmul.mubr.f32.vlgmr.msra.gmra.mrb[6].mxu1 %v21013_v28  ;;  %v7794_v60 = vand.u32 4294901760, %v7793_v59 }
 0x4b6   : > { %7611 = vmatpush1.msra.mxu1 %v21015_v21  ;;  %7674 = vmatprep.mubr.f32.mxu1 %v21454_v62  ;;  %v16443_v21 = vsel %vm5267_vm2, %v5235_v16, 0  ;;  %v16536_v29 = vsub.f32 %v16446_v5, %v21217_v54  ;;  %v17009_v16 = vand.u32 4294901760, %v21292_v39 }
 0x4b7   : > { %7707 = vmatprep.subr.mxu1 %v21152_v43  ;;  %16269 = vmatmul.mubr.f32.vlgmr.msra.gmra.mrb[0].mxu0 %v16031_v49  ;;  %v16530_v49 = vsub.f32 %v16449_v12, %v21196_v3  ;;  %v21213_v17 = vand.u32 4294901760, %v16443_v21  ;;  %v17578_v12 = vsel %vm283_vm1, %v17571_v34, 0 }
 0x4b8   : > { %16282 = vmatpush1.msra.mxu0 %v16048_v19  ;;  %16345 = vmatprep.mubr.f32.mxu0 %v21454_v62  ;;  %v7788_v19 = vand.u32 4294901760, %v7787_v55  ;;  %v16537_v30 = vand.u32 4294901760, %v16536_v29  ;;  %v17010_v5 = vsub.f32 %v21292_v39, %v17009_v16 }
 0x4b9   : > { %16354 = vmatprep.subr.mxu0 %v21028_v18  ;;  %v16531_v18 = vand.u32 4294901760, %v16530_v49  ;;  %v16519_v10 = vsub.f32 %v16443_v21, %v21213_v17 }
 0x4ba   : > { %v16538_v31 = vsub.f32 %v16536_v29, %v16537_v30 }
 0x4bb   : > { %v16532_v33 = vsub.f32 %v16530_v49, %v16531_v18  ;;  %v16520_v47 = vand.u32 4294901760, %v16519_v10 }
 0x4bc   : > { %v16539_v9 = vand.u32 4294901760, %v16538_v31 }
 0x4bd   : > { %7676 = vmatmul.mubr.f32.vlgmr.msra.gmra.mrb[6].mxu1 %v21013_v28  ;;  %v7777_v28 = vand.u32 4294901760, %v7776_v58  ;;  %v16521_v27 = vsub.f32 %v16519_v10, %v16520_v47  ;;  %v17011_v58 = vand.u32 4294901760, %v17010_v5 }
 0x4be   : > { %7709 = vmatpush1.msra.mxu1 %v21178_v37  ;;  %7772 = vmatprep.mubr.f32.mxu1 %v21454_v62 }
 0x4bf   : > { %7789 = vmatprep.subr.mxu1 %v7788_v19  ;;  %16347 = vmatmul.mubr.f32.vlgmr.msra.gmra.mrb[0].mxu0 %v21053_v53  ;;  %v16522_v15 = vand.u32 4294901760, %v16521_v27 }
 0x4c0   : > { %16356 = vmatpush1.msra.mxu0 %v21060_v22  ;;  %16419 = vmatprep.mubr.f32.mxu0 %v21454_v62  ;;  %v16533_v22 = vand.u32 4294901760, %v16532_v33 }
 0x4c1   : > { %16452 = vmatprep.subr.mxu0 %v21196_v3 }
 0x4c5   : > { %7778 = vmatmul.mubr.f32.vlgmr.msra.gmra.mrb[6].mxu1 %v7777_v28 }
 0x4c6   : > { %7795 = vmatpush1.msra.mxu1 %v7794_v60  ;;  %7858 = vmatprep.mubr.f32.mxu1 %v21454_v62 }
 0x4c7   : > { %7868 = vmatprep.subr.mxu1 %v21172_v8  ;;  %16421 = vmatmul.mubr.f32.vlgmr.msra.gmra.mrb[0].mxu0 %v21053_v53  ;;  %v16923_v53 = vsel %vm16922_vm3, %v19787_v50, %v19770_v11  ;;  %v21542_v50 = vld [vmem:[#allocation7_spill] sm:$0xff]  ;;  %v21548_v8 = vand.u32 4294901760, %v21547_v36 }
 0x4c8   : > { %16454 = vmatpush1.msra.mxu0 %v21217_v54  ;;  %16517 = vmatprep.mubr.f32.mxu0 %v21454_v62  ;;  %v16929_v48 = vmul.f32 %v16923_v53, %v19967_v25  ;;  %v21543_v11 = vand.u32 4294901760, %v21542_v50  ;;  %v21272_v25 = vsub.f32 %v16938_v44, %v21261_v51  ;;  %v17410_v44 = vpop.permute.xlu1 %17409 }
 0x4c9   : > { %16534 = vmatprep.subr.mxu0 %v16533_v22 }
 0x4ca   : > { %v8271_v1 = vsub.f32 %v21542_v50, %v21543_v11  ;;  %v16935_v52 = vsel %vm5271_vm9, %v16929_v48, 0  ;;  %v17020_v7 = vand.u32 4294901760, %v21272_v25 }
 0x4cb   : > { %v21283_v23 = vand.u32 4294901760, %v16935_v52 }
 0x4cc   : > { %v8272_v26 = vand.u32 4294901760, %v8271_v1  ;;  %v21550_v1 = vld [vmem:[#allocation2_spill] sm:$0xff] }
 0x4cd   : > { %7860 = vmatmul.mubr.f32.vlgmr.msra.gmra.mrb[6].mxu1 %v21176_v20  ;;  %v21301_v63 = vsub.f32 %v16935_v52, %v21283_v23  ;;  %v17572_v52 = vrot.slane %v21550_v1, 2 }
 0x4ce   : > { %7871 = vmatpush1.msra.mxu1 %v7791_v0  ;;  %7934 = vmatprep.mubr.f32.mxu1 %v21454_v62  ;;  %v17576_v0 = vsel %vm283_vm1, %v19801_v35, 0 }
 0x4cf   : > { %7944 = vmatprep.subr.mxu1 %v21152_v43  ;;  %16523 = vmatmul.mubr.f32.vlgmr.msra.gmra.mrb[0].mxu0 %v16522_v15  ;;  %v17026_v55 = vand.u32 4294901760, %v21301_v63 }
 0x4d0   : > { %16540 = vmatpush1.msra.mxu0 %v16539_v9  ;;  %16603 = vmatprep.mubr.f32.mxu0 %v21454_v62 }
 0x4d1   : > { %16613 = vmatprep.subr.mxu0 %v16530_v49  ;;  %v17582_v49 = vand.u32 4294901760, %v17576_v0  ;;  %v17027_v19 = vsub.f32 %v21301_v63, %v17026_v55 }
 0x4d3   : > { %v17028_v59 = vand.u32 4294901760, %v17027_v19 }
 0x4d5   : > { %7937 = vmatmul.mubr.f32.vlgmr.msra.gmra.mrb[6].mxu1 %v21188_v56  ;;  %v17021_v56 = vsub.f32 %v21272_v25, %v17020_v7 }
 0x4d6   : > { %7946 = vmatpush1.msra.mxu1 %v21178_v37  ;;  %8009 = vmatprep.mubr.f32.mxu1 %v21454_v62 }
 0x4d7   : > { %8022 = vmatprep.subr.mxu1 %v7786_v14  ;;  %16605 = vmatmul.mubr.f32.vlgmr.msra.gmra.mrb[0].mxu0 %v21213_v17 }
 0x4d8   : > { %16616 = vmatpush1.msra.mxu0 %v16536_v29  ;;  %16679 = vmatprep.mubr.f32.mxu0 %v21454_v62 }
 0x4d9   : > { %16689 = vmatprep.subr.mxu0 %v21196_v3 }
 0x4dd   : > { %8013 = vmatmul.mubr.f32.vlgmr.msra.gmra.mrb[6].mxu1 %v7775_v61  ;;  %v17022_v61 = vand.u32 4294901760, %v17021_v56 }
 0x4de   : > { %8026 = vmatpush1.msra.mxu1 %v7792_v40  ;;  %8089 = vmatprep.mubr.f32.mxu1 %v21454_v62 }
 0x4df   : > { %8098 = vmatprep.subr.mxu1 %v21152_v43  ;;  %16682 = vmatmul.mubr.f32.vlgmr.msra.gmra.mrb[0].mxu0 %v16519_v10  ;;  %v18614_v43 = vld [vmem:[%s21371_s1 + $0x8] sm:$0x3f] }
 0x4e0   : > { %16691 = vmatpush1.msra.mxu0 %v21217_v54  ;;  %16754 = vmatprep.mubr.f32.mxu0 %v21454_v62  ;;  %v17569_v41 = vrot.slane %v18614_v43, 2 }
 0x4e1   : > { %16767 = vmatprep.subr.mxu0 %v16531_v18  ;;  %v21549_v18 = vld [vmem:[#allocation3_spill] sm:$0xff] }
 0x4e2   : > { %v17574_v14 = vsel %vm276_vm0, %v17569_v41, 0 }
 0x4e3   : > { %v21313_v21 = vand.u32 4294901760, %v17574_v14 }
 0x4e5   : > { %8091 = vmatmul.mubr.f32.vlgmr.msra.gmra.mrb[6].mxu1 %v21176_v20  ;;  %v17648_v40 = vsub.f32 %v17574_v14, %v21313_v21 }
 0x4e6   : > { %8100 = vmatpush1.msra.mxu1 %v21178_v37  ;;  %8163 = vmatprep.mubr.f32.mxu1 %v21454_v62  ;;  %v8261_v37 = vand.u32 4294901760, %v8260_v46 }
 0x4e7   : > { %8191 = vmatprep.subr.mxu1 %v21541_v45  ;;  %16758 = vmatmul.mubr.f32.vlgmr.msra.gmra.mrb[0].mxu0 %v16520_v47  ;;  %v17649_v10 = vand.u32 4294901760, %v17648_v40 }
 0x4e8   : > { %16771 = vmatpush1.msra.mxu0 %v16537_v30  ;;  %16834 = vmatprep.mubr.f32.mxu0 %v21454_v62 }
 0x4e9   : > { %16843 = vmatprep.subr.mxu0 %v21196_v3  ;;  %v21309_v3 = vand.u32 4294901760, %v17578_v12  ;;  %v17650_v33 = vsub.f32 %v17648_v40, %v17649_v10 }
 0x4eb   : > { %v17659_v35 = vsub.f32 %v17578_v12, %v21309_v3  ;;  %v17651_v30 = vand.u32 4294901760, %v17650_v33 }
 0x4ed   : > { %8165 = vmatmul.mubr.f32.vlgmr.msra.gmra.mrb[6].mxu1 %v21176_v20  ;;  %v8277_v20 = vsub.f32 %v21547_v36, %v21548_v8 }
 0x4ee   : > { %8193 = vmatpush1.msra.mxu1 %v21546_v38  ;;  %8256 = vmatprep.mubr.f32.mxu1 %v21454_v62 }
 0x4ef   : > { %8273 = vmatprep.subr.mxu1 %v8272_v26  ;;  %16836 = vmatmul.mubr.f32.vlgmr.msra.gmra.mrb[0].mxu0 %v21213_v17  ;;  %v8278_v6 = vand.u32 4294901760, %v8277_v20 }
 0x4f0   : > { %16845 = vmatpush1.msra.mxu0 %v21217_v54  ;;  %16908 = vmatprep.mubr.f32.mxu0 %v21454_v62  ;;  %v17665_v54 = vsub.f32 %v17576_v0, %v17582_v49 }
 0x4f1   : > { %16941 = vmatprep.subr.mxu0 %v21261_v51 }
 0x4f2   : > { %v17666_v28 = vand.u32 4294901760, %v17665_v54 }
 0x4f4   : > { %v17667_v47 = vsub.f32 %v17665_v54, %v17666_v28 }
 0x4f5   : > { %8262 = vmatmul.mubr.f32.vlgmr.msra.gmra.mrb[6].mxu1 %v8261_v37 }
 0x4f6   : > { %8279 = vmatpush1.msra.mxu1 %v8278_v6  ;;  %8342 = vmatprep.mubr.f32.mxu1 %v21454_v62  ;;  %v17668_v22 = vand.u32 4294901760, %v17667_v47 }
 0x4f7   : > { %8352 = vmatprep.subr.mxu1 %v21542_v50  ;;  %16910 = vmatmul.mubr.f32.vlgmr.msra.gmra.mrb[0].mxu0 %v21213_v17  ;;  %v17660_v17 = vand.u32 4294901760, %v17659_v35 }
 0x4f8   : > { %16943 = vmatpush1.msra.mxu0 %v21283_v23  ;;  %17006 = vmatprep.mubr.f32.mxu0 %v21454_v62 }
 0x4f9   : > { %17023 = vmatprep.subr.mxu0 %v17022_v61  ;;  %v17661_v29 = vsub.f32 %v17659_v35, %v17660_v17 }
 0x4fb   : > { %v17662_v60 = vand.u32 4294901760, %v17661_v29 }
 0x4fd   : > { %8344 = vmatmul.mubr.f32.vlgmr.msra.gmra.mrb[6].mxu1 %v21549_v18 }
 0x4fe   : > { %8355 = vmatpush1.msra.mxu1 %v21547_v36  ;;  %8418 = vmatprep.mubr.f32.mxu1 %v21454_v62 }
 0x4ff   : > { %17012 = vmatmul.mubr.f32.vlgmr.msra.gmra.mrb[0].mxu0 %v17011_v58  ;;  %17581 = vmatprep.subr.mxu1 %v21309_v3 }
 0x500   : > { %17029 = vmatpush1.msra.mxu0 %v17028_v59  ;;  %17092 = vmatprep.mubr.f32.mxu0 %v21454_v62 }
 0x501   : > { %17102 = vmatprep.subr.mxu0 %v21272_v25 }
 0x505   : > { %8421 = vmatmul.mubr.f32.vlgmr.msra.gmra.mrb[6].mxu1 %v21544_v2 }
 0x506   : > { %17583 = vmatpush1.msra.mxu1 %v17582_v49  ;;  %17646 = vmatprep.mubr.f32.mxu1 %v21454_v62 }
 0x507   : > { %17094 = vmatmul.mubr.f32.vlgmr.msra.gmra.mrb[0].mxu0 %v21274_v4  ;;  %17663 = vmatprep.subr.mxu1 %v17662_v60 }
 0x508   : > { %17105 = vmatpush1.msra.mxu0 %v21301_v63  ;;  %17168 = vmatprep.mubr.f32.mxu0 %v21454_v62 }
 0x509   : > { %17178 = vmatprep.subr.mxu0 %v21261_v51  ;;  %17652 = vmatmul.mubr.f32.vlgmr.msra.gmra.mrb[8].mxu1 %v17651_v30 }
 0x50a   : > { %17669 = vmatpush1.msra.mxu1 %v17668_v22  ;;  %17732 = vmatprep.mubr.f32.mxu1 %v21454_v62 }
 0x50b   : > { %17742 = vmatprep.subr.mxu1 %v17659_v35 }
 0x50f   : > { %17171 = vmatmul.mubr.f32.vlgmr.msra.gmra.mrb[0].mxu0 %v21292_v39 }
 0x510   : > { %17180 = vmatpush1.msra.mxu0 %v21283_v23  ;;  %17243 = vmatprep.mubr.f32.mxu0 %v21454_v62 }
 0x511   : > { %17256 = vmatprep.subr.mxu0 %v17020_v7  ;;  %17734 = vmatmul.mubr.f32.vlgmr.msra.gmra.mrb[8].mxu1 %v21313_v21 }
 0x512   : > { %17745 = vmatpush1.msra.mxu1 %v17665_v54  ;;  %17808 = vmatprep.mubr.f32.mxu1 %v21454_v62 }
 0x513   : > { %17818 = vmatprep.subr.mxu1 %v21309_v3 }
 0x517   : > { %17247 = vmatmul.mubr.f32.vlgmr.msra.gmra.mrb[0].mxu0 %v17009_v16 }
 0x518   : > { %17260 = vmatpush1.msra.mxu0 %v17026_v55  ;;  %17323 = vmatprep.mubr.f32.mxu0 %v21454_v62 }
 0x519   : > { %17332 = vmatprep.subr.mxu0 %v21261_v51  ;;  %17811 = vmatmul.mubr.f32.vlgmr.msra.gmra.mrb[8].mxu1 %v17648_v40 }
 0x51a   : > { %17820 = vmatpush1.msra.mxu1 %v17582_v49  ;;  %17883 = vmatprep.mubr.f32.mxu1 %v21454_v62 }
 0x51b   : > { %17896 = vmatprep.subr.mxu1 %v17660_v17 }
 0x51f   : > { %17325 = vmatmul.mubr.f32.vlgmr.msra.gmra.mrb[0].mxu0 %v21274_v4 }
 0x520   : > { %17334 = vmatpush1.msra.mxu0 %v21283_v23  ;;  %17397 = vmatprep.mubr.f32.mxu0 %v21454_v62 }
 0x521   : > { %17887 = vmatmul.mubr.f32.vlgmr.msra.gmra.mrb[8].mxu1 %v17649_v10 }
 0x522   : > { %17900 = vmatpush1.msra.mxu1 %v17666_v28  ;;  %17963 = vmatprep.mubr.f32.mxu1 %v21454_v62 }
 0x523   : > { %17972 = vmatprep.subr.mxu1 %v21309_v3 }
 0x527   : > { %17399 = vmatmul.mubr.f32.vlgmr.msra.gmra.mrb[0].mxu0 %v21274_v4 }
 0x529   : > { %17965 = vmatmul.mubr.f32.vlgmr.msra.gmra.mrb[8].mxu1 %v21313_v21 }
 0x52a   : > { %17974 = vmatpush1.msra.mxu1 %v17582_v49  ;;  %18037 = vmatprep.mubr.f32.mxu1 %v21454_v62 }
 0x531   : > { %18039 = vmatmul.mubr.f32.vlgmr.msra.gmra.mrb[8].mxu1 %v21313_v21 }
 0x5d8   : > { %v8422_v27 = vpop.f32.mrb[6].mxu1 }
 0x5d9   : > { %v8424_v31 = vpop.f32.mrb[7].mxu1 }
 0x5fa   : > { %v17400_v15 = vpop.f32.mrb[0].mxu0 }
 0x5fb   : > { %v18139_v9 = vadd.f32 %v17400_v15, %v8422_v27  ;;  %v17402_v53 = vpop.f32.mrb[1].mxu0 }
 0x5fc   : > { %v18140_v24 = vadd.f32 %v17402_v53, %v8424_v31 }
 0x5fd   : > { %v17412_v48 = vadd.f32 %v18139_v9, %v17410_v44 }
 0x5fe   : > { %v17413_v51 = vadd.f32 %v18140_v24, %v17410_v44 }
 0x5ff   : > { %v17414_v45 = vmax.f32 %v17412_v48, 0.0 }
 0x600   : > { %v17415_v42 = vmax.f32 %v17413_v51, 0.0 }
 0x601   : > { %v18055_v50 = vrot.slane %v17414_v45, 4 }
 0x602   : > { %v18056_v11 = vrot.slane %v17415_v42, 4 }
 0x603   : > { %v18061_v62 = vsel %vm283_vm1, %v21125_v32, %v18055_v50 }
 0x604   : > { %18065 = vst [vmem:[%s21123_s19 + $0x10] sm:$0xff] %v18061_v62  ;;  %v18062_v25 = vsel %vm283_vm1, %v21138_v13, %v18056_v11  ;;  %v18040_v4 = vpop.f32.mrb[8].mxu1 }
 0x605   : > { %18066 = vst [vmem:[%s21123_s19 + $0x18] sm:$0xff] %v18062_v25  ;;  %v18141_v2 = vadd.f32 %v18040_v4, %v17572_v52  ;;  %v18042_v57 = vpop.f32.mrb[9].mxu1 }
 0x606   : > { %v18142_v46 = vadd.f32 %v18042_v57, %v17572_v52 }
 0x607   : > { %v18045_v26 = vmax.f32 %v18141_v2, 0.0 }
 0x608   : > { %v18046_v43 = vmax.f32 %v18142_v46, 0.0 }
 0x609   : > { %18067 = vst [vmem:[%s21123_s19 + $0x20] sm:$0xf] %v18045_v26 }
 0x60a   : > { %18068 = vst [vmem:[%s21123_s19 + $0x28] sm:$0xf] %v18046_v43 }
 0x60b PF: > { %s16_s21 = sadd.s32 1, %s18621_s21  }
 0x60c   : > { %p13_p4 = scmp.ge.s32.totalorder %s16_s21, 4  }
 0x60e   :  { %15 = sbr.rel (!%p13_p4) target bundleno = 1 (0x1), region = 74 }

</bundles_post_ra>
